<compile_context>
chip_gen: v5e
topology: v5e:2x2
jax: 0.10.0
libtpu: 0.0.40
codegen_flags: <defaults>
</compile_context>

<pallas_src>
import functools

import jax
import jax.numpy as jnp
from jax import lax
from jax.experimental import pallas as pl
from jax.experimental.pallas import tpu as pltpu


def _round_up(a: int, b: int) -> int:
    return (a + b - 1) // b * b


# ---------------------------------------------------------------------------
# Kernel 1: router — logits, top-k routing weights (normalized, scaled), ids
# ---------------------------------------------------------------------------
def _router_kernel(x_ref, gw_ref, logits_ref, topw_ref, topi_ref,
                   *, top_k: int, score_scale_factor: float):
    x = x_ref[...]                                      # (tm_r, H)
    gw = gw_ref[...]                                    # (E, H)
    E = gw.shape[0]

    # router logits: contract last dims directly (no (H, E) transpose).
    logits = lax.dot_general(x, gw, (((1,), (1,)), ((), ())),
                             preferred_element_type=jnp.float32)     # (tm_r, E)
    logits_ref[...] = logits.astype(logits_ref.dtype)

    # fp32 softmax (matches F.softmax(..., dtype=torch.float)).
    m = jnp.max(logits, axis=-1, keepdims=True)
    ex = jnp.exp(logits - m)
    probs = ex / jnp.sum(ex, axis=-1, keepdims=True)    # (tm_r, E) fp32

    # Iterative top-k via first-max (ties -> lowest expert index).
    rows = probs.shape[0]
    eiota = lax.broadcasted_iota(jnp.int32, probs.shape, 1)           # (tm_r, E)
    kiota = lax.broadcasted_iota(jnp.int32, (rows, top_k), 1)         # (tm_r, K)
    remaining = probs
    topv = jnp.zeros((rows, top_k), jnp.float32)
    topi = jnp.zeros((rows, top_k), jnp.int32)
    for k in range(top_k):                              # static & small
        mval = jnp.max(remaining, axis=-1, keepdims=True)             # (tm_r, 1)
        first = jnp.min(jnp.where(remaining >= mval, eiota, E),
                        axis=-1, keepdims=True)                        # (tm_r, 1)
        topv = jnp.where(kiota == k, mval, topv)
        topi = jnp.where(kiota == k, first, topi)
        remaining = jnp.where(eiota == first, -jnp.inf, remaining)

    # Normalize over the selected experts and fold score_scale_factor ONCE.
    topv = topv / jnp.sum(topv, axis=-1, keepdims=True) * score_scale_factor
    topw_ref[...] = topv
    topi_ref[...] = topi


# ---------------------------------------------------------------------------
# Kernel 2: grouped expert matmul — one expert per token tile, streamed weights
# ---------------------------------------------------------------------------
def _gmm_kernel(tile_expert_ref, xs_ref, ws_ref, ew_ref, out_ref):
    del tile_expert_ref            # consumed only by the index_maps (prefetch)
    # xs_ref: (tm, H) grouped/padded tokens; ew_ref: (1, tn, H) rows of W_e;
    # ws_ref: (tm, 1) per-row routing weight (0 for padding rows).
    y = lax.dot_general(xs_ref[...], ew_ref[0], (((1,), (1,)), ((), ())),
                        preferred_element_type=jnp.float32)           # (tm, tn)
    out_ref[...] = (y * ws_ref[...]).astype(out_ref.dtype)


# ---------------------------------------------------------------------------
# Wrapper
# ---------------------------------------------------------------------------
def sparse_moe_block(x, gate_w, expert_w, *, top_k, score_scale_factor,
                     tm=256, tn=None, weight_dtype=None):
    T, H = x.shape
    E = gate_w.shape[0]
    assert expert_w.shape == (E, H, H)
    assert 1 <= top_k <= E
    assert H % 128 == 0, "hidden dim must be a multiple of 128 (lane width)"

    # ---- tile choices -------------------------------------------------------
    tm = max(8, (min(tm, _round_up(T * top_k, 8)) // 8) * 8)
    if tn is None:
        tn = min(H, 512)          # never default to tn=H (v7x has 64 MiB VMEM)
    assert H % tn == 0 and tn % 128 == 0, "tn must be a 128-multiple dividing H"
    tm_r = 256 if (T % 256 == 0) else T              # router token tile

    ew = expert_w if weight_dtype is None else expert_w.astype(weight_dtype)

    # ---- kernel 1: router ---------------------------------------------------
    router = pl.pallas_call(
        functools.partial(_router_kernel, top_k=top_k,
                          score_scale_factor=float(score_scale_factor)),
        out_shape=(jax.ShapeDtypeStruct((T, E), x.dtype),        # router_logits
                   jax.ShapeDtypeStruct((T, top_k), jnp.float32),  # routing w
                   jax.ShapeDtypeStruct((T, top_k), jnp.int32)),   # expert ids
        grid_spec=pltpu.PrefetchScalarGridSpec(
            num_scalar_prefetch=0,
            grid=(T // tm_r,),
            in_specs=[pl.BlockSpec((tm_r, H), lambda i: (i, 0)),
                      pl.BlockSpec((E, H), lambda i: (0, 0))],
            out_specs=[pl.BlockSpec((tm_r, E), lambda i: (i, 0)),
                       pl.BlockSpec((tm_r, top_k), lambda i: (i, 0)),
                       pl.BlockSpec((tm_r, top_k), lambda i: (i, 0))]),
        compiler_params=pltpu.CompilerParams(
            dimension_semantics=("parallel",)),
    )
    logits, topk_w, topk_idx = router(x, gate_w)

    # ---- JAX glue: sort assignments by expert, pad groups to tm-row tiles ---
    A = T * top_k
    flat_e = topk_idx.reshape(A)
    flat_w = topk_w.reshape(A)
    order = jnp.argsort(flat_e, stable=True)          # token order kept per expert
    sorted_e = flat_e[order]
    sorted_w = flat_w[order]
    sorted_tok = order // top_k

    group_sizes = jnp.bincount(flat_e, length=E)                     # (E,)
    padded_sizes = ((group_sizes + tm - 1) // tm) * tm
    padded_ends = jnp.cumsum(padded_sizes)
    padded_starts = padded_ends - padded_sizes
    sorted_starts = jnp.cumsum(group_sizes) - group_sizes

    rank = jnp.arange(A, dtype=jnp.int32) - sorted_starts[sorted_e]
    dest = (padded_starts[sorted_e] + rank).astype(jnp.int32)        # unique rows

    R = _round_up(A + E * (tm - 1), tm)               # static upper bound
    n_tiles = R // tm

    xs_pad = jnp.zeros((R, H), x.dtype).at[dest].set(x[sorted_tok])
    ws_pad = jnp.zeros((R, 1), jnp.float32).at[dest].set(sorted_w[:, None])

    tile_start = jnp.arange(n_tiles, dtype=jnp.int32) * tm
    tile_expert = jnp.clip(
        jnp.searchsorted(padded_ends, tile_start, side='right'), 0, E - 1
    ).astype(jnp.int32)

    # ---- kernel 2: grouped matmul -------------------------------------------
    x_bytes = jnp.dtype(x.dtype).itemsize
    w_bytes = jnp.dtype(ew.dtype).itemsize
    need = (2 * tm * H * x_bytes + 2 * tm * 4
            + 2 * tn * H * w_bytes + 2 * tm * tn * x_bytes)
    try:
        vmem_cap = int(pltpu.get_tpu_info().vmem_capacity_bytes)
    except Exception:
        vmem_cap = 64 * 1024 * 1024                   # conservative (v7x)
    vmem_limit = min(int(vmem_cap * 0.85),
                     max(int(need * 1.5), 32 * 1024 * 1024))
    assert need <= vmem_limit, (
        f"kernel-2 working set {need} B exceeds VMEM budget {vmem_limit} B; "
        "lower tm/tn or stream bf16 weights (weight_dtype=jnp.bfloat16)")

    gmm = pl.pallas_call(
        _gmm_kernel,
        out_shape=jax.ShapeDtypeStruct((R, H), x.dtype),
        grid_spec=pltpu.PrefetchScalarGridSpec(
            num_scalar_prefetch=1,                    # per-tile expert ids -> SMEM
            grid=(H // tn, n_tiles),                  # token tiles innermost ->
                                                      # consecutive tiles of the
                                                      # same expert reuse the
                                                      # streamed weight block
            in_specs=[
                pl.BlockSpec((tm, H), lambda j, i, te: (i, 0)),
                pl.BlockSpec((tm, 1), lambda j, i, te: (i, 0)),
                pl.BlockSpec((1, tn, H), lambda j, i, te: (te[i], j, 0)),
            ],
            out_specs=pl.BlockSpec((tm, tn), lambda j, i, te: (i, j))),
        compiler_params=pltpu.CompilerParams(
            dimension_semantics=("parallel", "parallel"),
            vmem_limit_bytes=vmem_limit),
    )
    out_pad = gmm(tile_expert, xs_pad, ws_pad, ew)

    # ---- JAX glue: un-sort and sum each token's top_k contributions ---------
    # TODO(synk): the final un-sort + top_k-sum gather stays in XLA; a Pallas
    # scatter-add epilogue would need manual per-row DMA (data-dependent rows).
    dest_by_flat = jnp.zeros((A,), jnp.int32).at[order].set(dest)
    out = out_pad[dest_by_flat.reshape(T, top_k)].sum(axis=1).astype(x.dtype)
    return out, logits


# ---------------------------------------------------------------------------
# Pure-JAX reference mirroring the PyTorch forward
# ---------------------------------------------------------------------------
def _reference(x, gate_w, expert_w, top_k, scale):
    logits = x @ gate_w.T
    probs = jax.nn.softmax(logits.astype(jnp.float32), axis=-1)
    vals, idxs = lax.top_k(probs, top_k)
    vals = (vals / vals.sum(-1, keepdims=True)).astype(x.dtype)
    out = jnp.zeros_like(x)
    for k in range(top_k):
        w = jnp.take(expert_w, idxs[:, k], axis=0)          # (T, H, H)
        y = jnp.einsum('ti,toi->to', x, w)                  # x @ W_e.T per token
        out = out + y * vals[:, k:k + 1] * scale
    return out, logits


if __name__ == "__main__":
    # Small shapes: tokens=256, hidden=128, experts=8, top_k=2, scale=2.
    # tm=128 keeps group-padding waste low at toy sizes; production should use
    # tm=256-512 (see review notes at the top) and bf16 expert weights.
    T, H, E = 256, 128, 8
    TOP_K = 2
    SCORE_SCALE = 2

    key = jax.random.PRNGKey(0)
    kx, kg, ke = jax.random.split(key, 3)
    bound = 1.0 / (H ** 0.5)  # nn.Linear-style uniform init, deterministic
    x = jax.random.normal(kx, (T, H), dtype=jnp.float32)
    gate_w = jax.random.uniform(kg, (E, H), minval=-bound, maxval=bound,
                                dtype=jnp.float32)
    expert_w = jax.random.uniform(ke, (E, H, H), minval=-bound, maxval=bound,
                                  dtype=jnp.float32)

    out, logits = sparse_moe_block(x, gate_w, expert_w,
                                   top_k=TOP_K, score_scale_factor=SCORE_SCALE,
                                   tm=128)
    jax.block_until_ready((out, logits))

    ref_out, ref_logits = _reference(x, gate_w, expert_w, TOP_K, SCORE_SCALE)
    assert jnp.allclose(logits, ref_logits, rtol=1e-4, atol=1e-4), \
        "router logits mismatch"
    assert jnp.allclose(out, ref_out, rtol=1e-4, atol=1e-4), \
        "moe output mismatch"

    print("KERNEL_OK")
</pallas_src>

<mosaic_0001>
module attributes {stable_mosaic.version = 11 : i64} {
  func.func @_router_kernel(%arg0: i32, %arg1: memref<256x128xf32, #tpu.memory_space<vmem>>, %arg2: memref<8x128xf32, #tpu.memory_space<vmem>>, %arg3: memref<256x8xf32, #tpu.memory_space<vmem>>, %arg4: memref<256x2xf32, #tpu.memory_space<vmem>>, %arg5: memref<256x2xi32, #tpu.memory_space<vmem>>) attributes {dimension_semantics = [#tpu.dimension_semantics<parallel>], iteration_bounds = array<i64: 1>, scalar_prefetch = 0 : i64, scratch_operands = 0 : i64, tpu.core_type = #tpu.core_type<tc>, window_params = [{transform_indices = @transform_0, window_bounds = array<i64: 256, 128>}, {pipeline_mode = #tpu.pipeline_mode<synchronous>, transform_indices = @transform_1, window_bounds = array<i64: 8, 128>}, {transform_indices = @transform_2, window_bounds = array<i64: 256, 8>}, {transform_indices = @transform_3, window_bounds = array<i64: 256, 2>}, {transform_indices = @transform_4, window_bounds = array<i64: 256, 2>}]} {
    %c0 = arith.constant 0 : index
    %c0_0 = arith.constant 0 : index
    %0 = vector.load %arg1[%c0, %c0_0] : memref<256x128xf32, #tpu.memory_space<vmem>>, vector<256x128xf32>
    %c0_1 = arith.constant 0 : index
    %c0_2 = arith.constant 0 : index
    %1 = vector.load %arg2[%c0_1, %c0_2] : memref<8x128xf32, #tpu.memory_space<vmem>>, vector<8x128xf32>
    %cst = arith.constant dense<0.000000e+00> : vector<256x8xf32>
    %2 = tpu.matmul %0, %1, %cst {dimension_numbers = #tpu.dot_dimension_numbers<[1], [1], [0], [0], [0, 0, 1, 0], [], []>} : vector<256x128xf32>, vector<8x128xf32>, vector<256x8xf32> -> vector<256x8xf32>
    %c0_3 = arith.constant 0 : index
    %c0_4 = arith.constant 0 : index
    %3 = vector.load %arg3[%c0_3, %c0_4] : memref<256x8xf32, #tpu.memory_space<vmem>>, vector<256x8xf32>
    tpu.vector_store %arg3[%c0_3, %c0_4], %2 {strides = array<i32>} : memref<256x8xf32, #tpu.memory_space<vmem>>, vector<256x8xf32>,
    %cst_5 = arith.constant dense<0xFF800000> : vector<256xf32>
    %4 = vector.multi_reduction <maximumf>, %2, %cst_5 [1] : vector<256x8xf32> to vector<256xf32>
    %5 = vector.shape_cast %4 : vector<256xf32> to vector<256x1xf32>
    %6 = vector.broadcast %5 : vector<256x1xf32> to vector<256x8xf32>
    %7 = arith.subf %2, %6 : vector<256x8xf32>
    %8 = math.exp %7 : vector<256x8xf32>
    %cst_6 = arith.constant dense<0.000000e+00> : vector<256xf32>
    %9 = vector.multi_reduction <add>, %8, %cst_6 [1] : vector<256x8xf32> to vector<256xf32>
    %10 = vector.shape_cast %9 : vector<256xf32> to vector<256x1xf32>
    %11 = vector.broadcast %10 : vector<256x1xf32> to vector<256x8xf32>
    %12 = arith.divf %8, %11 : vector<256x8xf32>
    %13 = tpu.iota {dimensions = array<i32: 1>} : vector<256x8xi32>
    %14 = tpu.iota {dimensions = array<i32: 1>} : vector<256x2xi32>
    %cst_7 = arith.constant 0.000000e+00 : f32
    %15 = vector.broadcast %cst_7 : f32 to vector<256x2xf32>
    %c0_i32 = arith.constant 0 : i32
    %16 = vector.broadcast %c0_i32 : i32 to vector<256x2xi32>
    %cst_8 = arith.constant dense<0xFF800000> : vector<256xf32>
    %17 = vector.multi_reduction <maximumf>, %12, %cst_8 [1] : vector<256x8xf32> to vector<256xf32>
    %18 = vector.shape_cast %17 : vector<256xf32> to vector<256x1xf32>
    %19 = vector.broadcast %18 : vector<256x1xf32> to vector<256x8xf32>
    %20 = arith.cmpf oge, %12, %19 : vector<256x8xf32>
    %c8_i32 = arith.constant 8 : i32
    %21 = vector.broadcast %c8_i32 : i32 to vector<256x8xi32>
    %22 = arith.select %20, %13, %21 : vector<256x8xi1>, vector<256x8xi32>
    %cst_9 = arith.constant dense<2147483647> : vector<256xi32>
    %23 = vector.multi_reduction <minsi>, %22, %cst_9 [1] : vector<256x8xi32> to vector<256xi32>
    %24 = vector.shape_cast %23 : vector<256xi32> to vector<256x1xi32>
    %c0_i32_10 = arith.constant 0 : i32
    %25 = vector.broadcast %c0_i32_10 : i32 to vector<256x2xi32>
    %26 = arith.cmpi eq, %14, %25 : vector<256x2xi32>
    %27 = vector.shape_cast %18 : vector<256x1xf32> to vector<256x1xf32>
    %28 = vector.broadcast %27 : vector<256x1xf32> to vector<256x2xf32>
    %29 = arith.select %26, %28, %15 : vector<256x2xi1>, vector<256x2xf32>
    %c0_i32_11 = arith.constant 0 : i32
    %30 = vector.broadcast %c0_i32_11 : i32 to vector<256x2xi32>
    %31 = arith.cmpi eq, %14, %30 : vector<256x2xi32>
    %32 = vector.shape_cast %24 : vector<256x1xi32> to vector<256x1xi32>
    %33 = vector.broadcast %32 : vector<256x1xi32> to vector<256x2xi32>
    %34 = arith.select %31, %33, %16 : vector<256x2xi1>, vector<256x2xi32>
    %35 = vector.broadcast %24 : vector<256x1xi32> to vector<256x8xi32>
    %36 = arith.cmpi eq, %13, %35 : vector<256x8xi32>
    %cst_12 = arith.constant 0xFF800000 : f32
    %37 = vector.broadcast %cst_12 : f32 to vector<256x8xf32>
    %38 = arith.select %36, %37, %12 : vector<256x8xi1>, vector<256x8xf32>
    %cst_13 = arith.constant dense<0xFF800000> : vector<256xf32>
    %39 = vector.multi_reduction <maximumf>, %38, %cst_13 [1] : vector<256x8xf32> to vector<256xf32>
    %40 = vector.shape_cast %39 : vector<256xf32> to vector<256x1xf32>
    %41 = vector.broadcast %40 : vector<256x1xf32> to vector<256x8xf32>
    %42 = arith.cmpf oge, %38, %41 : vector<256x8xf32>
    %c8_i32_14 = arith.constant 8 : i32
    %43 = vector.broadcast %c8_i32_14 : i32 to vector<256x8xi32>
    %44 = arith.select %42, %13, %43 : vector<256x8xi1>, vector<256x8xi32>
    %cst_15 = arith.constant dense<2147483647> : vector<256xi32>
    %45 = vector.multi_reduction <minsi>, %44, %cst_15 [1] : vector<256x8xi32> to vector<256xi32>
    %46 = vector.shape_cast %45 : vector<256xi32> to vector<256x1xi32>
    %c1_i32 = arith.constant 1 : i32
    %47 = vector.broadcast %c1_i32 : i32 to vector<256x2xi32>
    %48 = arith.cmpi eq, %14, %47 : vector<256x2xi32>
    %49 = vector.shape_cast %40 : vector<256x1xf32> to vector<256x1xf32>
    %50 = vector.broadcast %49 : vector<256x1xf32> to vector<256x2xf32>
    %51 = arith.select %48, %50, %29 : vector<256x2xi1>, vector<256x2xf32>
    %c1_i32_16 = arith.constant 1 : i32
    %52 = vector.broadcast %c1_i32_16 : i32 to vector<256x2xi32>
    %53 = arith.cmpi eq, %14, %52 : vector<256x2xi32>
    %54 = vector.shape_cast %46 : vector<256x1xi32> to vector<256x1xi32>
    %55 = vector.broadcast %54 : vector<256x1xi32> to vector<256x2xi32>
    %56 = arith.select %53, %55, %34 : vector<256x2xi1>, vector<256x2xi32>
    %cst_17 = arith.constant dense<0.000000e+00> : vector<256xf32>
    %57 = vector.multi_reduction <add>, %51, %cst_17 [1] : vector<256x2xf32> to vector<256xf32>
    %58 = vector.shape_cast %57 : vector<256xf32> to vector<256x1xf32>
    %59 = vector.broadcast %58 : vector<256x1xf32> to vector<256x2xf32>
    %60 = arith.divf %51, %59 : vector<256x2xf32>
    %cst_18 = arith.constant 2.000000e+00 : f32
    %61 = vector.broadcast %cst_18 : f32 to vector<256x2xf32>
    %62 = arith.mulf %60, %61 : vector<256x2xf32>
    %c0_19 = arith.constant 0 : index
    %c0_20 = arith.constant 0 : index
    %63 = vector.load %arg4[%c0_19, %c0_20] : memref<256x2xf32, #tpu.memory_space<vmem>>, vector<256x2xf32>
    tpu.vector_store %arg4[%c0_19, %c0_20], %62 {strides = array<i32>} : memref<256x2xf32, #tpu.memory_space<vmem>>, vector<256x2xf32>,
    %c0_21 = arith.constant 0 : index
    %c0_22 = arith.constant 0 : index
    %64 = vector.load %arg5[%c0_21, %c0_22] : memref<256x2xi32, #tpu.memory_space<vmem>>, vector<256x2xi32>
    tpu.vector_store %arg5[%c0_21, %c0_22], %56 {strides = array<i32>} : memref<256x2xi32, #tpu.memory_space<vmem>>, vector<256x2xi32>,
    return
  }
  func.func @transform_0(%arg0: i32) -> (i32, i32) {
    %c0_i32 = arith.constant 0 : i32
    %c0_i32_0 = arith.constant 0 : i32
    return %arg0, %c0_i32 : i32, i32
  }
  func.func @transform_1(%arg0: i32) -> (i32, i32) {
    %c0_i32 = arith.constant 0 : i32
    %c0_i32_0 = arith.constant 0 : i32
    %c0_i32_1 = arith.constant 0 : i32
    return %c0_i32, %c0_i32_0 : i32, i32
  }
  func.func @transform_2(%arg0: i32) -> (i32, i32) {
    %c0_i32 = arith.constant 0 : i32
    %c0_i32_0 = arith.constant 0 : i32
    return %arg0, %c0_i32 : i32, i32
  }
  func.func @transform_3(%arg0: i32) -> (i32, i32) {
    %c0_i32 = arith.constant 0 : i32
    %c0_i32_0 = arith.constant 0 : i32
    return %arg0, %c0_i32 : i32, i32
  }
  func.func @transform_4(%arg0: i32) -> (i32, i32) {
    %c0_i32 = arith.constant 0 : i32
    %c0_i32_0 = arith.constant 0 : i32
    return %arg0, %c0_i32 : i32, i32
  }
}

</mosaic_0001>

<bundles_post_ra>
// kernel: tpu_custom_call.1
= control target key start
LH: loop header
LB: loop body
LE: loop exit
PB: predicated region body
PF: predicated region fallthrough
CT: control target
= control target key end

     0   :  { %10 = vsyncpa [#allocation3], 0  ;;  %s7265_s0 = inlined_call_operand.hbm [shape: f32[256,128], index: 0, kind: input, shape index: {}]   ;;  %s7266_s1 = inlined_call_operand.hbm [shape: f32[8,128], index: 1, kind: input, shape index: {}]   ;;  %s7267_s2 = inlined_call_operand.vmem [shape: f32[256,8], index: 2, kind: output, shape index: {0}]   ;;  %s7268_s3 = inlined_call_operand.vmem [shape: f32[256,2], index: 3, kind: output, shape index: {1}]   ;;  %s7269_s4 = inlined_call_operand.vmem [shape: s32[256,2], index: 4, kind: output, shape index: {2}]  }
   0x1   :  { %s16_s17 = sshll.u32 %s7265_s0, 4  ;;  %s17_s17 = int_to_ptr.hbm [resolvable:$true] %s16_s17 }
   0x2   :  { %11 = vsyncpa [#allocation5], 0  ;;  %s3405_s18 = smov [#allocation2]   ;;  %s30_s22 = sshll.u32 %s7266_s1, 4  ;;  %s31_s22 = int_to_ptr.hbm [resolvable:$true] %s30_s22 }
   0x3   :  { %s18_s19 = sshll.u32 %s3405_s18, 4  ;;  %s3406_s23 = smov 128   ;;  %s19_s19 = int_to_ptr.vmem [resolvable:$true] %s18_s19 }
   0x4   :  { %s3407_s24 = smov 8   ;;  %s3408_s25 = smov [#allocation4]  }
   0x5   :  { %24 = dma.hbm_to_vmem [thread:$0]  %s17_s17, 4096, %s19_s19, [#allocation3], %s3406_s23, %s3406_s23, %s3407_s24  }
   0x6   :  { %s32_s26 = sshll.u32 %s3408_s25, 4  ;;  %s33_s26 = int_to_ptr.vmem [resolvable:$true] %s32_s26 }
   0x7   :  { %35 = dma.hbm_to_vmem [thread:$0]  %s31_s22, 128, %s33_s26, [#allocation5]  }
   0x8   :  { %3401 = dma.done.wait [#allocation3], 4096  }
   0x9   :  { %3402 = vsyncadd [#allocation3], 4294963200 }
   0xa   :  { %3403 = dma.done.wait [#allocation5], 128  }
   0xb   :  { %3404 = vsyncadd [#allocation5], 4294967168  ;;  %v76_v0 = vld [vmem:[#allocation4] sm:$0xff]  ;;  %v45_v5 = vld [vmem:[#allocation2 + $0x8] sm:$0xff]  ;;  %vm190_vm0 = vcmask 64512  }
   0xc   :  { %92 = vmatpush.xpose.msra.mxu0 %v76_v0  ;;  %3154 = vmatpush.xpose.msra.mxu1 %v76_v0  ;;  %v44_v1 = vld [vmem:[#allocation2] sm:$0xff]  ;;  %v53_v6 = vld [vmem:[#allocation2 + $0x48] sm:$0xff]  ;;  %v46_v9 = vld [vmem:[#allocation2 + $0x10] sm:$0xff] }
   0xd   :  { %v52_v2 = vld [vmem:[#allocation2 + $0x40] sm:$0xff]  ;;  %3155 = vmatpush.xpose.msra.mxu2 %v76_v0  ;;  %3156 = vmatpush.xpose.msra.mxu3 %v76_v0  ;;  %v61_v7 = vld [vmem:[#allocation2 + $0x88] sm:$0xff]  ;;  %v54_v10 = vld [vmem:[#allocation2 + $0x50] sm:$0xff] }
   0xe   :  { %v60_v3 = vld [vmem:[#allocation2 + $0x80] sm:$0xff]  ;;  %v69_v8 = vld [vmem:[#allocation2 + $0xc8] sm:$0xff]  ;;  %v70_v11 = vld [vmem:[#allocation2 + $0xd0] sm:$0xff] }
   0xf   :  { %v68_v4 = vld [vmem:[#allocation2 + $0xc0] sm:$0xff]  ;;  %93 = vmatmul.f32.vlgmr.msra.gmra.mxu0 %v44_v1  ;;  %117 = vmatmul.f32.vlgmr.msra.gmra.mxu1 %v52_v2  ;;  %v62_v12 = vld [vmem:[#allocation2 + $0x90] sm:$0xff]  ;;  %v47_v13 = vld [vmem:[#allocation2 + $0x18] sm:$0xff] }
  0x10   :  { %141 = vmatmul.f32.vlgmr.msra.gmra.mxu2 %v60_v3  ;;  %165 = vmatmul.f32.vlgmr.msra.gmra.mxu3 %v68_v4  ;;  %v55_v14 = vld [vmem:[#allocation2 + $0x58] sm:$0xff]  ;;  %v48_v17 = vld [vmem:[#allocation2 + $0x20] sm:$0xff]  ;;  %v49_v21 = vld [vmem:[#allocation2 + $0x28] sm:$0xff] }
  0x11   :  { %v63_v15 = vld [vmem:[#allocation2 + $0x98] sm:$0xff]  ;;  %v56_v18 = vld [vmem:[#allocation2 + $0x60] sm:$0xff]  ;;  %v57_v22 = vld [vmem:[#allocation2 + $0x68] sm:$0xff] }
  0x12   :  { %v71_v16 = vld [vmem:[#allocation2 + $0xd8] sm:$0xff]  ;;  %v64_v19 = vld [vmem:[#allocation2 + $0xa0] sm:$0xff]  ;;  %v65_v23 = vld [vmem:[#allocation2 + $0xa8] sm:$0xff] }
  0x13   :  { %v72_v20 = vld [vmem:[#allocation2 + $0xe0] sm:$0xff]  ;;  %v73_v24 = vld [vmem:[#allocation2 + $0xe8] sm:$0xff]  ;;  %v50_v25 = vld [vmem:[#allocation2 + $0x30] sm:$0xff] }
  0x14   :  { %v58_v26 = vld [vmem:[#allocation2 + $0x70] sm:$0xff]  ;;  %v51_v29 = vld [vmem:[#allocation2 + $0x38] sm:$0xff] }
  0x15   :  { %v66_v27 = vld [vmem:[#allocation2 + $0xb0] sm:$0xff]  ;;  %v59_v30 = vld [vmem:[#allocation2 + $0x78] sm:$0xff] }
  0x16   :  { %v74_v28 = vld [vmem:[#allocation2 + $0xf0] sm:$0xff]  ;;  %v67_v31 = vld [vmem:[#allocation2 + $0xb8] sm:$0xff] }
  0x17   :  { %96 = vmatmul.f32.gmra.mxu0 %v45_v5  ;;  %120 = vmatmul.f32.gmra.mxu1 %v53_v6  ;;  %v75_v32 = vld [vmem:[#allocation2 + $0xf8] sm:$0xff] }
  0x18   :  { %144 = vmatmul.f32.gmra.mxu2 %v61_v7  ;;  %168 = vmatmul.f32.gmra.mxu3 %v69_v8 }
  0x1f   :  { %99 = vmatmul.f32.gmra.mxu0 %v46_v9  ;;  %123 = vmatmul.f32.gmra.mxu1 %v54_v10 }
  0x20   :  { %171 = vmatmul.f32.gmra.mxu3 %v70_v11  ;;  %147 = vmatmul.f32.gmra.mxu2 %v62_v12 }
  0x27   :  { %102 = vmatmul.f32.gmra.mxu0 %v47_v13  ;;  %126 = vmatmul.f32.gmra.mxu1 %v55_v14 }
  0x28   :  { %150 = vmatmul.f32.gmra.mxu2 %v63_v15  ;;  %174 = vmatmul.f32.gmra.mxu3 %v71_v16 }
  0x2f   :  { %105 = vmatmul.f32.gmra.mxu0 %v48_v17  ;;  %129 = vmatmul.f32.gmra.mxu1 %v56_v18 }
  0x30   :  { %153 = vmatmul.f32.gmra.mxu2 %v64_v19  ;;  %177 = vmatmul.f32.gmra.mxu3 %v72_v20 }
  0x37   :  { %108 = vmatmul.f32.gmra.mxu0 %v49_v21  ;;  %132 = vmatmul.f32.gmra.mxu1 %v57_v22 }
  0x38   :  { %156 = vmatmul.f32.gmra.mxu2 %v65_v23  ;;  %180 = vmatmul.f32.gmra.mxu3 %v73_v24 }
  0x3f   :  { %111 = vmatmul.f32.gmra.mxu0 %v50_v25  ;;  %135 = vmatmul.f32.gmra.mxu1 %v58_v26 }
  0x40   :  { %159 = vmatmul.f32.gmra.mxu2 %v66_v27  ;;  %183 = vmatmul.f32.gmra.mxu3 %v74_v28 }
  0x47   :  { %114 = vmatmul.f32.gmra.mxu0 %v51_v29  ;;  %138 = vmatmul.f32.gmra.mxu1 %v59_v30 }
  0x48   :  { %162 = vmatmul.f32.gmra.mxu2 %v67_v31  ;;  %186 = vmatmul.f32.gmra.mxu3 %v75_v32 }
  0x8c   :  { %v3440_v33 = vpop.f32.mrf.mxu0  ;;  %v3442_v34 = vpop.f32.mrf.mxu1 }
  0x8d   :  { %191 = vst.msk [vmem:[%s7267_s2] sm:$0xff] %vm190_vm0, %v3440_v33  ;;  %v247_v35 = vsel %vm190_vm0, %v3442_v34, -inf  ;;  %v223_v36 = vsel %vm190_vm0, %v3440_v33, -inf }
  0x8e   :  { %199 = vst.msk [vmem:[%s7267_s2 + $0x40] sm:$0xff] %vm190_vm0, %v3442_v34  ;;  %248 = vmax.xlane.f32.xlu2 %v247_v35  ;;  %224 = vmax.xlane.f32.xlu0 %v223_v36 }
  0x93   :  { %v3458_v37 = vpop.f32.mrf.mxu2  ;;  %v3460_v38 = vpop.f32.mrf.mxu3 }
  0x94   :  { %207 = vst.msk [vmem:[%s7267_s2 + $0x80] sm:$0xff] %vm190_vm0, %v3458_v37  ;;  %v271_v39 = vsel %vm190_vm0, %v3458_v37, -inf  ;;  %v295_v40 = vsel %vm190_vm0, %v3460_v38, -inf  ;;  %v3471_v41 = vpop.f32.mrf.mxu0  ;;  %v3473_v42 = vpop.f32.mrf.mxu1 }
  0x95   :  { %215 = vst.msk [vmem:[%s7267_s2 + $0xc0] sm:$0xff] %vm190_vm0, %v3460_v38  ;;  %272 = vmax.xlane.f32.xlu1 %v271_v39  ;;  %v226_v45 = vsel %vm190_vm0, %v3471_v41, -inf  ;;  %v250_v52 = vsel %vm190_vm0, %v3473_v42, -inf }
  0x96   :  { %296 = vmax.xlane.f32.xlu0 %v295_v40  ;;  %192 = vst.msk [vmem:[%s7267_s2 + $0x8] sm:$0xff] %vm190_vm0, %v3471_v41 }
  0x97   :  { %200 = vst.msk [vmem:[%s7267_s2 + $0x48] sm:$0xff] %vm190_vm0, %v3473_v42 }
  0x9b   :  { %v3490_v43 = vpop.f32.mrf.mxu2  ;;  %v3492_v44 = vpop.f32.mrf.mxu3 }
  0x9c   :  { %208 = vst.msk [vmem:[%s7267_s2 + $0x88] sm:$0xff] %vm190_vm0, %v3490_v43  ;;  %v298_v46 = vsel %vm190_vm0, %v3492_v44, -inf  ;;  %v274_v47 = vsel %vm190_vm0, %v3490_v43, -inf  ;;  %v3505_v48 = vpop.f32.mrf.mxu0  ;;  %v3507_v49 = vpop.f32.mrf.mxu1 }
  0x9d   :  { %216 = vst.msk [vmem:[%s7267_s2 + $0xc8] sm:$0xff] %vm190_vm0, %v3492_v44  ;;  %299 = vmax.xlane.f32.xlu1 %v298_v46  ;;  %275 = vmax.xlane.f32.xlu2 %v274_v47  ;;  %v229_v50 = vsel %vm190_vm0, %v3505_v48, -inf  ;;  %v253_v58 = vsel %vm190_vm0, %v3507_v49, -inf }
  0x9e   :  { %227 = vmax.xlane.f32.xlu0 %v226_v45  ;;  %193 = vst.msk [vmem:[%s7267_s2 + $0x10] sm:$0xff] %vm190_vm0, %v3505_v48 }
  0x9f   :  { %201 = vst.msk [vmem:[%s7267_s2 + $0x50] sm:$0xff] %vm190_vm0, %v3507_v49 }
  0xa3   :  { %v3526_v51 = vpop.f32.mrf.mxu3  ;;  %v3530_v53 = vpop.f32.mrf.mxu2 }
  0xa4   :  { %217 = vst.msk [vmem:[%s7267_s2 + $0xd0] sm:$0xff] %vm190_vm0, %v3526_v51  ;;  %v301_v54 = vsel %vm190_vm0, %v3526_v51, -inf  ;;  %v3539_v55 = vpop.f32.mrf.mxu0  ;;  %v3541_v56 = vpop.f32.mrf.mxu1  ;;  %v277_v59 = vsel %vm190_vm0, %v3530_v53, -inf }
  0xa5   :  { %302 = vmax.xlane.f32.xlu2 %v301_v54  ;;  %230 = vmax.xlane.f32.xlu1 %v229_v50  ;;  %194 = vst.msk [vmem:[%s7267_s2 + $0x18] sm:$0xff] %vm190_vm0, %v3539_v55  ;;  %v256_v57 = vsel %vm190_vm0, %v3541_v56, -inf  ;;  %v232_v0 = vsel %vm190_vm0, %v3539_v55, -inf }
  0xa6   :  { %251 = vmax.xlane.f32.xlu0 %v250_v52  ;;  %202 = vst.msk [vmem:[%s7267_s2 + $0x58] sm:$0xff] %vm190_vm0, %v3541_v56 }
  0xa7   :  { %209 = vst.msk [vmem:[%s7267_s2 + $0x90] sm:$0xff] %vm190_vm0, %v3530_v53 }
  0xab   :  { %v3564_v60 = vpop.f32.mrf.mxu2  ;;  %v3566_v61 = vpop.f32.mrf.mxu3 }
  0xac   :  { %v3568_v62 = vpop.f32.mrf.mxu0  ;;  %210 = vst.msk [vmem:[%s7267_s2 + $0x98] sm:$0xff] %vm190_vm0, %v3564_v60  ;;  %v3575_v63 = vpop.f32.mrf.mxu1  ;;  %v304_v2 = vsel %vm190_vm0, %v3566_v61, -inf  ;;  %v280_v7 = vsel %vm190_vm0, %v3564_v60, -inf }
  0xad   :  { %257 = vmax.xlane.f32.xlu2 %v256_v57  ;;  %254 = vmax.xlane.f32.xlu1 %v253_v58  ;;  %195 = vst.msk [vmem:[%s7267_s2 + $0x20] sm:$0xff] %vm190_vm0, %v3568_v62  ;;  %v235_v1 = vsel %vm190_vm0, %v3568_v62, -inf  ;;  %v259_v9 = vsel %vm190_vm0, %v3575_v63, -inf }
  0xae   :  { %278 = vmax.xlane.f32.xlu0 %v277_v59  ;;  %218 = vst.msk [vmem:[%s7267_s2 + $0xd8] sm:$0xff] %vm190_vm0, %v3566_v61 }
  0xaf   :  { %203 = vst.msk [vmem:[%s7267_s2 + $0x60] sm:$0xff] %vm190_vm0, %v3575_v63 }
  0xb3   :  { %v3598_v3 = vpop.f32.mrf.mxu2  ;;  %v3600_v4 = vpop.f32.mrf.mxu3 }
  0xb4   :  { %211 = vst.msk [vmem:[%s7267_s2 + $0xa0] sm:$0xff] %vm190_vm0, %v3598_v3  ;;  %v3607_v5 = vpop.f32.mrf.mxu0  ;;  %v3609_v6 = vpop.f32.mrf.mxu1  ;;  %v283_v8 = vsel %vm190_vm0, %v3598_v3, -inf  ;;  %v307_v14 = vsel %vm190_vm0, %v3600_v4, -inf }
  0xb5   :  { %233 = vmax.xlane.f32.xlu1 %v232_v0  ;;  %236 = vmax.xlane.f32.xlu2 %v235_v1  ;;  %196 = vst.msk [vmem:[%s7267_s2 + $0x28] sm:$0xff] %vm190_vm0, %v3607_v5  ;;  %v238_v15 = vsel %vm190_vm0, %v3607_v5, -inf  ;;  %v262_v21 = vsel %vm190_vm0, %v3609_v6, -inf }
  0xb6   :  { %305 = vmax.xlane.f32.xlu0 %v304_v2  ;;  %219 = vst.msk [vmem:[%s7267_s2 + $0xe0] sm:$0xff] %vm190_vm0, %v3600_v4 }
  0xb7   :  { %204 = vst.msk [vmem:[%s7267_s2 + $0x68] sm:$0xff] %vm190_vm0, %v3609_v6 }
  0xbb   :  { %v3632_v10 = vpop.f32.mrf.mxu2  ;;  %v3639_v11 = vpop.f32.mrf.mxu3 }
  0xbc   :  { %212 = vst.msk [vmem:[%s7267_s2 + $0xa8] sm:$0xff] %vm190_vm0, %v3632_v10  ;;  %v3646_v12 = vpop.f32.mrf.mxu0  ;;  %v3653_v13 = vpop.f32.mrf.mxu1  ;;  %v286_v16 = vsel %vm190_vm0, %v3632_v10, -inf  ;;  %v310_v22 = vsel %vm190_vm0, %v3639_v11, -inf }
  0xbd   :  { %281 = vmax.xlane.f32.xlu1 %v280_v7  ;;  %284 = vmax.xlane.f32.xlu2 %v283_v8  ;;  %220 = vst.msk [vmem:[%s7267_s2 + $0xe8] sm:$0xff] %vm190_vm0, %v3639_v11  ;;  %v241_v23 = vsel %vm190_vm0, %v3646_v12, -inf  ;;  %v265_v27 = vsel %vm190_vm0, %v3653_v13, -inf }
  0xbe   :  { %260 = vmax.xlane.f32.xlu0 %v259_v9  ;;  %197 = vst.msk [vmem:[%s7267_s2 + $0x30] sm:$0xff] %vm190_vm0, %v3646_v12 }
  0xbf   :  { %205 = vst.msk [vmem:[%s7267_s2 + $0x70] sm:$0xff] %vm190_vm0, %v3653_v13 }
  0xc3   :  { %v3666_v17 = vpop.f32.mrf.mxu2  ;;  %v3673_v18 = vpop.f32.mrf.mxu3 }
  0xc4   :  { %213 = vst.msk [vmem:[%s7267_s2 + $0xb0] sm:$0xff] %vm190_vm0, %v3666_v17  ;;  %v3680_v19 = vpop.f32.mrf.mxu0  ;;  %v3687_v20 = vpop.f32.mrf.mxu1  ;;  %v289_v26 = vsel %vm190_vm0, %v3666_v17, -inf  ;;  %v313_v28 = vsel %vm190_vm0, %v3673_v18, -inf }
  0xc5   :  { %308 = vmax.xlane.f32.xlu1 %v307_v14  ;;  %239 = vmax.xlane.f32.xlu2 %v238_v15  ;;  %221 = vst.msk [vmem:[%s7267_s2 + $0xf0] sm:$0xff] %vm190_vm0, %v3673_v18  ;;  %v244_v30 = vsel %vm190_vm0, %v3680_v19, -inf  ;;  %v268_v31 = vsel %vm190_vm0, %v3687_v20, -inf }
  0xc6   :  { %287 = vmax.xlane.f32.xlu0 %v286_v16  ;;  %198 = vst.msk [vmem:[%s7267_s2 + $0x38] sm:$0xff] %vm190_vm0, %v3680_v19 }
  0xc7   :  { %206 = vst.msk [vmem:[%s7267_s2 + $0x78] sm:$0xff] %vm190_vm0, %v3687_v20 }
  0xcb   :  { %v3700_v24 = vpop.f32.mrf.mxu2  ;;  %v3707_v25 = vpop.f32.mrf.mxu3 }
  0xcc   :  { %214 = vst.msk [vmem:[%s7267_s2 + $0xb8] sm:$0xff] %vm190_vm0, %v3700_v24  ;;  %v292_v29 = vsel %vm190_vm0, %v3700_v24, -inf  ;;  %v316_v32 = vsel %vm190_vm0, %v3707_v25, -inf }
  0xcd   :  { %263 = vmax.xlane.f32.xlu1 %v262_v21  ;;  %311 = vmax.xlane.f32.xlu2 %v310_v22  ;;  %222 = vst.msk [vmem:[%s7267_s2 + $0xf8] sm:$0xff] %vm190_vm0, %v3707_v25 }
  0xce   :  { %242 = vmax.xlane.f32.xlu0 %v241_v23 }
  0xd5   :  { %290 = vmax.xlane.f32.xlu1 %v289_v26  ;;  %266 = vmax.xlane.f32.xlu2 %v265_v27 }
  0xd6   :  { %314 = vmax.xlane.f32.xlu0 %v313_v28 }
  0xdd   :  { %293 = vmax.xlane.f32.xlu2 %v292_v29  ;;  %245 = vmax.xlane.f32.xlu1 %v244_v30 }
  0xde   :  { %269 = vmax.xlane.f32.xlu0 %v268_v31 }
  0xe5   :  { %317 = vmax.xlane.f32.xlu1 %v316_v32 }
 0x101   :  { %v249_v35 = vpop.xlane.xlu2 %248  ;;  %v225_v36 = vpop.xlane.xlu0 %224 }
 0x102   :  { %v327_v39 = vsub.f32 %v3442_v34, %v249_v35  ;;  %v319_v40 = vsub.f32 %v3440_v33, %v225_v36 }
 0x104   :  { %v367_v45 = vmul.f32 1.442695, %v327_v39  ;;  %v351_v46 = vmul.f32 1.442695, %v319_v40 }
 0x106   :  { %3161 = vpow2.f32 %v367_v45 }
 0x107   :  { %3163 = vpow2.f32 %v351_v46 }
 0x108   :  { %v273_v47 = vpop.xlane.xlu1 %272 }
 0x109   :  { %v335_v50 = vsub.f32 %v3458_v37, %v273_v47  ;;  %v297_v52 = vpop.xlane.xlu0 %296 }
 0x10a   :  { %v343_v54 = vsub.f32 %v3460_v38, %v297_v52 }
 0x10b   :  { %v383_v57 = vmul.f32 1.442695, %v335_v50 }
 0x10c   :  { %v3732_v58 = vpop.eup %3161  ;;  %v399_v59 = vmul.f32 1.442695, %v343_v54 }
 0x10d   :  { %v3734_v0 = vpop.eup %3163  ;;  %3165 = vpow2.f32 %v383_v57  ;;  %v439_v33 = vsel %vm190_vm0, %v3732_v58, 0.0 }
 0x10e   :  { %3167 = vpow2.f32 %v399_v59  ;;  %v415_v34 = vsel %vm190_vm0, %v3734_v0, 0.0  ;;  %440 = vadd.xlane.f32.xlu1 %v439_v33 }
 0x10f   :  { %416 = vadd.xlane.f32.xlu2 %v415_v34 }
 0x110   :  { %v300_v37 = vpop.xlane.xlu1 %299  ;;  %v276_v1 = vpop.xlane.xlu2 %275 }
 0x111   :  { %v336_v38 = vsub.f32 %v3490_v43, %v276_v1  ;;  %v228_v2 = vpop.xlane.xlu0 %227  ;;  %v344_v21 = vsub.f32 %v3492_v44, %v300_v37 }
 0x112   :  { %v320_v7 = vsub.f32 %v3471_v41, %v228_v2 }
 0x113   :  { %v3742_v8 = vpop.eup %3165  ;;  %v385_v9 = vmul.f32 1.442695, %v336_v38  ;;  %v401_v23 = vmul.f32 1.442695, %v344_v21 }
 0x114   :  { %v3744_v14 = vpop.eup %3167  ;;  %v353_v15 = vmul.f32 1.442695, %v320_v7  ;;  %v463_v16 = vsel %vm190_vm0, %v3742_v8, 0.0 }
 0x115   :  { %464 = vadd.xlane.f32.xlu0 %v463_v16  ;;  %v487_v22 = vsel %vm190_vm0, %v3744_v14, 0.0  ;;  %3169 = vpow2.f32 %v385_v9 }
 0x116   :  { %3171 = vpow2.f32 %v353_v15 }
 0x117   :  { %488 = vadd.xlane.f32.xlu2 %v487_v22  ;;  %3173 = vpow2.f32 %v401_v23 }
 0x118   :  { %v303_v43 = vpop.xlane.xlu2 %302  ;;  %v231_v41 = vpop.xlane.xlu1 %230 }
 0x119   :  { %v321_v26 = vsub.f32 %v3505_v48, %v231_v41  ;;  %v252_v27 = vpop.xlane.xlu0 %251  ;;  %v345_v44 = vsub.f32 %v3526_v51, %v303_v43 }
 0x11a   :  { %v328_v28 = vsub.f32 %v3473_v42, %v252_v27 }
 0x11b   :  { %v355_v29 = vmul.f32 1.442695, %v321_v26  ;;  %v3753_v30 = vpop.eup %3169  ;;  %v403_v42 = vmul.f32 1.442695, %v345_v44 }
 0x11c   :  { %v369_v31 = vmul.f32 1.442695, %v328_v28  ;;  %v3756_v32 = vpop.eup %3171  ;;  %v466_v35 = vsel %vm190_vm0, %v3753_v30, 0.0 }
 0x11d   :  { %3175 = vpow2.f32 %v355_v29  ;;  %467 = vadd.xlane.f32.xlu1 %v466_v35  ;;  %v418_v48 = vsel %vm190_vm0, %v3756_v32, 0.0  ;;  %v3764_v46 = vpop.eup %3173 }
 0x11e   :  { %3177 = vpow2.f32 %v369_v31  ;;  %419 = vadd.xlane.f32.xlu0 %v418_v48 }
 0x11f   :  { %3179 = vpow2.f32 %v403_v42 }
 0x120   :  { %v258_v36 = vpop.xlane.xlu2 %257  ;;  %v255_v39 = vpop.xlane.xlu1 %254 }
 0x121   :  { %v329_v40 = vsub.f32 %v3507_v49, %v255_v39  ;;  %v279_v51 = vpop.xlane.xlu0 %278  ;;  %v330_v52 = vsub.f32 %v3541_v56, %v258_v36 }
 0x122   :  { %v337_v45 = vsub.f32 %v3530_v53, %v279_v51  ;;  %v490_v53 = vsel %vm190_vm0, %v3764_v46, 0.0 }
 0x123   :  { %v371_v47 = vmul.f32 1.442695, %v329_v40  ;;  %v3766_v50 = vpop.eup %3175  ;;  %v373_v33 = vmul.f32 1.442695, %v330_v52 }
 0x124   :  { %v387_v54 = vmul.f32 1.442695, %v337_v45  ;;  %v3769_v57 = vpop.eup %3177  ;;  %v421_v59 = vsel %vm190_vm0, %v3766_v50, 0.0 }
 0x125   :  { %3181 = vpow2.f32 %v371_v47  ;;  %422 = vadd.xlane.f32.xlu1 %v421_v59  ;;  %v442_v49 = vsel %vm190_vm0, %v3769_v57, 0.0  ;;  %v3778_v38 = vpop.eup %3179 }
 0x126   :  { %3183 = vpow2.f32 %v387_v54  ;;  %443 = vadd.xlane.f32.xlu2 %v442_v49  ;;  %491 = vadd.xlane.f32.xlu0 %v490_v53  ;;  %v493_v16 = vsel %vm190_vm0, %v3778_v38, 0.0 }
 0x127   :  { %3185 = vpow2.f32 %v373_v33 }
 0x128   :  { %v234_v34 = vpop.xlane.xlu1 %233  ;;  %v237_v56 = vpop.xlane.xlu2 %236 }
 0x129   :  { %v322_v37 = vsub.f32 %v3539_v55, %v234_v34  ;;  %v306_v1 = vpop.xlane.xlu0 %305  ;;  %v323_v29 = vsub.f32 %v3568_v62, %v237_v56 }
 0x12a   :  { %v346_v9 = vsub.f32 %v3566_v61, %v306_v1 }
 0x12b   :  { %v357_v2 = vmul.f32 1.442695, %v322_v37  ;;  %v3780_v7 = vpop.eup %3181 }
 0x12c   :  { %v3783_v15 = vpop.eup %3183  ;;  %v445_v55 = vsel %vm190_vm0, %v3780_v7, 0.0  ;;  %v405_v22 = vmul.f32 1.442695, %v346_v9 }
 0x12d   :  { %3187 = vpow2.f32 %v357_v2  ;;  %494 = vadd.xlane.f32.xlu1 %v493_v16  ;;  %v469_v21 = vsel %vm190_vm0, %v3783_v15, 0.0  ;;  %v3793_v27 = vpop.eup %3185 }
 0x12e   :  { %470 = vadd.xlane.f32.xlu2 %v469_v21  ;;  %446 = vadd.xlane.f32.xlu0 %v445_v55  ;;  %3189 = vpow2.f32 %v405_v22  ;;  %v448_v48 = vsel %vm190_vm0, %v3793_v27, 0.0 }
 0x130   :  { %v282_v43 = vpop.xlane.xlu1 %281  ;;  %v285_v41 = vpop.xlane.xlu2 %284 }
 0x131   :  { %v338_v61 = vsub.f32 %v3564_v60, %v282_v43  ;;  %v339_v23 = vsub.f32 %v3598_v3, %v285_v41  ;;  %v261_v26 = vpop.xlane.xlu0 %260  ;;  %v359_v3 = vmul.f32 1.442695, %v323_v29 }
 0x132   :  { %v331_v35 = vsub.f32 %v3575_v63, %v261_v26 }
 0x133   :  { %v3795_v28 = vpop.eup %3187  ;;  %v389_v44 = vmul.f32 1.442695, %v338_v61  ;;  %v391_v31 = vmul.f32 1.442695, %v339_v23 }
 0x134   :  { %v424_v60 = vsel %vm190_vm0, %v3795_v28, 0.0  ;;  %v375_v39 = vmul.f32 1.442695, %v331_v35  ;;  %v3804_v51 = vpop.eup %3189 }
 0x135   :  { %3191 = vpow2.f32 %v389_v44  ;;  %449 = vadd.xlane.f32.xlu1 %v448_v48  ;;  %v496_v49 = vsel %vm190_vm0, %v3804_v51, 0.0 }
 0x136   :  { %3193 = vpow2.f32 %v391_v31  ;;  %425 = vadd.xlane.f32.xlu2 %v424_v60 }
 0x137   :  { %3195 = vpow2.f32 %v359_v3 }
 0x138   :  { %v309_v42 = vpop.xlane.xlu1 %308  ;;  %v240_v36 = vpop.xlane.xlu2 %239  ;;  %3197 = vpow2.f32 %v375_v39 }
 0x139   :  { %v324_v62 = vsub.f32 %v3607_v5, %v240_v36  ;;  %v288_v40 = vpop.xlane.xlu0 %287  ;;  %v347_v63 = vsub.f32 %v3600_v4, %v309_v42 }
 0x13a   :  { %v340_v59 = vsub.f32 %v3632_v10, %v288_v40 }
 0x13b   :  { %v3806_v45 = vpop.eup %3191  ;;  %v361_v47 = vmul.f32 1.442695, %v324_v62  ;;  %v407_v53 = vmul.f32 1.442695, %v347_v63 }
 0x13c   :  { %v3809_v52 = vpop.eup %3193  ;;  %v472_v54 = vsel %vm190_vm0, %v3806_v45, 0.0  ;;  %v393_v56 = vmul.f32 1.442695, %v340_v59 }
 0x13d   :  { %473 = vadd.xlane.f32.xlu0 %v472_v54  ;;  %v475_v5 = vsel %vm190_vm0, %v3809_v52, 0.0  ;;  %3199 = vpow2.f32 %v361_v47  ;;  %v3818_v34 = vpop.eup %3195 }
 0x13e   :  { %476 = vadd.xlane.f32.xlu1 %v475_v5  ;;  %497 = vadd.xlane.f32.xlu2 %v496_v49  ;;  %v3821_v10 = vpop.eup %3197  ;;  %3201 = vpow2.f32 %v407_v53  ;;  %v427_v21 = vsel %vm190_vm0, %v3818_v34, 0.0 }
 0x13f   :  { %3203 = vpow2.f32 %v393_v56 }
 0x140   :  { %v264_v4 = vpop.xlane.xlu1 %263  ;;  %v312_v33 = vpop.xlane.xlu2 %311 }
 0x141   :  { %v348_v37 = vsub.f32 %v3639_v11, %v312_v33  ;;  %v243_v1 = vpop.xlane.xlu0 %242  ;;  %v332_v2 = vsub.f32 %v3609_v6, %v264_v4  ;;  %v451_v11 = vsel %vm190_vm0, %v3821_v10, 0.0 }
 0x142   :  { %v325_v55 = vsub.f32 %v3646_v12, %v243_v1 }
 0x143   :  { %v409_v9 = vmul.f32 1.442695, %v348_v37  ;;  %v3824_v16 = vpop.eup %3199  ;;  %v377_v43 = vmul.f32 1.442695, %v332_v2 }
 0x144   :  { %v430_v22 = vsel %vm190_vm0, %v3824_v16, 0.0  ;;  %v3833_v61 = vpop.eup %3201  ;;  %v363_v23 = vmul.f32 1.442695, %v325_v55 }
 0x145   :  { %428 = vadd.xlane.f32.xlu0 %v427_v21  ;;  %3205 = vpow2.f32 %v409_v9  ;;  %v3836_v12 = vpop.eup %3203  ;;  %v499_v60 = vsel %vm190_vm0, %v3833_v61, 0.0 }
 0x146   :  { %431 = vadd.xlane.f32.xlu1 %v430_v22  ;;  %452 = vadd.xlane.f32.xlu2 %v451_v11  ;;  %3207 = vpow2.f32 %v377_v43 }
 0x147   :  { %3209 = vpow2.f32 %v363_v23 }
 0x148   :  { %v291_v6 = vpop.xlane.xlu1 %290  ;;  %v267_v41 = vpop.xlane.xlu2 %266 }
 0x149   :  { %v333_v26 = vsub.f32 %v3653_v13, %v267_v41  ;;  %v315_v29 = vpop.xlane.xlu0 %314  ;;  %v341_v44 = vsub.f32 %v3666_v17, %v291_v6  ;;  %v478_v13 = vsel %vm190_vm0, %v3836_v12, 0.0 }
 0x14a   :  { %v349_v48 = vsub.f32 %v3673_v18, %v315_v29 }
 0x14b   :  { %v379_v31 = vmul.f32 1.442695, %v333_v26  ;;  %v3839_v35 = vpop.eup %3205  ;;  %v395_v42 = vmul.f32 1.442695, %v341_v44 }
 0x14c   :  { %v502_v3 = vsel %vm190_vm0, %v3839_v35, 0.0  ;;  %v411_v17 = vmul.f32 1.442695, %v349_v48  ;;  %v3848_v62 = vpop.eup %3207 }
 0x14d   :  { %500 = vadd.xlane.f32.xlu0 %v499_v60  ;;  %3211 = vpow2.f32 %v379_v31  ;;  %v3851_v63 = vpop.eup %3209  ;;  %v454_v5 = vsel %vm190_vm0, %v3848_v62, 0.0 }
 0x14e   :  { %503 = vadd.xlane.f32.xlu1 %v502_v3  ;;  %479 = vadd.xlane.f32.xlu2 %v478_v13  ;;  %3213 = vpow2.f32 %v395_v42  ;;  %v433_v53 = vsel %vm190_vm0, %v3851_v63, 0.0 }
 0x14f   :  { %3215 = vpow2.f32 %v411_v17 }
 0x150   :  { %v294_v36 = vpop.xlane.xlu2 %293  ;;  %v246_v39 = vpop.xlane.xlu1 %245 }
 0x151   :  { %v342_v18 = vsub.f32 %v3700_v24, %v294_v36  ;;  %v270_v40 = vpop.xlane.xlu0 %269  ;;  %v326_v54 = vsub.f32 %v3680_v19, %v246_v39 }
 0x152   :  { %v334_v49 = vsub.f32 %v3687_v20, %v270_v40 }
 0x153   :  { %v397_v47 = vmul.f32 1.442695, %v342_v18  ;;  %v3854_v59 = vpop.eup %3211  ;;  %v365_v4 = vmul.f32 1.442695, %v326_v54 }
 0x154   :  { %v457_v24 = vsel %vm190_vm0, %v3854_v59, 0.0  ;;  %v3863_v33 = vpop.eup %3213  ;;  %v381_v56 = vmul.f32 1.442695, %v334_v49 }
 0x155   :  { %3217 = vpow2.f32 %v397_v47  ;;  %455 = vadd.xlane.f32.xlu0 %v454_v5  ;;  %v3865_v37 = vpop.eup %3215  ;;  %v481_v2 = vsel %vm190_vm0, %v3863_v33, 0.0 }
 0x156   :  { %458 = vadd.xlane.f32.xlu1 %v457_v24  ;;  %434 = vadd.xlane.f32.xlu2 %v433_v53  ;;  %3219 = vpow2.f32 %v365_v4  ;;  %v505_v21 = vsel %vm190_vm0, %v3865_v37, 0.0 }
 0x157   :  { %3221 = vpow2.f32 %v381_v56 }
 0x158   :  { %v318_v19 = vpop.xlane.xlu1 %317 }
 0x159   :  { %v350_v20 = vsub.f32 %v3707_v25, %v318_v19 }
 0x15b   :  { %v3867_v1 = vpop.eup %3217  ;;  %v413_v55 = vmul.f32 1.442695, %v350_v20 }
 0x15c   :  { %v484_v9 = vsel %vm190_vm0, %v3867_v1, 0.0  ;;  %v3876_v22 = vpop.eup %3219 }
 0x15d   :  { %482 = vadd.xlane.f32.xlu0 %v481_v2  ;;  %v3878_v11 = vpop.eup %3221  ;;  %3223 = vpow2.f32 %v413_v55  ;;  %v436_v25 = vsel %vm190_vm0, %v3876_v22, 0.0 }
 0x15e   :  { %485 = vadd.xlane.f32.xlu1 %v484_v9  ;;  %506 = vadd.xlane.f32.xlu2 %v505_v21  ;;  %v460_v43 = vsel %vm190_vm0, %v3878_v11, 0.0 }
 0x163   :  { %v3884_v6 = vpop.eup %3223 }
 0x164   :  { %v508_v41 = vsel %vm190_vm0, %v3884_v6, 0.0 }
 0x165   :  { %437 = vadd.xlane.f32.xlu0 %v436_v25 }
 0x166   :  { %461 = vadd.xlane.f32.xlu2 %v460_v43 }
 0x16d   :  { %509 = vadd.xlane.f32.xlu0 %v508_v41 }
 0x181   :  { %v441_v23 = vpop.xlane.xlu1 %440 }
 0x182   :  { %v417_v26 = vpop.xlane.xlu2 %416  ;;  %3225 = vrcp.f32 %v441_v23  ;;  %v640_v13 = vand.u32 2147483647, %v441_v23  ;;  %v642_v42 = vand.u32 2147483648, %v441_v23  ;;  %vm636_vm1 = vweird.f32 %v441_v23 }
 0x183   :  { %3227 = vrcp.f32 %v417_v26  ;;  %v520_v36 = vand.u32 2147483647, %v417_v26  ;;  %v522_v39 = vand.u32 2147483648, %v417_v26  ;;  %vm516_vm3 = vweird.f32 %v417_v26 }
 0x184   :  { %vm3891_vm5 = vcmp.eq.f32.partialorder %v640_v13, 8.507059e+37  ;;  %v643_v4 = vor.u32 1.1754944e-38, %v642_v42 }
 0x185   :  { %vm3895_vm6 = vcmp.eq.f32.partialorder %v520_v36, 8.507059e+37  ;;  %v523_v24 = vor.u32 1.1754944e-38, %v522_v39 }
 0x188   :  { %v3226_v29 = vpop.eup %3225  ;;  %v465_v44 = vpop.xlane.xlu0 %464 }
 0x189   :  { %v3228_v31 = vpop.eup %3227  ;;  %v632_v48 = vmul.f32 %v3226_v29, %v441_v23  ;;  %3229 = vrcp.f32 %v465_v44  ;;  %vm637_vm2 = vweird.f32 %v3226_v29  ;;  %vm756_vm8 = vweird.f32 %v465_v44 }
 0x18a   :  { %v512_v60 = vmul.f32 %v3228_v31, %v417_v26  ;;  %v3888_v3 = vpop.xlane.xlu2 %488  ;;  %vm517_vm4 = vweird.f32 %v3228_v31  ;;  %vm3899_vm7 = vmor %vm636_vm1, %vm637_vm2  ;;  %v760_v2 = vand.u32 2147483647, %v465_v44  ;;  %v762_v25 = vand.u32 2147483648, %v465_v44 }
 0x18b   :  { %v633_v17 = vsub.f32 1.0, %v632_v48  ;;  %3231 = vrcp.f32 %v3888_v3  ;;  %vm518_vm9 = vmor %vm516_vm3, %vm517_vm4  ;;  %v880_v43 = vand.u32 2147483647, %v3888_v3  ;;  %v882_v41 = vand.u32 2147483648, %v3888_v3 }
 0x18c   :  { %v513_v18 = vsub.f32 1.0, %v512_v60  ;;  %vm876_vm11 = vweird.f32 %v3888_v3  ;;  %vm761_vm14 = vcmp.eq.f32.partialorder %v760_v2, 8.507059e+37 }
 0x18d   :  { %v634_v40 = vmul.f32 %v3226_v29, %v633_v17  ;;  %vm3934_vm15 = vcmp.eq.f32.partialorder %v880_v43, 8.507059e+37 }
 0x18e   :  { %v514_v47 = vmul.f32 %v3228_v31, %v513_v18 }
 0x18f   :  { %v3230_v5 = vpop.eup %3229  ;;  %v635_v53 = vadd.f32 %v3226_v29, %v634_v40 }
 0x190   :  { %v752_v19 = vmul.f32 %v3230_v5, %v465_v44  ;;  %v515_v56 = vadd.f32 %v3228_v31, %v514_v47  ;;  %v3903_v21 = vpop.xlane.xlu1 %467  ;;  %vm757_vm10 = vweird.f32 %v3230_v5 }
 0x191   :  { %v3232_v9 = vpop.eup %3231  ;;  %v639_v55 = vsel %vm3899_vm7, %v3226_v29, %v635_v53  ;;  %3233 = vrcp.f32 %v3903_v21  ;;  %v3912_v60 = vpop.xlane.xlu0 %419  ;;  %v777_v18 = vand.u32 2147483648, %v3903_v21  ;;  %vm758_vm13 = vmor %vm756_vm8, %vm757_vm10  ;;  %vm771_vm1 = vweird.f32 %v3903_v21 }
 0x192   :  { %v753_v23 = vsub.f32 1.0, %v752_v19  ;;  %v872_v48 = vmul.f32 %v3232_v9, %v3888_v3  ;;  %v519_v13 = vsel %vm518_vm9, %v3228_v31, %v515_v56  ;;  %3235 = vrcp.f32 %v3912_v60 }
 0x193   :  { %v524_v26 = vsel %vm3895_vm6, %v523_v24, %v519_v13  ;;  %v644_v29 = vsel %vm3891_vm5, %v643_v4, %v639_v55  ;;  %vm877_vm12 = vweird.f32 %v3232_v9  ;;  %v775_v31 = vand.u32 2147483647, %v3903_v21 }
 0x194   :  { %v754_v42 = vmul.f32 %v3230_v5, %v753_v23  ;;  %v873_v17 = vsub.f32 1.0, %v872_v48  ;;  %v3920_v36 = vmul.f32 %v3734_v0, %v524_v26  ;;  %v3923_v39 = vmul.f32 %v3732_v58, %v644_v29  ;;  %vm878_vm3 = vmor %vm876_vm11, %vm877_vm12 }
 0x195   :  { %v763_v58 = vor.u32 1.1754944e-38, %v762_v25  ;;  %v883_v24 = vor.u32 1.1754944e-38, %v882_v41  ;;  %vm531_vm2 = vweird.f32 %v3912_v60  ;;  %vm3948_vm4 = vcmp.eq.f32.partialorder %v775_v31, 8.507059e+37 }
 0x196   :  { %7466 = vst [vmem:[#allocation8_spill] sm:$0xff] %v3920_v36  ;;  %v874_v40 = vmul.f32 %v3232_v9, %v873_v17  ;;  %v993_v47 = vsel %vm190_vm0, %v3920_v36, -inf  ;;  %v1017_v54 = vsel %vm190_vm0, %v3923_v39, -inf  ;;  %v755_v49 = vadd.f32 %v3230_v5, %v754_v42 }
 0x197   :  { %7467 = vst [vmem:[#allocation9_spill] sm:$0xff] %v3923_v39  ;;  %994 = vmax.xlane.f32.xlu1 %v993_v47  ;;  %1018 = vmax.xlane.f32.xlu0 %v1017_v54  ;;  %v3234_v53 = vpop.eup %3233  ;;  %v535_v25 = vand.u32 2147483647, %v3912_v60  ;;  %v537_v29 = vand.u32 2147483648, %v3912_v60 }
 0x198   :  { %v759_v4 = vsel %vm758_vm13, %v3230_v5, %v755_v49  ;;  %v875_v19 = vadd.f32 %v3232_v9, %v874_v40  ;;  %v3940_v56 = vpop.eup %3235  ;;  %v767_v20 = vmul.f32 %v3234_v53, %v3903_v21  ;;  %v3943_v44 = vpop.xlane.xlu1 %422  ;;  %v778_v5 = vor.u32 1.1754944e-38, %v777_v18 }
 0x199   :  { %v764_v2 = vsel %vm761_vm14, %v763_v58, %v759_v4  ;;  %v527_v43 = vmul.f32 %v3940_v56, %v3912_v60  ;;  %3237 = vrcp.f32 %v3943_v44  ;;  %v3956_v41 = vpop.xlane.xlu2 %443  ;;  %v3958_v23 = vpop.xlane.xlu0 %491  ;;  %vm772_vm5 = vweird.f32 %v3234_v53 }
 0x19a   :  { %v3961_v48 = vmul.f32 %v3742_v8, %v764_v2  ;;  %v879_v3 = vsel %vm878_vm3, %v3232_v9, %v875_v19  ;;  %v768_v13 = vsub.f32 1.0, %v767_v20  ;;  %3239 = vrcp.f32 %v3956_v41  ;;  %vm3989_vm9 = vmor %vm771_vm1, %vm772_vm5 }
 0x19b   :  { %v884_v26 = vsel %vm3934_vm15, %v883_v24, %v879_v3  ;;  %v528_v42 = vsub.f32 1.0, %v527_v43  ;;  %3241 = vrcp.f32 %v3958_v23  ;;  %vm3973_vm6 = vcmp.eq.f32.partialorder %v535_v25, 8.507059e+37 }
 0x19c   :  { %7472 = vst [vmem:[#allocation10_spill] sm:$0xff] %v3961_v48  ;;  %v1041_v17 = vsel %vm190_vm0, %v3961_v48, -inf  ;;  %v3971_v31 = vmul.f32 %v3744_v14, %v884_v26  ;;  %v769_v8 = vmul.f32 %v3234_v53, %v768_v13  ;;  %v550_v18 = vand.u32 2147483647, %v3943_v44 }
 0x19d   :  { %1042 = vmax.xlane.f32.xlu2 %v1041_v17  ;;  %v529_v40 = vmul.f32 %v3940_v56, %v528_v42  ;;  %vm532_vm7 = vweird.f32 %v3940_v56  ;;  %v552_v54 = vand.u32 2147483648, %v3943_v44  ;;  %v538_v49 = vor.u32 1.1754944e-38, %v537_v29 }
 0x19e   :  { %7473 = vst [vmem:[#allocation11_spill] sm:$0xff] %v3971_v31  ;;  %v1065_v47 = vsel %vm190_vm0, %v3971_v31, -inf  ;;  %v770_v14 = vadd.f32 %v3234_v53, %v769_v8  ;;  %vm546_vm8 = vweird.f32 %v3943_v44  ;;  %v895_v58 = vand.u32 2147483647, %v3958_v23  ;;  %vm4008_vm11 = vmor %vm531_vm2, %vm532_vm7 }
 0x19f   :  { %1066 = vmax.xlane.f32.xlu1 %v1065_v47  ;;  %v3985_v0 = vpop.eup %3237  ;;  %v530_v4 = vadd.f32 %v3940_v56, %v529_v40  ;;  %v553_v19 = vor.u32 1.1754944e-38, %v552_v54  ;;  %v897_v20 = vand.u32 2147483648, %v3958_v23  ;;  %vm651_vm10 = vweird.f32 %v3956_v41 }
 0x1a0   :  { %v3996_v2 = vpop.eup %3239  ;;  %v542_v25 = vmul.f32 %v3985_v0, %v3943_v44  ;;  %v4000_v43 = vpop.xlane.xlu1 %494  ;;  %v774_v21 = vsel %vm3989_vm9, %v3234_v53, %v770_v14  ;;  %vm547_vm12 = vweird.f32 %v3985_v0  ;;  %vm4013_vm13 = vcmp.eq.f32.partialorder %v550_v18, 8.507059e+37 }
 0x1a1   :  { %v655_v26 = vand.u32 2147483647, %v3956_v41  ;;  %v4018_v29 = vpop.eup %3241  ;;  %v647_v53 = vmul.f32 %v3996_v2, %v3956_v41  ;;  %3243 = vrcp.f32 %v4000_v43  ;;  %v4023_v60 = vpop.xlane.xlu2 %470  ;;  %v779_v17 = vsel %vm3948_vm4, %v778_v5, %v774_v21  ;;  %vm4064_vm3 = vmor %vm546_vm8, %vm547_vm12 }
 0x1a2   :  { %v4025_v42 = vpop.xlane.xlu0 %446  ;;  %v534_v8 = vsel %vm4008_vm11, %v3940_v56, %v530_v4  ;;  %vm891_vm14 = vweird.f32 %v3958_v23  ;;  %v543_v18 = vsub.f32 1.0, %v542_v25  ;;  %v887_v40 = vmul.f32 %v4018_v29, %v3958_v23 }
 0x1a3   :  { %3245 = vrcp.f32 %v4023_v60  ;;  %v4037_v47 = vmul.f32 %v3753_v30, %v779_v17  ;;  %v648_v54 = vsub.f32 1.0, %v647_v53  ;;  %v539_v55 = vsel %vm3973_vm6, %v538_v49, %v534_v8 }
 0x1a4   :  { %3247 = vrcp.f32 %v4025_v42  ;;  %vm4042_vm15 = vcmp.eq.f32.partialorder %v895_v58, 8.507059e+37  ;;  %v544_v56 = vmul.f32 %v3985_v0, %v543_v18  ;;  %v888_v14 = vsub.f32 1.0, %v887_v40 }
 0x1a5   :  { %7482 = vst [vmem:[#allocation12_spill] sm:$0xff] %v4037_v47  ;;  %v1044_v24 = vsel %vm190_vm0, %v4037_v47, -inf  ;;  %v4050_v4 = vmul.f32 %v3756_v32, %v539_v55  ;;  %v649_v30 = vmul.f32 %v3996_v2, %v648_v54  ;;  %vm892_vm1 = vweird.f32 %v4018_v29 }
 0x1a6   :  { %1045 = vmax.xlane.f32.xlu0 %v1044_v24  ;;  %v898_v9 = vor.u32 1.1754944e-38, %v897_v20  ;;  %vm652_vm2 = vweird.f32 %v3996_v2  ;;  %v889_v49 = vmul.f32 %v4018_v29, %v888_v14  ;;  %v545_v25 = vadd.f32 %v3985_v0, %v544_v56  ;;  %vm893_vm6 = vmor %vm891_vm14, %vm892_vm1 }
 0x1a7   :  { %7485 = vst [vmem:[#allocation13_spill] sm:$0xff] %v4050_v4  ;;  %v996_v58 = vsel %vm190_vm0, %v4050_v4, -inf  ;;  %v657_v21 = vand.u32 2147483648, %v3956_v41  ;;  %v3244_v3 = vpop.eup %3243  ;;  %v650_v20 = vadd.f32 %v3996_v2, %v649_v30  ;;  %vm4069_vm4 = vcmp.eq.f32.partialorder %v655_v26, 8.507059e+37  ;;  %vm4088_vm5 = vmor %vm651_vm10, %vm652_vm2 }
 0x1a8   :  { %997 = vmax.xlane.f32.xlu2 %v996_v58  ;;  %v910_v17 = vand.u32 2147483647, %v4000_v43  ;;  %v912_v8 = vand.u32 2147483648, %v4000_v43  ;;  %v902_v40 = vmul.f32 %v3244_v3, %v4000_v43  ;;  %v4078_v54 = vpop.xlane.xlu1 %449  ;;  %v549_v44 = vsel %vm4064_vm3, %v3985_v0, %v545_v25 }
 0x1a9   :  { %v4075_v18 = vpop.eup %3245  ;;  %v890_v55 = vadd.f32 %v4018_v29, %v889_v49  ;;  %v658_v56 = vor.u32 1.1754944e-38, %v657_v21  ;;  %3249 = vrcp.f32 %v4078_v54  ;;  %v4097_v30 = vpop.xlane.xlu2 %425  ;;  %v554_v0 = vsel %vm4013_vm13, %v553_v19, %v549_v44 }
 0x1aa   :  { %v4092_v14 = vpop.eup %3247  ;;  %v782_v24 = vmul.f32 %v4075_v18, %v4023_v60  ;;  %v654_v41 = vsel %vm4088_vm5, %v3996_v2, %v650_v20  ;;  %v903_v49 = vsub.f32 1.0, %v902_v40  ;;  %3251 = vrcp.f32 %v4097_v30 }
 0x1ab   :  { %v662_v58 = vmul.f32 %v4092_v14, %v4025_v42  ;;  %v4108_v25 = vmul.f32 %v3766_v50, %v554_v0  ;;  %v894_v19 = vsel %vm893_vm6, %v4018_v29, %v890_v55  ;;  %v659_v2 = vsel %vm4069_vm4, %v658_v56, %v654_v41 }
 0x1ac   :  { %v783_v13 = vsub.f32 1.0, %v782_v24  ;;  %vm907_vm7 = vweird.f32 %v3244_v3  ;;  %v904_v21 = vmul.f32 %v3244_v3, %v903_v49  ;;  %v899_v50 = vsel %vm4042_vm15, %v898_v9, %v894_v19 }
 0x1ad   :  { %7492 = vst [vmem:[#allocation14_spill] sm:$0xff] %v4108_v25  ;;  %v663_v32 = vsub.f32 1.0, %v662_v58  ;;  %v999_v20 = vsel %vm190_vm0, %v4108_v25, -inf  ;;  %v4123_v23 = vmul.f32 %v3764_v46, %v899_v50  ;;  %v4126_v29 = vmul.f32 %v3769_v57, %v659_v2 }
 0x1ae   :  { %v784_v40 = vmul.f32 %v4075_v18, %v783_v13  ;;  %1000 = vmax.xlane.f32.xlu0 %v999_v20  ;;  %vm906_vm8 = vweird.f32 %v4000_v43  ;;  %v905_v44 = vadd.f32 %v3244_v3, %v904_v21  ;;  %vm4130_vm9 = vcmp.eq.f32.partialorder %v910_v17, 8.507059e+37 }
 0x1af   :  { %7493 = vst [vmem:[#allocation15_spill] sm:$0xff] %v4123_v23  ;;  %v664_v53 = vmul.f32 %v4092_v14, %v663_v32  ;;  %v913_v5 = vor.u32 1.1754944e-38, %v912_v8  ;;  %v4134_v9 = vpop.eup %3249  ;;  %v1068_v26 = vsel %vm190_vm0, %v4123_v23, -inf  ;;  %v1020_v46 = vsel %vm190_vm0, %v4126_v29, -inf  ;;  %vm908_vm10 = vmor %vm906_vm8, %vm907_vm7 }
 0x1b0   :  { %7494 = vst [vmem:[#allocation16_spill] sm:$0xff] %v4126_v29  ;;  %v4140_v57 = vpop.xlane.xlu0 %473  ;;  %vm666_vm11 = vweird.f32 %v4025_v42  ;;  %vm667_vm12 = vweird.f32 %v4092_v14  ;;  %v4145_v43 = vpop.eup %3251  ;;  %v677_v17 = vmul.f32 %v4134_v9, %v4078_v54  ;;  %1069 = vmax.xlane.f32.xlu2 %v1068_v26  ;;  %1021 = vmax.xlane.f32.xlu1 %v1020_v46  ;;  %v909_v56 = vsel %vm908_vm10, %v3244_v3, %v905_v44 }
 0x1b1   :  { %3253 = vrcp.f32 %v4140_v57  ;;  %v4150_v8 = vpop.xlane.xlu1 %476  ;;  %v665_v24 = vadd.f32 %v4092_v14, %v664_v53  ;;  %v557_v0 = vmul.f32 %v4145_v43, %v4097_v30  ;;  %v4156_v41 = vpop.xlane.xlu2 %497  ;;  %v914_v49 = vsel %vm4130_vm9, %v913_v5, %v909_v56  ;;  %vm4160_vm13 = vmor %vm666_vm11, %vm667_vm12 }
 0x1b2   :  { %3255 = vrcp.f32 %v4150_v8  ;;  %v670_v13 = vand.u32 2147483647, %v4025_v42  ;;  %v678_v19 = vsub.f32 1.0, %v677_v17  ;;  %v4167_v3 = vmul.f32 %v3778_v38, %v914_v49 }
 0x1b3   :  { %3257 = vrcp.f32 %v4156_v41  ;;  %v669_v2 = vsel %vm4160_vm13, %v4092_v14, %v665_v24  ;;  %v558_v21 = vsub.f32 1.0, %v557_v0  ;;  %v672_v32 = vand.u32 2147483648, %v4025_v42 }
 0x1b4   :  { %7499 = vst [vmem:[#allocation17_spill] sm:$0xff] %v4167_v3  ;;  %v785_v20 = vadd.f32 %v4075_v18, %v784_v40  ;;  %vm786_vm14 = vweird.f32 %v4023_v60  ;;  %v679_v50 = vmul.f32 %v4134_v9, %v678_v19  ;;  %v1071_v53 = vsel %vm190_vm0, %v4167_v3, -inf }
 0x1b5   :  { %vm787_vm15 = vweird.f32 %v4075_v18  ;;  %v790_v38 = vand.u32 2147483647, %v4023_v60  ;;  %v559_v44 = vmul.f32 %v4145_v43, %v558_v21  ;;  %vm671_vm1 = vcmp.eq.f32.partialorder %v670_v13, 8.507059e+37 }
 0x1b6   :  { %1072 = vmax.xlane.f32.xlu0 %v1071_v53  ;;  %v673_v14 = vor.u32 1.1754944e-38, %v672_v32  ;;  %vm4181_vm2 = vmor %vm786_vm14, %vm787_vm15  ;;  %v792_v40 = vand.u32 2147483648, %v4023_v60  ;;  %v680_v46 = vadd.f32 %v4134_v9, %v679_v50  ;;  %vm681_vm4 = vweird.f32 %v4078_v54 }
 0x1b7   :  { %v4186_v55 = vpop.eup %3253  ;;  %v789_v5 = vsel %vm4181_vm2, %v4075_v18, %v785_v20  ;;  %vm4191_vm3 = vcmp.eq.f32.partialorder %v790_v38, 8.507059e+37  ;;  %vm682_vm5 = vweird.f32 %v4134_v9  ;;  %v685_v19 = vand.u32 2147483647, %v4078_v54 }
 0x1b8   :  { %v4197_v17 = vpop.eup %3255  ;;  %v797_v56 = vmul.f32 %v4186_v55, %v4140_v57  ;;  %v674_v60 = vsel %vm671_vm1, %v673_v14, %v669_v2  ;;  %v793_v24 = vor.u32 1.1754944e-38, %v792_v40  ;;  %v4201_v0 = vpop.xlane.xlu0 %428  ;;  %vm4232_vm6 = vmor %vm681_vm4, %vm682_vm5  ;;  %vm561_vm8 = vweird.f32 %v4097_v30 }
 0x1b9   :  { %v4204_v18 = vpop.eup %3257  ;;  %v812_v49 = vmul.f32 %v4197_v17, %v4150_v8  ;;  %v4209_v58 = vmul.f32 %v3780_v7, %v674_v60  ;;  %3259 = vrcp.f32 %v4201_v0  ;;  %v4212_v13 = vpop.xlane.xlu1 %431  ;;  %v684_v40 = vsel %vm4232_vm6, %v4134_v9, %v680_v46 }
 0x1ba   :  { %v798_v2 = vsub.f32 1.0, %v797_v56  ;;  %v917_v21 = vmul.f32 %v4204_v18, %v4156_v41  ;;  %v794_v32 = vsel %vm4191_vm3, %v793_v24, %v789_v5  ;;  %3261 = vrcp.f32 %v4212_v13  ;;  %v4220_v20 = vpop.xlane.xlu2 %452 }
 0x1bb   :  { %7504 = vst [vmem:[#allocation18_spill] sm:$0xff] %v4209_v58  ;;  %v813_v50 = vsub.f32 1.0, %v812_v49  ;;  %v1023_v7 = vsel %vm190_vm0, %v4209_v58, -inf  ;;  %v4225_v53 = vmul.f32 %v3783_v15, %v794_v32  ;;  %3263 = vrcp.f32 %v4220_v20 }
 0x1bc   :  { %v799_v14 = vmul.f32 %v4186_v55, %v798_v2  ;;  %v918_v42 = vsub.f32 1.0, %v917_v21  ;;  %1024 = vmax.xlane.f32.xlu2 %v1023_v7  ;;  %v687_v15 = vand.u32 2147483648, %v4078_v54  ;;  %vm686_vm7 = vcmp.eq.f32.partialorder %v685_v19, 8.507059e+37 }
 0x1bd   :  { %7505 = vst [vmem:[#allocation19_spill] sm:$0xff] %v4225_v53  ;;  %v814_v5 = vmul.f32 %v4197_v17, %v813_v50  ;;  %v1047_v26 = vsel %vm190_vm0, %v4225_v53, -inf  ;;  %v560_v56 = vadd.f32 %v4145_v43, %v559_v44  ;;  %vm562_vm9 = vweird.f32 %v4145_v43 }
 0x1be   :  { %1048 = vmax.xlane.f32.xlu1 %v1047_v26  ;;  %v688_v60 = vor.u32 1.1754944e-38, %v687_v15  ;;  %v565_v24 = vand.u32 2147483647, %v4097_v30  ;;  %v919_v54 = vmul.f32 %v4204_v18, %v918_v42  ;;  %vm4251_vm10 = vmor %vm561_vm8, %vm562_vm9  ;;  %v567_v46 = vand.u32 2147483648, %v4097_v30 }
 0x1bf   :  { %v4248_v49 = vpop.eup %3259  ;;  %v800_v44 = vadd.f32 %v4186_v55, %v799_v14  ;;  %vm801_vm11 = vweird.f32 %v4140_v57  ;;  %v564_v32 = vsel %vm4251_vm10, %v4145_v43, %v560_v56  ;;  %vm802_vm12 = vweird.f32 %v4186_v55 }
 0x1c0   :  { %v4258_v19 = vpop.eup %3261  ;;  %v572_v2 = vmul.f32 %v4248_v49, %v4201_v0  ;;  %v689_v21 = vsel %vm686_vm7, %v688_v60, %v684_v40  ;;  %v4265_v50 = vpop.xlane.xlu0 %500  ;;  %v568_v14 = vor.u32 1.1754944e-38, %v567_v46  ;;  %vm566_vm13 = vcmp.eq.f32.partialorder %v565_v24, 8.507059e+37  ;;  %vm4290_vm14 = vmor %vm801_vm11, %vm802_vm12 }
 0x1c1   :  { %v4268_v7 = vpop.eup %3263  ;;  %v587_v30 = vmul.f32 %v4258_v19, %v4212_v13  ;;  %v4273_v38 = vmul.f32 %v3793_v27, %v689_v21  ;;  %3265 = vrcp.f32 %v4265_v50  ;;  %v4276_v42 = vpop.xlane.xlu1 %503  ;;  %v804_v46 = vsel %vm4290_vm14, %v4186_v55, %v800_v44 }
 0x1c2   :  { %v573_v40 = vsub.f32 1.0, %v572_v2  ;;  %v692_v43 = vmul.f32 %v4268_v7, %v4220_v20  ;;  %3267 = vrcp.f32 %v4276_v42  ;;  %v4281_v15 = vpop.xlane.xlu2 %479  ;;  %v569_v27 = vsel %vm566_vm13, %v568_v14, %v564_v32 }
 0x1c3   :  { %7510 = vst [vmem:[#allocation20_spill] sm:$0xff] %v4273_v38  ;;  %v588_v26 = vsub.f32 1.0, %v587_v30  ;;  %v1026_v56 = vsel %vm190_vm0, %v4273_v38, -inf  ;;  %3269 = vrcp.f32 %v4281_v15  ;;  %v4295_v9 = vmul.f32 %v3795_v28, %v569_v27 }
 0x1c4   :  { %v693_v24 = vsub.f32 1.0, %v692_v43  ;;  %1027 = vmax.xlane.f32.xlu0 %v1026_v56  ;;  %v805_v2 = vand.u32 2147483647, %v4140_v57  ;;  %v574_v21 = vmul.f32 %v4248_v49, %v573_v40  ;;  %v807_v30 = vand.u32 2147483648, %v4140_v57 }
 0x1c5   :  { %7513 = vst [vmem:[#allocation21_spill] sm:$0xff] %v4295_v9  ;;  %v589_v32 = vmul.f32 %v4258_v19, %v588_v26  ;;  %v815_v14 = vadd.f32 %v4197_v17, %v814_v5  ;;  %v1002_v28 = vsel %vm190_vm0, %v4295_v9, -inf  ;;  %vm816_vm15 = vweird.f32 %v4150_v8 }
 0x1c6   :  { %v4306_v43 = vmul.f32 %v4268_v7, %v693_v24  ;;  %vm817_vm1 = vweird.f32 %v4197_v17  ;;  %1003 = vmax.xlane.f32.xlu1 %v1002_v28  ;;  %vm806_vm2 = vcmp.eq.f32.partialorder %v805_v2, 8.507059e+37  ;;  %v808_v44 = vor.u32 1.1754944e-38, %v807_v30 }
 0x1c7   :  { %v4312_v55 = vpop.eup %3265  ;;  %vm4314_vm3 = vmor %vm816_vm15, %vm817_vm1  ;;  %v820_v57 = vand.u32 2147483647, %v4150_v8  ;;  %v822_v5 = vand.u32 2147483648, %v4150_v8  ;;  %v920_v60 = vadd.f32 %v4204_v18, %v919_v54  ;;  %vm922_vm4 = vweird.f32 %v4204_v18 }
 0x1c8   :  { %v4320_v26 = vpop.eup %3267  ;;  %v932_v56 = vmul.f32 %v4312_v55, %v4265_v50  ;;  %v819_v27 = vsel %vm4314_vm3, %v4197_v17, %v815_v14  ;;  %v809_v30 = vsel %vm806_vm2, %v808_v44, %v804_v46  ;;  %vm921_vm5 = vweird.f32 %v4156_v41  ;;  %v4339_v17 = vpop.xlane.xlu0 %455 }
 0x1c9   :  { %v4329_v24 = vpop.eup %3269  ;;  %v947_v2 = vmul.f32 %v4320_v26, %v4276_v42  ;;  %v823_v8 = vor.u32 1.1754944e-38, %v822_v5  ;;  %v4337_v40 = vmul.f32 %v3806_v45, %v809_v30  ;;  %vm821_vm6 = vcmp.eq.f32.partialorder %v820_v57, 8.507059e+37  ;;  %vm4341_vm7 = vmor %vm921_vm5, %vm922_vm4  ;;  %v4347_v5 = vpop.xlane.xlu1 %458 }
 0x1ca   :  { %v933_v28 = vsub.f32 1.0, %v932_v56  ;;  %v827_v9 = vmul.f32 %v4329_v24, %v4281_v15  ;;  %v925_v46 = vand.u32 2147483647, %v4156_v41  ;;  %v927_v44 = vand.u32 2147483648, %v4156_v41 }
 0x1cb   :  { %7516 = vst [vmem:[#allocation22_spill] sm:$0xff] %v4337_v40  ;;  %v948_v54 = vsub.f32 1.0, %v947_v2  ;;  %v824_v14 = vsel %vm821_vm6, %v823_v8, %v819_v27  ;;  %v1050_v45 = vsel %vm190_vm0, %v4337_v40, -inf  ;;  %v924_v27 = vsel %vm4341_vm7, %v4204_v18, %v920_v60  ;;  %v4360_v2 = vpop.xlane.xlu2 %434 }
 0x1cc   :  { %v4350_v56 = vmul.f32 %v4312_v55, %v933_v28  ;;  %v4355_v57 = vmul.f32 %v3809_v52, %v824_v14  ;;  %v828_v41 = vsub.f32 1.0, %v827_v9  ;;  %1051 = vmax.xlane.f32.xlu2 %v1050_v45  ;;  %v928_v8 = vor.u32 1.1754944e-38, %v927_v44 }
 0x1cd   :  { %v4363_v30 = vmul.f32 %v4320_v26, %v948_v54  ;;  %3271 = vrcp.f32 %v4339_v17  ;;  %vm926_vm8 = vcmp.eq.f32.partialorder %v925_v46, 8.507059e+37  ;;  %v575_v52 = vadd.f32 %v4248_v49, %v574_v21 }
 0x1ce   :  { %7519 = vst [vmem:[#allocation23_spill] sm:$0xff] %v4355_v57  ;;  %v1053_v28 = vsel %vm190_vm0, %v4355_v57, -inf  ;;  %3273 = vrcp.f32 %v4347_v5  ;;  %v929_v18 = vsel %vm926_vm8, %v928_v8, %v924_v27  ;;  %vm576_vm9 = vweird.f32 %v4201_v0 }
 0x1cf   :  { %1054 = vmax.xlane.f32.xlu0 %v1053_v28  ;;  %3275 = vrcp.f32 %v4360_v2  ;;  %vm577_vm10 = vweird.f32 %v4248_v49  ;;  %v4374_v38 = vmul.f32 %v3804_v51, %v929_v18  ;;  %v580_v60 = vand.u32 2147483647, %v4201_v0 }
 0x1d0   :  { %vm4376_vm11 = vmor %vm576_vm9, %vm577_vm10  ;;  %v582_v54 = vand.u32 2147483648, %v4201_v0  ;;  %v590_v21 = vadd.f32 %v4258_v19, %v589_v32  ;;  %vm591_vm12 = vweird.f32 %v4212_v13  ;;  %vm592_vm13 = vweird.f32 %v4258_v19 }
 0x1d1   :  { %7520 = vst [vmem:[#allocation24_spill] sm:$0xff] %v4374_v38  ;;  %v579_v14 = vsel %vm4376_vm11, %v4248_v49, %v575_v52  ;;  %v595_v51 = vand.u32 2147483647, %v4212_v13  ;;  %v1074_v46 = vsel %vm190_vm0, %v4374_v38, -inf  ;;  %vm581_vm14 = vcmp.eq.f32.partialorder %v580_v60, 8.507059e+37  ;;  %vm4391_vm15 = vmor %vm591_vm12, %vm592_vm13  ;;  %v4435_v45 = vpop.xlane.xlu1 %485 }
 0x1d2   :  { %v583_v44 = vor.u32 1.1754944e-38, %v582_v54  ;;  %v597_v0 = vand.u32 2147483648, %v4212_v13  ;;  %1075 = vmax.xlane.f32.xlu1 %v1074_v46  ;;  %v594_v49 = vsel %vm4391_vm15, %v4258_v19, %v590_v21  ;;  %v695_v8 = vadd.f32 %v4268_v7, %v4306_v43  ;;  %v4422_v21 = vpop.xlane.xlu0 %482 }
 0x1d3   :  { %v4396_v32 = vpop.eup %3271  ;;  %vm4401_vm1 = vcmp.eq.f32.partialorder %v595_v51, 8.507059e+37  ;;  %vm696_vm2 = vweird.f32 %v4220_v20  ;;  %vm697_vm3 = vweird.f32 %v4268_v7  ;;  %v700_v43 = vand.u32 2147483647, %v4220_v20 }
 0x1d4   :  { %v4408_v28 = vpop.eup %3273  ;;  %v707_v13 = vmul.f32 %v4396_v32, %v4339_v17  ;;  %v584_v52 = vsel %vm581_vm14, %v583_v44, %v579_v14  ;;  %v598_v18 = vor.u32 1.1754944e-38, %v597_v0  ;;  %v702_v54 = vand.u32 2147483648, %v4220_v20  ;;  %vm4431_vm4 = vmor %vm696_vm2, %vm697_vm3 }
 0x1d5   :  { %v4413_v9 = vpop.eup %3275  ;;  %v722_v19 = vmul.f32 %v4408_v28, %v4347_v5  ;;  %v4418_v60 = vmul.f32 %v3818_v34, %v584_v52  ;;  %v829_v51 = vmul.f32 %v4329_v24, %v828_v41  ;;  %v699_v27 = vsel %vm4431_vm4, %v4268_v7, %v695_v8 }
 0x1d6   :  { %v708_v14 = vsub.f32 1.0, %v707_v13  ;;  %v602_v46 = vmul.f32 %v4413_v9, %v4360_v2  ;;  %v599_v44 = vsel %vm4401_vm1, %v598_v18, %v594_v49  ;;  %v4445_v49 = vpop.xlane.xlu2 %506  ;;  %vm701_vm5 = vcmp.eq.f32.partialorder %v700_v43, 8.507059e+37 }
 0x1d7   :  { %7527 = vst [vmem:[#allocation25_spill] sm:$0xff] %v4418_v60  ;;  %v723_v0 = vsub.f32 1.0, %v722_v19  ;;  %v1005_v52 = vsel %vm190_vm0, %v4418_v60, -inf  ;;  %v4440_v41 = vmul.f32 %v3824_v16, %v599_v44  ;;  %v703_v13 = vor.u32 1.1754944e-38, %v702_v54 }
 0x1d8   :  { %v603_v20 = vsub.f32 1.0, %v602_v46  ;;  %1006 = vmax.xlane.f32.xlu2 %v1005_v52  ;;  %3277 = vrcp.f32 %v4422_v21  ;;  %v709_v18 = vmul.f32 %v4396_v32, %v708_v14  ;;  %v935_v16 = vadd.f32 %v4312_v55, %v4350_v56 }
 0x1d9   :  { %7530 = vst [vmem:[#allocation26_spill] sm:$0xff] %v4440_v41  ;;  %v1008_v19 = vsel %vm190_vm0, %v4440_v41, -inf  ;;  %3279 = vrcp.f32 %v4435_v45  ;;  %v4455_v7 = vmul.f32 %v4408_v28, %v723_v0  ;;  %v704_v8 = vsel %vm701_vm5, %v703_v13, %v699_v27 }
 0x1da   :  { %1009 = vmax.xlane.f32.xlu0 %v1008_v19  ;;  %3281 = vrcp.f32 %v4445_v49  ;;  %vm936_vm6 = vweird.f32 %v4265_v50  ;;  %v4460_v43 = vmul.f32 %v3821_v10, %v704_v8  ;;  %vm937_vm7 = vweird.f32 %v4312_v55  ;;  %v4499_v8 = vpop.xlane.xlu0 %437 }
 0x1db   :  { %v940_v54 = vand.u32 2147483647, %v4265_v50  ;;  %v942_v14 = vand.u32 2147483648, %v4265_v50  ;;  %v4466_v56 = vmul.f32 %v4413_v9, %v603_v20  ;;  %vm4468_vm8 = vmor %vm936_vm6, %vm937_vm7  ;;  %v950_v44 = vadd.f32 %v4320_v26, %v4363_v30 }
 0x1dc   :  { %7531 = vst [vmem:[#allocation27_spill] sm:$0xff] %v4460_v43  ;;  %vm951_vm9 = vweird.f32 %v4276_v42  ;;  %vm952_vm10 = vweird.f32 %v4320_v26  ;;  %v1029_v10 = vsel %vm190_vm0, %v4460_v43, -inf  ;;  %v939_v50 = vsel %vm4468_vm8, %v4312_v55, %v935_v16 }
 0x1dd   :  { %v943_v34 = vor.u32 1.1754944e-38, %v942_v14  ;;  %vm4481_vm11 = vmor %vm951_vm9, %vm952_vm10  ;;  %v955_v52 = vand.u32 2147483647, %v4276_v42  ;;  %1030 = vmax.xlane.f32.xlu1 %v1029_v10  ;;  %vm941_vm12 = vcmp.eq.f32.partialorder %v940_v54, 8.507059e+37  ;;  %v957_v20 = vand.u32 2147483648, %v4276_v42 }
 0x1de   :  { %v4486_v27 = vpop.eup %3277  ;;  %v954_v30 = vsel %vm4481_vm11, %v4320_v26, %v950_v44  ;;  %v830_v13 = vadd.f32 %v4329_v24, %v829_v51  ;;  %vm831_vm13 = vweird.f32 %v4281_v15  ;;  %vm832_vm14 = vweird.f32 %v4329_v24 }
 0x1df   :  { %v4493_v55 = vpop.eup %3279  ;;  %v842_v19 = vmul.f32 %v4486_v27, %v4422_v21  ;;  %v944_v16 = vsel %vm941_vm12, %v943_v34, %v939_v50  ;;  %v958_v51 = vor.u32 1.1754944e-38, %v957_v20  ;;  %v835_v14 = vand.u32 2147483647, %v4281_v15  ;;  %vm4511_vm1 = vmor %vm831_vm13, %vm832_vm14 }
 0x1e0   :  { %v4501_v54 = vpop.eup %3281  ;;  %v857_v26 = vmul.f32 %v4493_v55, %v4435_v45  ;;  %v4506_v42 = vmul.f32 %v3833_v61, %v944_v16  ;;  %vm956_vm15 = vcmp.eq.f32.partialorder %v955_v52, 8.507059e+37  ;;  %v837_v50 = vand.u32 2147483648, %v4281_v15 }
 0x1e1   :  { %v843_v46 = vsub.f32 1.0, %v842_v19  ;;  %v962_v44 = vmul.f32 %v4501_v54, %v4445_v49  ;;  %v959_v61 = vsel %vm956_vm15, %v958_v51, %v954_v30  ;;  %v834_v20 = vsel %vm4511_vm1, %v4329_v24, %v830_v13  ;;  %v4521_v19 = vpop.xlane.xlu2 %461 }
 0x1e2   :  { %7536 = vst [vmem:[#allocation28_spill] sm:$0xff] %v4506_v42  ;;  %v858_v34 = vsub.f32 1.0, %v857_v26  ;;  %v1077_v0 = vsel %vm190_vm0, %v4506_v42, -inf  ;;  %v4524_v52 = vmul.f32 %v3839_v35, %v959_v61  ;;  %vm836_vm2 = vcmp.eq.f32.partialorder %v835_v14, 8.507059e+37  ;;  %v4569_v61 = vpop.xlane.xlu0 %509 }
 0x1e3   :  { %v963_v16 = vsub.f32 1.0, %v962_v44  ;;  %1078 = vmax.xlane.f32.xlu2 %v1077_v0  ;;  %v838_v43 = vor.u32 1.1754944e-38, %v837_v50  ;;  %v844_v15 = vmul.f32 %v4486_v27, %v843_v46  ;;  %3283 = vrcp.f32 %v4499_v8 }
 0x1e4   :  { %7539 = vst [vmem:[#allocation29_spill] sm:$0xff] %v4524_v52  ;;  %v4528_v26 = vmul.f32 %v4493_v55, %v858_v34  ;;  %v710_v30 = vadd.f32 %v4396_v32, %v709_v18  ;;  %v1080_v24 = vsel %vm190_vm0, %v4524_v52, -inf  ;;  %3285 = vrcp.f32 %v4521_v19 }
 0x1e5   :  { %v839_v13 = vsel %vm836_vm2, %v838_v43, %v834_v20  ;;  %vm711_vm3 = vweird.f32 %v4339_v17  ;;  %1081 = vmax.xlane.f32.xlu0 %v1080_v24  ;;  %vm712_vm4 = vweird.f32 %v4396_v32  ;;  %v715_v51 = vand.u32 2147483647, %v4339_v17 }
 0x1e6   :  { %v4537_v35 = vmul.f32 %v3836_v12, %v839_v13  ;;  %v717_v14 = vand.u32 2147483648, %v4339_v17  ;;  %v4543_v18 = vmul.f32 %v4501_v54, %v963_v16  ;;  %vm4545_vm5 = vmor %vm711_vm3, %vm712_vm4  ;;  %v725_v43 = vadd.f32 %v4408_v28, %v4455_v7 }
 0x1e7   :  { %vm726_vm6 = vweird.f32 %v4347_v5  ;;  %vm727_vm7 = vweird.f32 %v4408_v28  ;;  %v714_v17 = vsel %vm4545_vm5, %v4396_v32, %v710_v30  ;;  %v730_v50 = vand.u32 2147483647, %v4347_v5 }
 0x1e8   :  { %7540 = vst [vmem:[#allocation30_spill] sm:$0xff] %v4537_v35  ;;  %v1056_v12 = vsel %vm190_vm0, %v4537_v35, -inf  ;;  %v718_v44 = vor.u32 1.1754944e-38, %v717_v14  ;;  %vm4558_vm8 = vmor %vm726_vm6, %vm727_vm7  ;;  %vm716_vm9 = vcmp.eq.f32.partialorder %v715_v51, 8.507059e+37  ;;  %v732_v34 = vand.u32 2147483648, %v4347_v5 }
 0x1e9   :  { %1057 = vmax.xlane.f32.xlu1 %v1056_v12  ;;  %v729_v7 = vsel %vm4558_vm8, %v4408_v28, %v725_v43  ;;  %v605_v0 = vadd.f32 %v4413_v9, %v4466_v56  ;;  %v4571_v32 = vpop.eup %3283  ;;  %vm606_vm10 = vweird.f32 %v4360_v2  ;;  %vm607_vm11 = vweird.f32 %v4413_v9 }
 0x1ea   :  { %v719_v20 = vsel %vm716_vm9, %v718_v44, %v714_v17  ;;  %v610_v16 = vand.u32 2147483647, %v4360_v2  ;;  %v4576_v30 = vpop.eup %3285  ;;  %v617_v28 = vmul.f32 %v4571_v32, %v4499_v8  ;;  %v733_v56 = vor.u32 1.1754944e-38, %v732_v34  ;;  %vm4583_vm12 = vmor %vm606_vm10, %vm607_vm11 }
 0x1eb   :  { %v4581_v5 = vmul.f32 %v3848_v62, %v719_v20  ;;  %v612_v13 = vand.u32 2147483648, %v4360_v2  ;;  %v737_v51 = vmul.f32 %v4576_v30, %v4521_v19  ;;  %vm731_vm13 = vcmp.eq.f32.partialorder %v730_v50, 8.507059e+37 }
 0x1ec   :  { %v609_v14 = vsel %vm4583_vm12, %v4413_v9, %v605_v0  ;;  %3287 = vrcp.f32 %v4569_v61  ;;  %v618_v46 = vsub.f32 1.0, %v617_v28  ;;  %v734_v43 = vsel %vm731_vm13, %v733_v56, %v729_v7 }
 0x1ed   :  { %7545 = vst [vmem:[#allocation31_spill] sm:$0xff] %v4581_v5  ;;  %v1032_v62 = vsel %vm190_vm0, %v4581_v5, -inf  ;;  %v613_v12 = vor.u32 1.1754944e-38, %v612_v13  ;;  %v738_v17 = vsub.f32 1.0, %v737_v51  ;;  %v4597_v2 = vmul.f32 %v3854_v59, %v734_v43 }
 0x1ee   :  { %1033 = vmax.xlane.f32.xlu2 %v1032_v62  ;;  %vm611_vm14 = vcmp.eq.f32.partialorder %v610_v16, 8.507059e+37  ;;  %v845_v44 = vadd.f32 %v4486_v27, %v844_v15  ;;  %vm846_vm15 = vweird.f32 %v4422_v21  ;;  %vm847_vm1 = vweird.f32 %v4486_v27 }
 0x1ef   :  { %7548 = vst [vmem:[#allocation32_spill] sm:$0xff] %v4597_v2  ;;  %v614_v10 = vsel %vm611_vm14, %v613_v12, %v609_v14  ;;  %v850_v9 = vand.u32 2147483647, %v4422_v21  ;;  %v619_v50 = vmul.f32 %v4571_v32, %v618_v46  ;;  %v1035_v7 = vsel %vm190_vm0, %v4597_v2, -inf  ;;  %vm4609_vm2 = vmor %vm846_vm15, %vm847_vm1 }
 0x1f0   :  { %v4607_v34 = vmul.f32 %v3851_v63, %v614_v10  ;;  %v852_v15 = vand.u32 2147483648, %v4422_v21  ;;  %v739_v0 = vmul.f32 %v4576_v30, %v738_v17  ;;  %1036 = vmax.xlane.f32.xlu0 %v1035_v7  ;;  %v849_v20 = vsel %vm4609_vm2, %v4486_v27, %v845_v44 }
 0x1f1   :  { %v860_v16 = vadd.f32 %v4493_v55, %v4528_v26  ;;  %vm861_vm3 = vweird.f32 %v4435_v45  ;;  %vm862_vm4 = vweird.f32 %v4493_v55  ;;  %v865_v21 = vand.u32 2147483647, %v4435_v45 }
 0x1f2   :  { %7549 = vst [vmem:[#allocation33_spill] sm:$0xff] %v4607_v34  ;;  %v4621_v63 = vpop.eup %3287  ;;  %v1011_v28 = vsel %vm190_vm0, %v4607_v34, -inf  ;;  %v853_v56 = vor.u32 1.1754944e-38, %v852_v15  ;;  %vm851_vm5 = vcmp.eq.f32.partialorder %v850_v9, 8.507059e+37  ;;  %vm4629_vm6 = vmor %vm861_vm3, %vm862_vm4  ;;  %v867_v26 = vand.u32 2147483648, %v4435_v45 }
 0x1f3   :  { %1012 = vmax.xlane.f32.xlu1 %v1011_v28  ;;  %v977_v24 = vmul.f32 %v4621_v63, %v4569_v61  ;;  %v965_v13 = vadd.f32 %v4501_v54, %v4543_v18  ;;  %v864_v14 = vsel %vm4629_vm6, %v4493_v55, %v860_v16  ;;  %vm966_vm7 = vweird.f32 %v4445_v49 }
 0x1f4   :  { %v854_v51 = vsel %vm851_vm5, %v853_v56, %v849_v20  ;;  %vm967_vm8 = vweird.f32 %v4501_v54  ;;  %v868_v43 = vor.u32 1.1754944e-38, %v867_v26  ;;  %v970_v45 = vand.u32 2147483647, %v4445_v49 }
 0x1f5   :  { %v978_v46 = vsub.f32 1.0, %v977_v24  ;;  %v4642_v62 = vmul.f32 %v3863_v33, %v854_v51  ;;  %vm4644_vm9 = vmor %vm966_vm7, %vm967_vm8  ;;  %vm866_vm10 = vcmp.eq.f32.partialorder %v865_v21, 8.507059e+37  ;;  %v972_v18 = vand.u32 2147483648, %v4445_v49 }
 0x1f6   :  { %v969_v55 = vsel %vm4644_vm9, %v4501_v54, %v965_v13  ;;  %v620_v17 = vadd.f32 %v4571_v32, %v619_v50  ;;  %v869_v10 = vsel %vm866_vm10, %v868_v43, %v864_v14  ;;  %vm621_vm11 = vweird.f32 %v4499_v8 }
 0x1f7   :  { %7554 = vst [vmem:[#allocation34_spill] sm:$0xff] %v4642_v62  ;;  %v979_v44 = vmul.f32 %v4621_v63, %v978_v46  ;;  %v1059_v33 = vsel %vm190_vm0, %v4642_v62, -inf  ;;  %v4659_v9 = vmul.f32 %v3867_v1, %v869_v10  ;;  %v973_v7 = vor.u32 1.1754944e-38, %v972_v18 }
 0x1f8   :  { %1060 = vmax.xlane.f32.xlu2 %v1059_v33  ;;  %vm622_vm12 = vweird.f32 %v4571_v32  ;;  %v625_v54 = vand.u32 2147483647, %v4499_v8  ;;  %vm971_vm13 = vcmp.eq.f32.partialorder %v970_v45, 8.507059e+37  ;;  %v627_v50 = vand.u32 2147483648, %v4499_v8 }
 0x1f9   :  { %7557 = vst [vmem:[#allocation35_spill] sm:$0xff] %v4659_v9  ;;  %vm4663_vm14 = vmor %vm621_vm11, %vm622_vm12  ;;  %v740_v59 = vadd.f32 %v4576_v30, %v739_v0  ;;  %vm742_vm15 = vweird.f32 %v4576_v30  ;;  %v1062_v1 = vsel %vm190_vm0, %v4659_v9, -inf  ;;  %v974_v15 = vsel %vm971_vm13, %v973_v7, %v969_v55 }
 0x1fa   :  { %v624_v20 = vsel %vm4663_vm14, %v4571_v32, %v620_v17  ;;  %vm741_vm1 = vweird.f32 %v4521_v19  ;;  %1063 = vmax.xlane.f32.xlu0 %v1062_v1  ;;  %v4677_v16 = vmul.f32 %v3865_v37, %v974_v15  ;;  %vm626_vm2 = vcmp.eq.f32.partialorder %v625_v54, 8.507059e+37 }
 0x1fb   :  { %v628_v8 = vor.u32 1.1754944e-38, %v627_v50  ;;  %vm4679_vm3 = vmor %vm741_vm1, %vm742_vm15  ;;  %v745_v28 = vand.u32 2147483647, %v4521_v19  ;;  %v747_v32 = vand.u32 2147483648, %v4521_v19  ;;  %v980_v21 = vadd.f32 %v4621_v63, %v979_v44 }
 0x1fc   :  { %7560 = vst [vmem:[#allocation36_spill] sm:$0xff] %v4677_v16  ;;  %v744_v56 = vsel %vm4679_vm3, %v4576_v30, %v740_v59  ;;  %vm982_vm4 = vweird.f32 %v4621_v63  ;;  %v1083_v37 = vsel %vm190_vm0, %v4677_v16, -inf  ;;  %vm981_vm5 = vweird.f32 %v4569_v61 }
 0x1fd   :  { %v629_v24 = vsel %vm626_vm2, %v628_v8, %v624_v20  ;;  %v985_v27 = vand.u32 2147483647, %v4569_v61  ;;  %1084 = vmax.xlane.f32.xlu1 %v1083_v37  ;;  %v748_v13 = vor.u32 1.1754944e-38, %v747_v32  ;;  %vm983_vm6 = vmor %vm981_vm5, %vm982_vm4  ;;  %v987_v19 = vand.u32 2147483648, %v4569_v61 }
 0x1fe   :  { %v4695_v26 = vmul.f32 %v3876_v22, %v629_v24  ;;  %vm746_vm7 = vcmp.eq.f32.partialorder %v745_v28, 8.507059e+37  ;;  %v984_v30 = vsel %vm983_vm6, %v4621_v63, %v980_v21  ;;  %v991_v63 = vlaneseq }
 0x1ff   :  { %v749_v14 = vsel %vm746_vm7, %v748_v13, %v744_v56  ;;  %v988_v46 = vor.u32 1.1754944e-38, %v987_v19  ;;  %vm986_vm8 = vcmp.eq.f32.partialorder %v985_v27, 8.507059e+37 }
 0x200   :  { %7563 = vst [vmem:[#allocation37_spill] sm:$0xff] %v4695_v26  ;;  %v1014_v51 = vsel %vm190_vm0, %v4695_v26, -inf  ;;  %v4702_v43 = vmul.f32 %v3878_v11, %v749_v14  ;;  %v4711_v55 = vand.u32 127, %v991_v63 }
 0x201   :  { %1015 = vmax.xlane.f32.xlu2 %v1014_v51  ;;  %v989_v12 = vsel %vm986_vm8, %v988_v46, %v984_v30 }
 0x202   :  { %7564 = vst [vmem:[#allocation38_spill] sm:$0xff] %v4702_v43  ;;  %v1038_v22 = vsel %vm190_vm0, %v4702_v43, -inf  ;;  %v4707_v45 = vmul.f32 %v3884_v6, %v989_v12 }
 0x203   :  { %7566 = vst [vmem:[#allocation40_spill] sm:$0xff] %v4711_v55 }
 0x204   :  { %7565 = vst [vmem:[#allocation39_spill] sm:$0xff] %v4707_v45  ;;  %v1086_v61 = vsel %vm190_vm0, %v4707_v45, -inf }
 0x205   :  { %1039 = vmax.xlane.f32.xlu1 %v1038_v22 }
 0x209   :  { %1087 = vmax.xlane.f32.xlu2 %v1086_v61 }
 0x20a   :  { %v4713_v18 = vpop.xlane.xlu0 %1018  ;;  %v4715_v11 = vpop.xlane.xlu1 %994 }
 0x20b   :  { %7567 = vst [vmem:[#allocation41_spill] sm:$0xff] %v4713_v18  ;;  %vm1097_vm9 = vcmp.ge.f32.partialorder %v3923_v39, %v4713_v18  ;;  %vm1089_vm10 = vcmp.ge.f32.partialorder %v3920_v36, %v4715_v11 }
 0x20c   :  { %7568 = vst [vmem:[#allocation42_spill] sm:$0xff] %v4715_v11  ;;  %v1129_v6 = vsel %vm1097_vm9, %v4711_v55, 8  ;;  %v1121_v17 = vsel %vm1089_vm10, %v4711_v55, 8 }
 0x20d   :  { %v4724_v44 = vsel %vm190_vm0, %v1129_v6, 2147483647  ;;  %v4727_v33 = vsel %vm190_vm0, %v1121_v17, 2147483647 }
 0x20e   :  { %v1275_v10 = vshra.s32 %v4724_v44, 16  ;;  %v1155_v7 = vshra.s32 %v4727_v33, 16 }
 0x210   :  { %v4731_v54 = vpop.xlane.xlu2 %1042  ;;  %v4733_v49 = vcvt.s32.f32 %v1275_v10  ;;  %v4735_v50 = vcvt.s32.f32 %v1155_v7 }
 0x211   :  { %7569 = vst [vmem:[#allocation43_spill] sm:$0xff] %v4731_v54  ;;  %vm1105_vm11 = vcmp.ge.f32.partialorder %v3961_v48, %v4731_v54 }
 0x212   :  { %1278 = vmin.xlane.f32.xlu1 %v4733_v49  ;;  %1158 = vmin.xlane.f32.xlu0 %v4735_v50  ;;  %v4741_v59 = vpop.xlane.xlu1 %1066  ;;  %v1137_v1 = vsel %vm1105_vm11, %v4711_v55, 8 }
 0x213   :  { %7570 = vst [vmem:[#allocation44_spill] sm:$0xff] %v4741_v59  ;;  %vm1113_vm12 = vcmp.ge.f32.partialorder %v3971_v31, %v4741_v59  ;;  %v4747_v15 = vsel %vm190_vm0, %v1137_v1, 2147483647 }
 0x214   :  { %v1395_v20 = vshra.s32 %v4747_v15, 16  ;;  %v1145_v8 = vsel %vm1113_vm12, %v4711_v55, 8 }
 0x215   :  { %v4752_v0 = vsel %vm190_vm0, %v1145_v8, 2147483647 }
 0x216   :  { %v4754_v28 = vcvt.s32.f32 %v1395_v20  ;;  %v1515_v56 = vshra.s32 %v4752_v0, 16 }
 0x218   :  { %1398 = vmin.xlane.f32.xlu2 %v4754_v28  ;;  %v4758_v32 = vcvt.s32.f32 %v1515_v56 }
 0x219   :  { %v4760_v21 = vpop.xlane.xlu0 %1045 }
 0x21a   :  { %7571 = vst [vmem:[#allocation45_spill] sm:$0xff] %v4760_v21  ;;  %vm1106_vm13 = vcmp.ge.f32.partialorder %v4037_v47, %v4760_v21  ;;  %1518 = vmin.xlane.f32.xlu0 %v4758_v32 }
 0x21b   :  { %v4765_v37 = vpop.xlane.xlu2 %997  ;;  %v1138_v24 = vsel %vm1106_vm13, %v4711_v55, 8 }
 0x21c   :  { %7572 = vst [vmem:[#allocation46_spill] sm:$0xff] %v4765_v37  ;;  %vm1090_vm14 = vcmp.ge.f32.partialorder %v4050_v4, %v4765_v37  ;;  %v4771_v27 = vsel %vm190_vm0, %v1138_v24, 2147483647 }
 0x21d   :  { %v1410_v13 = vshra.s32 %v4771_v27, 16  ;;  %v1122_v19 = vsel %vm1090_vm14, %v4711_v55, 8 }
 0x21e   :  { %v4776_v30 = vsel %vm190_vm0, %v1122_v19, 2147483647 }
 0x21f   :  { %v4778_v51 = vcvt.s32.f32 %v1410_v13  ;;  %v1170_v14 = vshra.s32 %v4776_v30, 16 }
 0x221   :  { %1413 = vmin.xlane.f32.xlu1 %v4778_v51  ;;  %v4782_v46 = vpop.xlane.xlu0 %1000  ;;  %v4784_v12 = vcvt.s32.f32 %v1170_v14 }
 0x222   :  { %7573 = vst [vmem:[#allocation47_spill] sm:$0xff] %v4782_v46  ;;  %vm1091_vm15 = vcmp.ge.f32.partialorder %v4108_v25, %v4782_v46 }
 0x223   :  { %1173 = vmin.xlane.f32.xlu2 %v4784_v12  ;;  %v1123_v22 = vsel %vm1091_vm15, %v4711_v55, 8  ;;  %v4790_v61 = vpop.xlane.xlu2 %1069  ;;  %v4792_v63 = vpop.xlane.xlu1 %1021 }
 0x224   :  { %7574 = vst [vmem:[#allocation48_spill] sm:$0xff] %v4790_v61  ;;  %v4795_v6 = vsel %vm190_vm0, %v1123_v22, 2147483647  ;;  %vm1114_vm1 = vcmp.ge.f32.partialorder %v4123_v23, %v4790_v61  ;;  %vm1098_vm2 = vcmp.ge.f32.partialorder %v4126_v29, %v4792_v63 }
 0x225   :  { %7575 = vst [vmem:[#allocation49_spill] sm:$0xff] %v4792_v63  ;;  %v1185_v17 = vshra.s32 %v4795_v6, 16  ;;  %v1146_v10 = vsel %vm1114_vm1, %v4711_v55, 8  ;;  %v1130_v7 = vsel %vm1098_vm2, %v4711_v55, 8 }
 0x226   :  { %v4805_v1 = vsel %vm190_vm0, %v1146_v10, 2147483647  ;;  %v4808_v20 = vsel %vm190_vm0, %v1130_v7, 2147483647 }
 0x227   :  { %v4810_v8 = vcvt.s32.f32 %v1185_v17  ;;  %v1530_v56 = vshra.s32 %v4805_v1, 16  ;;  %v1290_v24 = vshra.s32 %v4808_v20, 16 }
 0x229   :  { %v4814_v13 = vpop.xlane.xlu0 %1072  ;;  %1188 = vmin.xlane.f32.xlu1 %v4810_v8  ;;  %v4819_v19 = vcvt.s32.f32 %v1530_v56  ;;  %v4821_v14 = vcvt.s32.f32 %v1290_v24 }
 0x22a   :  { %7576 = vst [vmem:[#allocation50_spill] sm:$0xff] %v4814_v13  ;;  %vm1115_vm3 = vcmp.ge.f32.partialorder %v4167_v3, %v4814_v13 }
 0x22b   :  { %v1147_v22 = vsel %vm1115_vm3, %v4711_v55, 8  ;;  %1533 = vmin.xlane.f32.xlu2 %v4819_v19  ;;  %1293 = vmin.xlane.f32.xlu0 %v4821_v14 }
 0x22c   :  { %v4827_v17 = vsel %vm190_vm0, %v1147_v22, 2147483647 }
 0x22d   :  { %v1545_v10 = vshra.s32 %v4827_v17, 16 }
 0x22f   :  { %v4830_v7 = vpop.xlane.xlu2 %1024  ;;  %v4832_v46 = vcvt.s32.f32 %v1545_v10 }
 0x230   :  { %7577 = vst [vmem:[#allocation51_spill] sm:$0xff] %v4830_v7  ;;  %vm1099_vm4 = vcmp.ge.f32.partialorder %v4209_v58, %v4830_v7 }
 0x231   :  { %v4836_v56 = vpop.xlane.xlu1 %1048  ;;  %v1131_v24 = vsel %vm1099_vm4, %v4711_v55, 8  ;;  %1548 = vmin.xlane.f32.xlu1 %v4832_v46 }
 0x232   :  { %7578 = vst [vmem:[#allocation52_spill] sm:$0xff] %v4836_v56  ;;  %vm1107_vm5 = vcmp.ge.f32.partialorder %v4225_v53, %v4836_v56  ;;  %v4843_v22 = vsel %vm190_vm0, %v1131_v24, 2147483647  ;;  %v7580_v24 = vld [vmem:[#allocation20_spill] sm:$0xff] }
 0x233   :  { %v1305_v13 = vshra.s32 %v4843_v22, 16  ;;  %v1139_v10 = vsel %vm1107_vm5, %v4711_v55, 8 }
 0x234   :  { %v4848_v61 = vsel %vm190_vm0, %v1139_v10, 2147483647  ;;  %v7582_v10 = vld [vmem:[#allocation21_spill] sm:$0xff] }
 0x235   :  { %v4850_v7 = vcvt.s32.f32 %v1305_v13  ;;  %v1425_v21 = vshra.s32 %v4848_v61, 16 }
 0x237   :  { %v4853_v63 = vpop.xlane.xlu0 %1027  ;;  %1308 = vmin.xlane.f32.xlu2 %v4850_v7  ;;  %v4856_v56 = vcvt.s32.f32 %v1425_v21 }
 0x238   :  { %7579 = vst [vmem:[#allocation53_spill] sm:$0xff] %v4853_v63  ;;  %vm1100_vm6 = vcmp.ge.f32.partialorder %v7580_v24, %v4853_v63 }
 0x239   :  { %1428 = vmin.xlane.f32.xlu0 %v4856_v56  ;;  %v1132_v37 = vsel %vm1100_vm6, %v4711_v55, 8  ;;  %v4862_v59 = vpop.xlane.xlu1 %1003 }
 0x23a   :  { %7581 = vst [vmem:[#allocation54_spill] sm:$0xff] %v4862_v59  ;;  %v4865_v13 = vsel %vm190_vm0, %v1132_v37, 2147483647  ;;  %vm1092_vm7 = vcmp.ge.f32.partialorder %v7582_v10, %v4862_v59 }
 0x23b   :  { %v1320_v54 = vshra.s32 %v4865_v13, 16  ;;  %v1124_v21 = vsel %vm1092_vm7, %v4711_v55, 8 }
 0x23c   :  { %v4874_v63 = vsel %vm190_vm0, %v1124_v21, 2147483647 }
 0x23d   :  { %v4871_v18 = vcvt.s32.f32 %v1320_v54  ;;  %v1200_v11 = vshra.s32 %v4874_v63, 16 }
 0x23f   :  { %1323 = vmin.xlane.f32.xlu1 %v4871_v18  ;;  %v4878_v24 = vpop.xlane.xlu2 %1051  ;;  %v4880_v37 = vcvt.s32.f32 %v1200_v11 }
 0x240   :  { %7583 = vst [vmem:[#allocation55_spill] sm:$0xff] %v4878_v24  ;;  %vm1108_vm8 = vcmp.ge.f32.partialorder %v4337_v40, %v4878_v24 }
 0x241   :  { %1203 = vmin.xlane.f32.xlu0 %v4880_v37  ;;  %v1140_v54 = vsel %vm1108_vm8, %v4711_v55, 8 }
 0x242   :  { %v4884_v59 = vpop.xlane.xlu0 %1054  ;;  %v4891_v21 = vsel %vm190_vm0, %v1140_v54, 2147483647 }
 0x243   :  { %7584 = vst [vmem:[#allocation56_spill] sm:$0xff] %v4884_v59  ;;  %vm1109_vm9 = vcmp.ge.f32.partialorder %v4355_v57, %v4884_v59  ;;  %v1440_v10 = vshra.s32 %v4891_v21, 16 }
 0x244   :  { %v1141_v11 = vsel %vm1109_vm9, %v4711_v55, 8 }
 0x245   :  { %v4896_v53 = vsel %vm190_vm0, %v1141_v11, 2147483647  ;;  %v4898_v24 = vpop.xlane.xlu1 %1075  ;;  %v4900_v40 = vcvt.s32.f32 %v1440_v10 }
 0x246   :  { %7585 = vst [vmem:[#allocation57_spill] sm:$0xff] %v4898_v24  ;;  %v1455_v58 = vshra.s32 %v4896_v53, 16  ;;  %vm1116_vm10 = vcmp.ge.f32.partialorder %v4374_v38, %v4898_v24 }
 0x247   :  { %1443 = vmin.xlane.f32.xlu2 %v4900_v40  ;;  %v1148_v59 = vsel %vm1116_vm10, %v4711_v55, 8 }
 0x248   :  { %v4906_v54 = vcvt.s32.f32 %v1455_v58  ;;  %v4910_v57 = vsel %vm190_vm0, %v1148_v59, 2147483647 }
 0x249   :  { %v1560_v11 = vshra.s32 %v4910_v57, 16 }
 0x24a   :  { %1458 = vmin.xlane.f32.xlu1 %v4906_v54 }
 0x24b   :  { %v4914_v10 = vpop.xlane.xlu2 %1006  ;;  %v4918_v3 = vcvt.s32.f32 %v1560_v11 }
 0x24c   :  { %7586 = vst [vmem:[#allocation58_spill] sm:$0xff] %v4914_v10  ;;  %vm1093_vm11 = vcmp.ge.f32.partialorder %v4418_v60, %v4914_v10 }
 0x24d   :  { %v4920_v24 = vpop.xlane.xlu0 %1009  ;;  %v1125_v58 = vsel %vm1093_vm11, %v4711_v55, 8  ;;  %1563 = vmin.xlane.f32.xlu0 %v4918_v3 }
 0x24e   :  { %7587 = vst [vmem:[#allocation59_spill] sm:$0xff] %v4920_v24  ;;  %vm1094_vm12 = vcmp.ge.f32.partialorder %v4440_v41, %v4920_v24  ;;  %v4927_v59 = vsel %vm190_vm0, %v1125_v58, 2147483647  ;;  %v7589_v24 = vld [vmem:[#allocation27_spill] sm:$0xff] }
 0x24f   :  { %v1215_v38 = vshra.s32 %v4927_v59, 16  ;;  %v1126_v23 = vsel %vm1094_vm12, %v4711_v55, 8 }
 0x250   :  { %v4932_v10 = vsel %vm190_vm0, %v1126_v23, 2147483647  ;;  %v4934_v11 = vpop.xlane.xlu1 %1030 }
 0x251   :  { %7588 = vst [vmem:[#allocation60_spill] sm:$0xff] %v4934_v11  ;;  %v4936_v60 = vcvt.s32.f32 %v1215_v38  ;;  %v1230_v29 = vshra.s32 %v4932_v10, 16  ;;  %vm1101_vm13 = vcmp.ge.f32.partialorder %v7589_v24, %v4934_v11 }
 0x252   :  { %v1133_v41 = vsel %vm1101_vm13, %v4711_v55, 8 }
 0x253   :  { %1218 = vmin.xlane.f32.xlu2 %v4936_v60  ;;  %v4942_v58 = vcvt.s32.f32 %v1230_v29  ;;  %v4946_v25 = vsel %vm190_vm0, %v1133_v41, 2147483647 }
 0x254   :  { %v1335_v23 = vshra.s32 %v4946_v25, 16 }
 0x255   :  { %1233 = vmin.xlane.f32.xlu1 %v4942_v58 }
 0x256   :  { %v4950_v38 = vpop.xlane.xlu2 %1078  ;;  %v4954_v4 = vcvt.s32.f32 %v1335_v23 }
 0x257   :  { %7590 = vst [vmem:[#allocation61_spill] sm:$0xff] %v4950_v38  ;;  %vm1117_vm14 = vcmp.ge.f32.partialorder %v4506_v42, %v4950_v38 }
 0x258   :  { %v1149_v11 = vsel %vm1117_vm14, %v4711_v55, 8  ;;  %v4957_v29 = vpop.xlane.xlu0 %1081  ;;  %1338 = vmin.xlane.f32.xlu0 %v4954_v4 }
 0x259   :  { %7591 = vst [vmem:[#allocation62_spill] sm:$0xff] %v4957_v29  ;;  %v4961_v41 = vsel %vm190_vm0, %v1149_v11, 2147483647  ;;  %vm1118_vm15 = vcmp.ge.f32.partialorder %v4524_v52, %v4957_v29 }
 0x25a   :  { %v1575_v24 = vshra.s32 %v4961_v41, 16  ;;  %v1150_v47 = vsel %vm1118_vm15, %v4711_v55, 8 }
 0x25b   :  { %v4972_v38 = vsel %vm190_vm0, %v1150_v47, 2147483647 }
 0x25c   :  { %v4967_v31 = vpop.xlane.xlu1 %1057  ;;  %v4969_v23 = vcvt.s32.f32 %v1575_v24  ;;  %v1590_v11 = vshra.s32 %v4972_v38, 16 }
 0x25d   :  { %7592 = vst [vmem:[#allocation63_spill] sm:$0xff] %v4967_v31  ;;  %vm1110_vm1 = vcmp.ge.f32.partialorder %v4537_v35, %v4967_v31 }
 0x25e   :  { %1578 = vmin.xlane.f32.xlu2 %v4969_v23  ;;  %v1142_v29 = vsel %vm1110_vm1, %v4711_v55, 8  ;;  %v4979_v52 = vcvt.s32.f32 %v1590_v11 }
 0x25f   :  { %v4982_v42 = vsel %vm190_vm0, %v1142_v29, 2147483647 }
 0x260   :  { %v1470_v24 = vshra.s32 %v4982_v42, 16  ;;  %1593 = vmin.xlane.f32.xlu1 %v4979_v52 }
 0x261   :  { %v4985_v48 = vpop.xlane.xlu2 %1033 }
 0x262   :  { %7593 = vst [vmem:[#allocation64_spill] sm:$0xff] %v4985_v48  ;;  %vm1102_vm2 = vcmp.ge.f32.partialorder %v4581_v5, %v4985_v48  ;;  %v4990_v47 = vcvt.s32.f32 %v1470_v24 }
 0x263   :  { %v1134_v31 = vsel %vm1102_vm2, %v4711_v55, 8  ;;  %v4993_v35 = vpop.xlane.xlu0 %1036 }
 0x264   :  { %7594 = vst [vmem:[#allocation65_spill] sm:$0xff] %v4990_v47  ;;  %1473 = vmin.xlane.f32.xlu0 %v4990_v47  ;;  %v4997_v29 = vsel %vm190_vm0, %v1134_v31, 2147483647  ;;  %vm1103_vm3 = vcmp.ge.f32.partialorder %v4597_v2, %v4993_v35 }
 0x265   :  { %7595 = vst [vmem:[#allocation66_spill] sm:$0xff] %v4993_v35  ;;  %v1350_v11 = vshra.s32 %v4997_v29, 16  ;;  %v1135_v48 = vsel %vm1103_vm3, %v4711_v55, 8 }
 0x266   :  { %7596 = vst [vmem:[#allocation67_spill] sm:$0xff] %v4997_v29  ;;  %v5002_v39 = vpop.xlane.xlu1 %1012  ;;  %v5010_v5 = vsel %vm190_vm0, %v1135_v48, 2147483647 }
 0x267   :  { %7597 = vst [vmem:[#allocation68_spill] sm:$0xff] %v5002_v39  ;;  %vm1095_vm4 = vcmp.ge.f32.partialorder %v4607_v34, %v5002_v39  ;;  %v5007_v24 = vcvt.s32.f32 %v1350_v11  ;;  %v1365_v31 = vshra.s32 %v5010_v5, 16 }
 0x268   :  { %v1127_v36 = vsel %vm1095_vm4, %v4711_v55, 8 }
 0x269   :  { %1353 = vmin.xlane.f32.xlu2 %v5007_v24  ;;  %v5016_v35 = vsel %vm190_vm0, %v1127_v36, 2147483647  ;;  %v5018_v2 = vcvt.s32.f32 %v1365_v31 }
 0x26a   :  { %v1245_v47 = vshra.s32 %v5016_v35, 16 }
 0x26b   :  { %v5021_v29 = vpop.xlane.xlu2 %1060  ;;  %1368 = vmin.xlane.f32.xlu1 %v5018_v2 }
 0x26c   :  { %7598 = vst [vmem:[#allocation69_spill] sm:$0xff] %v5021_v29  ;;  %vm1111_vm5 = vcmp.ge.f32.partialorder %v4642_v62, %v5021_v29  ;;  %v5026_v48 = vcvt.s32.f32 %v1245_v47 }
 0x26d   :  { %v1143_v11 = vsel %vm1111_vm5, %v4711_v55, 8  ;;  %v5029_v39 = vpop.xlane.xlu0 %1063 }
 0x26e   :  { %7599 = vst [vmem:[#allocation70_spill] sm:$0xff] %v5026_v48  ;;  %1248 = vmin.xlane.f32.xlu0 %v5026_v48  ;;  %v5033_v36 = vsel %vm190_vm0, %v1143_v11, 2147483647  ;;  %vm1112_vm6 = vcmp.ge.f32.partialorder %v4659_v9, %v5029_v39 }
 0x26f   :  { %7600 = vst [vmem:[#allocation71_spill] sm:$0xff] %v5029_v39  ;;  %v1485_v31 = vshra.s32 %v5033_v36, 16  ;;  %v1144_v29 = vsel %vm1112_vm6, %v4711_v55, 8 }
 0x270   :  { %7601 = vst [vmem:[#allocation72_spill] sm:$0xff] %v5033_v36  ;;  %v5039_v62 = vpop.xlane.xlu1 %1084  ;;  %v5044_v34 = vsel %vm190_vm0, %v1144_v29, 2147483647 }
 0x271   :  { %7602 = vst [vmem:[#allocation73_spill] sm:$0xff] %v5039_v62  ;;  %v5041_v47 = vcvt.s32.f32 %v1485_v31  ;;  %vm1119_vm7 = vcmp.ge.f32.partialorder %v4677_v16, %v5039_v62  ;;  %v1500_v11 = vshra.s32 %v5044_v34, 16 }
 0x272   :  { %v1151_v39 = vsel %vm1119_vm7, %v4711_v55, 8 }
 0x273   :  { %1488 = vmin.xlane.f32.xlu2 %v5041_v47  ;;  %v5053_v48 = vcvt.s32.f32 %v1500_v11  ;;  %v5056_v36 = vsel %vm190_vm0, %v1151_v39, 2147483647 }
 0x274   :  { %v5051_v9 = vpop.xlane.xlu2 %1015  ;;  %v1605_v29 = vshra.s32 %v5056_v36, 16 }
 0x275   :  { %7603 = vst [vmem:[#allocation74_spill] sm:$0xff] %v5051_v9  ;;  %vm1096_vm8 = vcmp.ge.f32.partialorder %v4695_v26, %v5051_v9  ;;  %1503 = vmin.xlane.f32.xlu1 %v5053_v48 }
 0x276   :  { %7604 = vst [vmem:[#allocation75_spill] sm:$0xff] %v5053_v48  ;;  %v1128_v31 = vsel %vm1096_vm8, %v4711_v55, 8  ;;  %v5063_v62 = vcvt.s32.f32 %v1605_v29 }
 0x277   :  { %v5066_v16 = vsel %vm190_vm0, %v1128_v31, 2147483647 }
 0x278   :  { %7605 = vst [vmem:[#allocation76_spill] sm:$0xff] %v5063_v62  ;;  %v1260_v11 = vshra.s32 %v5066_v16, 16  ;;  %1608 = vmin.xlane.f32.xlu0 %v5063_v62  ;;  %v5070_v39 = vpop.xlane.xlu1 %1039 }
 0x279   :  { %7606 = vst [vmem:[#allocation77_spill] sm:$0xff] %v5066_v16  ;;  %vm1104_vm9 = vcmp.ge.f32.partialorder %v4702_v43, %v5070_v39  ;;  %v1154_v43 = vand.u32 65535, %v4727_v33  ;;  %v1394_v33 = vand.u32 65535, %v4747_v15 }
 0x27a   :  { %7607 = vst [vmem:[#allocation78_spill] sm:$0xff] %v5070_v39  ;;  %v5074_v9 = vcvt.s32.f32 %v1260_v11  ;;  %v1136_v26 = vsel %vm1104_vm9, %v4711_v55, 8 }
 0x27b   :  { %v5081_v31 = vsel %vm190_vm0, %v1136_v26, 2147483647 }
 0x27c   :  { %7608 = vst [vmem:[#allocation79_spill] sm:$0xff] %v5074_v9  ;;  %1263 = vmin.xlane.f32.xlu2 %v5074_v9  ;;  %v5078_v29 = vpop.xlane.xlu2 %1087  ;;  %v1380_v62 = vshra.s32 %v5081_v31, 16  ;;  %v1274_v9 = vand.u32 65535, %v4724_v44  ;;  %v1514_v44 = vand.u32 65535, %v4752_v0 }
 0x27d   :  { %7609 = vst [vmem:[#allocation80_spill] sm:$0xff] %v5078_v29  ;;  %vm1120_vm10 = vcmp.ge.f32.partialorder %v4707_v45, %v5078_v29 }
 0x27e   :  { %v1152_v16 = vsel %vm1120_vm10, %v4711_v55, 8  ;;  %v5087_v48 = vcvt.s32.f32 %v1380_v62  ;;  %v1156_v62 = vcvt.s32.f32 %v1154_v43  ;;  %v1276_v55 = vcvt.s32.f32 %v1274_v9 }
 0x27f   :  { %v5090_v11 = vsel %vm190_vm0, %v1152_v16, 2147483647 }
 0x280   :  { %7610 = vst [vmem:[#allocation81_spill] sm:$0xff] %v5087_v48  ;;  %v1620_v39 = vshra.s32 %v5090_v11, 16  ;;  %1383 = vmin.xlane.f32.xlu0 %v5087_v48  ;;  %v1396_v48 = vcvt.s32.f32 %v1394_v33 }
 0x282   :  { %v5095_v26 = vcvt.s32.f32 %v1620_v39 }
 0x284   :  { %7611 = vst [vmem:[#allocation82_spill] sm:$0xff] %v5095_v26  ;;  %1623 = vmin.xlane.f32.xlu2 %v5095_v26 }
 0x285   :  { %v5099_v29 = vpop.xlane.xlu0 %1158  ;;  %v5101_v45 = vpop.xlane.xlu1 %1278 }
 0x286   :  { %7612 = vst [vmem:[#allocation83_spill] sm:$0xff] %v5099_v29  ;;  %vm1160_vm11 = vcmp.eq.f32.partialorder %v4735_v50, %v5099_v29  ;;  %vm1280_vm12 = vcmp.eq.f32.partialorder %v4733_v49, %v5101_v45  ;;  %v1516_v29 = vcvt.s32.f32 %v1514_v44  ;;  %v1169_v49 = vand.u32 65535, %v4776_v30 }
 0x287   :  { %v1161_v16 = vsel %vm1160_vm11, %v1156_v62, inf  ;;  %v1281_v39 = vsel %vm1280_vm12, %v1276_v55, inf  ;;  %v1409_v55 = vand.u32 65535, %v4771_v27  ;;  %v1184_v27 = vand.u32 65535, %v4795_v6 }
 0x288   :  { %1162 = vmin.xlane.f32.xlu1 %v1161_v16  ;;  %v1171_v62 = vcvt.s32.f32 %v1169_v49  ;;  %v1289_v30 = vand.u32 65535, %v4808_v20 }
 0x289   :  { %v1411_v0 = vcvt.s32.f32 %v1409_v55  ;;  %v1186_v33 = vcvt.s32.f32 %v1184_v27  ;;  %v1304_v55 = vand.u32 65535, %v4843_v22  ;;  %v1319_v22 = vand.u32 65535, %v4865_v13 }
 0x28a   :  { %v1439_v13 = vand.u32 65535, %v4891_v21 }
 0x28b   :  { %v5109_v26 = vpop.xlane.xlu2 %1398  ;;  %v1321_v27 = vcvt.s32.f32 %v1319_v22 }
 0x28c   :  { %1282 = vmin.xlane.f32.xlu2 %v1281_v39  ;;  %vm1400_vm13 = vcmp.eq.f32.partialorder %v4754_v28, %v5109_v26 }
 0x28d   :  { %v5113_v43 = vpop.xlane.xlu0 %1518  ;;  %v1401_v50 = vsel %vm1400_vm13, %v1396_v48, inf }
 0x28e   :  { %1402 = vmin.xlane.f32.xlu0 %v1401_v50  ;;  %vm1520_vm14 = vcmp.eq.f32.partialorder %v4758_v32, %v5113_v43 }
 0x28f   :  { %v1521_v9 = vsel %vm1520_vm14, %v1516_v29, inf  ;;  %v1529_v29 = vand.u32 65535, %v4805_v1  ;;  %v1544_v1 = vand.u32 65535, %v4827_v17 }
 0x290   :  { %1522 = vmin.xlane.f32.xlu1 %v1521_v9 }
 0x291   :  { %v1531_v6 = vcvt.s32.f32 %v1529_v29  ;;  %v1546_v9 = vcvt.s32.f32 %v1544_v1 }
 0x294   :  { %v5119_v15 = vpop.xlane.xlu1 %1413 }
 0x295   :  { %vm1415_vm15 = vcmp.eq.f32.partialorder %v4778_v51, %v5119_v15 }
 0x296   :  { %v5123_v28 = vpop.xlane.xlu2 %1173  ;;  %v1416_v48 = vsel %vm1415_vm15, %v1411_v0, inf }
 0x297   :  { %1417 = vmin.xlane.f32.xlu2 %v1416_v48  ;;  %vm1175_vm1 = vcmp.eq.f32.partialorder %v4784_v12, %v5123_v28  ;;  %v1291_v12 = vcvt.s32.f32 %v1289_v30 }
 0x298   :  { %v1176_v32 = vsel %vm1175_vm1, %v1171_v62, inf }
 0x299   :  { %1177 = vmin.xlane.f32.xlu0 %v1176_v32 }
 0x29c   :  { %v5130_v16 = vpop.xlane.xlu1 %1188 }
 0x29d   :  { %vm1190_vm2 = vcmp.eq.f32.partialorder %v4810_v8, %v5130_v16 }
 0x29e   :  { %v5134_v51 = vpop.xlane.xlu2 %1533  ;;  %v5136_v39 = vpop.xlane.xlu0 %1293  ;;  %v1191_v44 = vsel %vm1190_vm2, %v1186_v33, inf }
 0x29f   :  { %1192 = vmin.xlane.f32.xlu2 %v1191_v44  ;;  %vm1295_vm3 = vcmp.eq.f32.partialorder %v4821_v14, %v5136_v39  ;;  %vm1535_vm4 = vcmp.eq.f32.partialorder %v4819_v19, %v5134_v51  ;;  %v1424_v14 = vand.u32 65535, %v4848_v61  ;;  %v1306_v19 = vcvt.s32.f32 %v1304_v55 }
 0x2a0   :  { %v1296_v20 = vsel %vm1295_vm3, %v1291_v12, inf  ;;  %v1536_v50 = vsel %vm1535_vm4, %v1531_v6, inf  ;;  %v1199_v61 = vand.u32 65535, %v4874_v63  ;;  %v1454_v63 = vand.u32 65535, %v4896_v53 }
 0x2a1   :  { %1297 = vmin.xlane.f32.xlu1 %v1296_v20  ;;  %1537 = vmin.xlane.f32.xlu0 %v1536_v50  ;;  %v1426_v48 = vcvt.s32.f32 %v1424_v14  ;;  %v1441_v44 = vcvt.s32.f32 %v1439_v13  ;;  %v1559_v20 = vand.u32 65535, %v4910_v57  ;;  %v1229_v50 = vand.u32 65535, %v4932_v10 }
 0x2a2   :  { %v1201_v29 = vcvt.s32.f32 %v1199_v61  ;;  %v1456_v6 = vcvt.s32.f32 %v1454_v63  ;;  %v1334_v14 = vand.u32 65535, %v4946_v25  ;;  %v1244_v63 = vand.u32 65535, %v5016_v35  ;;  %v7616_v35 = vld [vmem:[#allocation70_spill] sm:$0xff] }
 0x2a3   :  { %v1561_v53 = vcvt.s32.f32 %v1559_v20 }
 0x2a4   :  { %v5143_v8 = vpop.xlane.xlu1 %1548 }
 0x2a5   :  { %vm1550_vm5 = vcmp.eq.f32.partialorder %v4832_v46, %v5143_v8 }
 0x2a6   :  { %v1551_v49 = vsel %vm1550_vm5, %v1546_v9, inf }
 0x2a7   :  { %1552 = vmin.xlane.f32.xlu2 %v1551_v49  ;;  %v1231_v49 = vcvt.s32.f32 %v1229_v50 }
 0x2aa   :  { %v5149_v0 = vpop.xlane.xlu2 %1308 }
 0x2ab   :  { %vm1310_vm6 = vcmp.eq.f32.partialorder %v4850_v7, %v5149_v0 }
 0x2ac   :  { %v5153_v17 = vpop.xlane.xlu0 %1428  ;;  %v1311_v62 = vsel %vm1310_vm6, %v1306_v19, inf  ;;  %v1574_v19 = vand.u32 65535, %v4961_v41 }
 0x2ad   :  { %vm1430_vm7 = vcmp.eq.f32.partialorder %v4856_v56, %v5153_v17  ;;  %1312 = vmin.xlane.f32.xlu0 %v1311_v62 }
 0x2ae   :  { %v1431_v46 = vsel %vm1430_vm7, %v1426_v48, inf  ;;  %v1589_v48 = vand.u32 65535, %v4972_v38  ;;  %v1576_v25 = vcvt.s32.f32 %v1574_v19 }
 0x2af   :  { %1432 = vmin.xlane.f32.xlu1 %v1431_v46 }
 0x2b0   :  { %v1591_v41 = vcvt.s32.f32 %v1589_v48  ;;  %v7619_v48 = vld [vmem:[#allocation76_spill] sm:$0xff] }
 0x2b2   :  { %v5159_v32 = vpop.xlane.xlu1 %1323 }
 0x2b3   :  { %vm1325_vm8 = vcmp.eq.f32.partialorder %v4871_v18, %v5159_v32 }
 0x2b4   :  { %v1326_v7 = vsel %vm1325_vm8, %v1321_v27, inf  ;;  %v5163_v30 = vpop.xlane.xlu0 %1203  ;;  %v7613_v27 = vld [vmem:[#allocation67_spill] sm:$0xff] }
 0x2b5   :  { %1327 = vmin.xlane.f32.xlu2 %v1326_v7  ;;  %vm1205_vm9 = vcmp.eq.f32.partialorder %v4880_v37, %v5163_v30  ;;  %v1349_v7 = vand.u32 65535, %v7613_v27 }
 0x2b6   :  { %v1206_v56 = vsel %vm1205_vm9, %v1201_v29, inf  ;;  %v7614_v29 = vld [vmem:[#allocation65_spill] sm:$0xff] }
 0x2b7   :  { %1207 = vmin.xlane.f32.xlu1 %v1206_v56  ;;  %v1351_v13 = vcvt.s32.f32 %v1349_v7  ;;  %v7621_v7 = vld [vmem:[#allocation81_spill] sm:$0xff] }
 0x2ba   :  { %v5169_v33 = vpop.xlane.xlu2 %1443 }
 0x2bb   :  { %vm1445_vm10 = vcmp.eq.f32.partialorder %v4900_v40, %v5169_v33  ;;  %v1214_v40 = vand.u32 65535, %v4927_v59  ;;  %v1336_v59 = vcvt.s32.f32 %v1334_v14  ;;  %v7617_v14 = vld [vmem:[#allocation75_spill] sm:$0xff] }
 0x2bc   :  { %v1446_v12 = vsel %vm1445_vm10, %v1441_v44, inf }
 0x2bd   :  { %v5173_v18 = vpop.xlane.xlu1 %1458  ;;  %1447 = vmin.xlane.f32.xlu0 %v1446_v12  ;;  %v1216_v57 = vcvt.s32.f32 %v1214_v40 }
 0x2be   :  { %vm1460_vm11 = vcmp.eq.f32.partialorder %v4906_v54, %v5173_v18 }
 0x2bf   :  { %v1461_v37 = vsel %vm1460_vm11, %v1456_v6, inf }
 0x2c0   :  { %1462 = vmin.xlane.f32.xlu2 %v1461_v37  ;;  %v5178_v21 = vpop.xlane.xlu0 %1563  ;;  %v7615_v37 = vld [vmem:[#allocation72_spill] sm:$0xff] }
 0x2c1   :  { %vm1565_vm12 = vcmp.eq.f32.partialorder %v4918_v3, %v5178_v21 }
 0x2c2   :  { %v1566_v1 = vsel %vm1565_vm12, %v1561_v53, inf  ;;  %v1484_v53 = vand.u32 65535, %v7615_v37  ;;  %v1405_v37 = vcvt.f32.s32 %v5109_v26 }
 0x2c3   :  { %1567 = vmin.xlane.f32.xlu1 %v1566_v1 }
 0x2c4   :  { %v1486_v50 = vcvt.s32.f32 %v1484_v53 }
 0x2c6   :  { %v5184_v9 = vpop.xlane.xlu2 %1218 }
 0x2c7   :  { %vm1220_vm13 = vcmp.eq.f32.partialorder %v4936_v60, %v5184_v9 }
 0x2c8   :  { %v5188_v54 = vpop.xlane.xlu1 %1233  ;;  %v1221_v55 = vsel %vm1220_vm13, %v1216_v57, inf }
 0x2c9   :  { %1222 = vmin.xlane.f32.xlu0 %v1221_v55  ;;  %vm1235_vm14 = vcmp.eq.f32.partialorder %v4942_v58, %v5188_v54  ;;  %v1469_v58 = vand.u32 65535, %v4982_v42  ;;  %v1364_v42 = vand.u32 65535, %v5010_v5  ;;  %v1246_v5 = vcvt.s32.f32 %v1244_v63  ;;  %v7623_v63 = vld [vmem:[#allocation82_spill] sm:$0xff] }
 0x2ca   :  { %v1236_v3 = vsel %vm1235_vm14, %v1231_v49, inf }
 0x2cb   :  { %1237 = vmin.xlane.f32.xlu2 %v1236_v3  ;;  %v5193_v10 = vpop.xlane.xlu0 %1338  ;;  %v1471_v38 = vcvt.s32.f32 %v1469_v58  ;;  %v1366_v12 = vcvt.s32.f32 %v1364_v42  ;;  %v7618_v3 = vld [vmem:[#allocation77_spill] sm:$0xff]  ;;  %v1379_v58 = vand.u32 65535, %v5081_v31 }
 0x2cc   :  { %vm1340_vm15 = vcmp.eq.f32.partialorder %v4954_v4, %v5193_v10 }
 0x2cd   :  { %v1341_v60 = vsel %vm1340_vm15, %v1336_v59, inf  ;;  %v1259_v59 = vand.u32 65535, %v7618_v3  ;;  %v1381_v27 = vcvt.s32.f32 %v1379_v58  ;;  %v1406_v3 = vshll.u32 %v1405_v37, 16 }
 0x2ce   :  { %1342 = vmin.xlane.f32.xlu1 %v1341_v60 }
 0x2d1   :  { %v5199_v62 = vpop.xlane.xlu2 %1578 }
 0x2d2   :  { %vm1580_vm1 = vcmp.eq.f32.partialorder %v4969_v23, %v5199_v62 }
 0x2d3   :  { %v1581_v46 = vsel %vm1580_vm1, %v1576_v25, inf  ;;  %v5204_v22 = vpop.xlane.xlu1 %1593  ;;  %v1261_v25 = vcvt.s32.f32 %v1259_v59 }
 0x2d4   :  { %1582 = vmin.xlane.f32.xlu0 %v1581_v46  ;;  %vm1595_vm2 = vcmp.eq.f32.partialorder %v4979_v52, %v5204_v22  ;;  %v7620_v46 = vld [vmem:[#allocation79_spill] sm:$0xff] }
 0x2d5   :  { %v1596_v4 = vsel %vm1595_vm2, %v1591_v41, inf }
 0x2d6   :  { %1597 = vmin.xlane.f32.xlu2 %v1596_v4  ;;  %v1619_v4 = vand.u32 65535, %v5090_v11 }
 0x2d7   :  { %v5208_v61 = vpop.xlane.xlu0 %1473 }
 0x2d8   :  { %vm1475_vm3 = vcmp.eq.f32.partialorder %v7614_v29, %v5208_v61  ;;  %v1621_v42 = vcvt.s32.f32 %v1619_v4  ;;  %v7631_v4 = vld [vmem:[#allocation10_spill] sm:$0xff] }
 0x2d9   :  { %v1476_v23 = vsel %vm1475_vm3, %v1471_v38, inf }
 0x2da   :  { %1477 = vmin.xlane.f32.xlu1 %v1476_v23 }
 0x2dc   :  { %v5214_v56 = vpop.xlane.xlu2 %1353 }
 0x2dd   :  { %vm1355_vm4 = vcmp.eq.f32.partialorder %v5007_v24, %v5214_v56  ;;  %v1499_v24 = vand.u32 65535, %v5044_v34 }
 0x2de   :  { %v1356_v52 = vsel %vm1355_vm4, %v1351_v13, inf  ;;  %v5219_v44 = vpop.xlane.xlu1 %1368  ;;  %v7622_v13 = vld [vmem:[#allocation83_spill] sm:$0xff] }
 0x2df   :  { %1357 = vmin.xlane.f32.xlu0 %v1356_v52  ;;  %vm1370_vm5 = vcmp.eq.f32.partialorder %v5018_v2, %v5219_v44  ;;  %v1604_v2 = vand.u32 65535, %v5056_v36  ;;  %v1501_v49 = vcvt.s32.f32 %v1499_v24  ;;  %v1165_v31 = vcvt.f32.s32 %v7622_v13 }
 0x2e0   :  { %v1371_v20 = vsel %vm1370_vm5, %v1366_v12, inf  ;;  %v1525_v24 = vcvt.f32.s32 %v5113_v43 }
 0x2e1   :  { %v5223_v6 = vpop.xlane.xlu0 %1248  ;;  %1372 = vmin.xlane.f32.xlu2 %v1371_v20  ;;  %v1606_v60 = vcvt.s32.f32 %v1604_v2  ;;  %v1166_v11 = vshll.u32 %v1165_v31, 16  ;;  %v1285_v20 = vcvt.f32.s32 %v5101_v45  ;;  %v7625_v2 = vld [vmem:[#allocation40_spill] sm:$0xff] }
 0x2e2   :  { %vm1250_vm6 = vcmp.eq.f32.partialorder %v7616_v35, %v5223_v6 }
 0x2e3   :  { %v1251_v40 = vsel %vm1250_vm6, %v1246_v5, inf }
 0x2e4   :  { %1252 = vmin.xlane.f32.xlu1 %v1251_v40  ;;  %v1286_v40 = vshll.u32 %v1285_v20, 16 }
 0x2e6   :  { %v5229_v1 = vpop.xlane.xlu2 %1488 }
 0x2e7   :  { %vm1490_vm7 = vcmp.eq.f32.partialorder %v5041_v47, %v5229_v1 }
 0x2e8   :  { %v1491_v57 = vsel %vm1490_vm7, %v1486_v50, inf  ;;  %v5234_v55 = vpop.xlane.xlu1 %1503 }
 0x2e9   :  { %1492 = vmin.xlane.f32.xlu0 %v1491_v57  ;;  %vm1505_vm8 = vcmp.eq.f32.partialorder %v7617_v14, %v5234_v55 }
 0x2ea   :  { %v1506_v19 = vsel %vm1505_vm8, %v1501_v49, inf  ;;  %v7626_v49 = vld [vmem:[#allocation8_spill] sm:$0xff] }
 0x2eb   :  { %v5239_v34 = vpop.xlane.xlu0 %1608  ;;  %1507 = vmin.xlane.f32.xlu2 %v1506_v19 }
 0x2ec   :  { %vm1610_vm9 = vcmp.eq.f32.partialorder %v7619_v48, %v5239_v34 }
 0x2ed   :  { %v1611_v47 = vsel %vm1610_vm9, %v1606_v60, inf  ;;  %v1526_v60 = vshll.u32 %v1525_v24, 16 }
 0x2ee   :  { %1612 = vmin.xlane.f32.xlu1 %v1611_v47  ;;  %v7629_v47 = vld [vmem:[#allocation9_spill] sm:$0xff] }
 0x2ef   :  { %v5243_v36 = vpop.xlane.xlu2 %1263 }
 0x2f0   :  { %vm1265_vm10 = vcmp.eq.f32.partialorder %v7620_v46, %v5243_v36 }
 0x2f1   :  { %v1266_v41 = vsel %vm1265_vm10, %v1261_v25, inf }
 0x2f2   :  { %1267 = vmin.xlane.f32.xlu0 %v1266_v41  ;;  %v1420_v41 = vcvt.f32.s32 %v5119_v15 }
 0x2f3   :  { %v5249_v38 = vpop.xlane.xlu0 %1383 }
 0x2f4   :  { %vm1385_vm11 = vcmp.eq.f32.partialorder %v7621_v7, %v5249_v38 }
 0x2f5   :  { %v1386_v29 = vsel %vm1385_vm11, %v1381_v27, inf }
 0x2f6   :  { %1387 = vmin.xlane.f32.xlu1 %v1386_v29  ;;  %v1180_v29 = vcvt.f32.s32 %v5123_v28  ;;  %v1195_v28 = vcvt.f32.s32 %v5130_v16 }
 0x2f7   :  { %v5253_v23 = vpop.xlane.xlu2 %1623 }
 0x2f8   :  { %vm1625_vm12 = vcmp.eq.f32.partialorder %v7623_v63, %v5253_v23  ;;  %v1421_v63 = vshll.u32 %v1420_v41, 16 }
 0x2f9   :  { %v1626_v52 = vsel %vm1625_vm12, %v1621_v42, inf  ;;  %v7632_v42 = vld [vmem:[#allocation11_spill] sm:$0xff] }
 0x2fa   :  { %1627 = vmin.xlane.f32.xlu0 %v1626_v52 }
 0x2fb   :  { %v1163_v12 = vpop.xlane.xlu1 %1162 }
 0x2fc   :  { %v1164_v5 = vcvt.f32.s32 %v1163_v12 }
 0x2fe   :  { %v5260_v53 = vadd.s32 %v1166_v11, %v1164_v5  ;;  %v1181_v11 = vshll.u32 %v1180_v29, 16 }
 0x2ff   :  { %v1283_v35 = vpop.xlane.xlu2 %1282 }
 0x300   :  { %7624 = vst [vmem:[#allocation67_spill] sm:$0xff] %v5260_v53  ;;  %v1284_v50 = vcvt.f32.s32 %v1283_v35  ;;  %vm1698_vm13 = vcmp.eq.s32.totalorder %v7625_v2, %v5260_v53  ;;  %v7635_v35 = vld [vmem:[#allocation12_spill] sm:$0xff] }
 0x301   :  { %v1403_v57 = vpop.xlane.xlu0 %1402  ;;  %v5266_v14 = vsel %vm1698_vm13, -inf, %v7626_v49 }
 0x302   :  { %v5268_v59 = vadd.s32 %v1286_v40, %v1284_v50  ;;  %v1404_v45 = vcvt.f32.s32 %v1403_v57  ;;  %v1762_v26 = vsel %vm190_vm0, %v5266_v14, -inf  ;;  %v1300_v50 = vcvt.f32.s32 %v5136_v39  ;;  %v7636_v57 = vld [vmem:[#allocation13_spill] sm:$0xff] }
 0x303   :  { %1763 = vmax.xlane.f32.xlu1 %v1762_v26  ;;  %v1523_v19 = vpop.xlane.xlu1 %1522  ;;  %v1196_v26 = vshll.u32 %v1195_v28, 16 }
 0x304   :  { %7627 = vst [vmem:[#allocation65_spill] sm:$0xff] %v5268_v59  ;;  %v5272_v48 = vadd.s32 %v1406_v3, %v1404_v45  ;;  %vm1706_vm14 = vcmp.eq.s32.totalorder %v7625_v2, %v5268_v59  ;;  %v1524_v43 = vcvt.f32.s32 %v1523_v19  ;;  %v1540_v3 = vcvt.f32.s32 %v5134_v51 }
 0x305   :  { %v5277_v25 = vsel %vm1706_vm14, -inf, %v7629_v47 }
 0x306   :  { %7628 = vst [vmem:[#allocation72_spill] sm:$0xff] %v5272_v48  ;;  %v1786_v58 = vsel %vm190_vm0, %v5277_v25, -inf  ;;  %v5281_v46 = vadd.s32 %v1526_v60, %v1524_v43  ;;  %vm1714_vm15 = vcmp.eq.s32.totalorder %v7625_v2, %v5272_v48  ;;  %v1301_v43 = vshll.u32 %v1300_v50, 16 }
 0x307   :  { %1787 = vmax.xlane.f32.xlu0 %v1786_v58  ;;  %v5287_v27 = vsel %vm1714_vm15, -inf, %v7631_v4  ;;  %v1541_v39 = vshll.u32 %v1540_v3, 16  ;;  %v1435_v3 = vcvt.f32.s32 %v5153_v17  ;;  %v1330_v17 = vcvt.f32.s32 %v5159_v32 }
 0x308   :  { %7630 = vst [vmem:[#allocation70_spill] sm:$0xff] %v5281_v46  ;;  %v1810_v7 = vsel %vm190_vm0, %v5287_v27, -inf  ;;  %vm1722_vm1 = vcmp.eq.s32.totalorder %v7625_v2, %v5281_v46 }
 0x309   :  { %1811 = vmax.xlane.f32.xlu2 %v1810_v7  ;;  %v5295_v13 = vsel %vm1722_vm1, -inf, %v7632_v42  ;;  %v1555_v7 = vcvt.f32.s32 %v5143_v8  ;;  %v7640_v42 = vld [vmem:[#allocation14_spill] sm:$0xff]  ;;  %v7641_v8 = vld [vmem:[#allocation16_spill] sm:$0xff] }
 0x30a   :  { %v1418_v31 = vpop.xlane.xlu2 %1417  ;;  %v1834_v15 = vsel %vm190_vm0, %v5295_v13, -inf }
 0x30b   :  { %v1419_v52 = vcvt.f32.s32 %v1418_v31  ;;  %1835 = vmax.xlane.f32.xlu1 %v1834_v15 }
 0x30c   :  { %v1178_v12 = vpop.xlane.xlu0 %1177 }
 0x30d   :  { %v5299_v20 = vadd.s32 %v1421_v63, %v1419_v52  ;;  %v1179_v5 = vcvt.f32.s32 %v1178_v12  ;;  %v1556_v12 = vshll.u32 %v1555_v7, 16  ;;  %v7647_v7 = vld [vmem:[#allocation18_spill] sm:$0xff] }
 0x30f   :  { %7633 = vst [vmem:[#allocation75_spill] sm:$0xff] %v5299_v20  ;;  %v5301_v37 = vadd.s32 %v1181_v11, %v1179_v5  ;;  %vm1715_vm2 = vcmp.eq.s32.totalorder %v7625_v2, %v5299_v20  ;;  %v7642_v5 = vld [vmem:[#allocation15_spill] sm:$0xff] }
 0x310   :  { %v5307_v40 = vsel %vm1715_vm2, -inf, %v7635_v35 }
 0x311   :  { %7634 = vst [vmem:[#allocation77_spill] sm:$0xff] %v5301_v37  ;;  %v1813_v24 = vsel %vm190_vm0, %v5307_v40, -inf  ;;  %vm1699_vm3 = vcmp.eq.s32.totalorder %v7625_v2, %v5301_v37 }
 0x312   :  { %1814 = vmax.xlane.f32.xlu0 %v1813_v24  ;;  %v5315_v49 = vsel %vm1699_vm3, -inf, %v7636_v57  ;;  %v1193_v45 = vpop.xlane.xlu2 %1192  ;;  %v1315_v24 = vcvt.f32.s32 %v5149_v0 }
 0x313   :  { %v1765_v16 = vsel %vm190_vm0, %v5315_v49, -inf  ;;  %v1194_v19 = vcvt.f32.s32 %v1193_v45 }
 0x314   :  { %1766 = vmax.xlane.f32.xlu2 %v1765_v16  ;;  %v1298_v60 = vpop.xlane.xlu1 %1297  ;;  %v1538_v58 = vpop.xlane.xlu0 %1537  ;;  %v1316_v16 = vshll.u32 %v1315_v24, 16 }
 0x315   :  { %v5320_v47 = vadd.s32 %v1196_v26, %v1194_v19  ;;  %v1299_v41 = vcvt.f32.s32 %v1298_v60  ;;  %v1539_v4 = vcvt.f32.s32 %v1538_v58  ;;  %v7644_v19 = vld [vmem:[#allocation17_spill] sm:$0xff]  ;;  %v1436_v58 = vshll.u32 %v1435_v3, 16 }
 0x317   :  { %7637 = vst [vmem:[#allocation76_spill] sm:$0xff] %v5320_v47  ;;  %v5323_v29 = vadd.s32 %v1301_v43, %v1299_v41  ;;  %vm1700_vm4 = vcmp.eq.s32.totalorder %v7625_v2, %v5320_v47  ;;  %v5327_v51 = vadd.s32 %v1541_v39, %v1539_v4 }
 0x318   :  { %v5330_v31 = vsel %vm1700_vm4, -inf, %v7640_v42 }
 0x319   :  { %7638 = vst [vmem:[#allocation79_spill] sm:$0xff] %v5323_v29  ;;  %v1768_v15 = vsel %vm190_vm0, %v5330_v31, -inf  ;;  %vm1707_vm5 = vcmp.eq.s32.totalorder %v7625_v2, %v5323_v29  ;;  %vm1723_vm6 = vcmp.eq.s32.totalorder %v7625_v2, %v5327_v51 }
 0x31a   :  { %7639 = vst [vmem:[#allocation81_spill] sm:$0xff] %v5327_v51  ;;  %1769 = vmax.xlane.f32.xlu0 %v1768_v15  ;;  %v1553_v63 = vpop.xlane.xlu2 %1552  ;;  %v5339_v52 = vsel %vm1707_vm5, -inf, %v7641_v8  ;;  %v5342_v28 = vsel %vm1723_vm6, -inf, %v7642_v5 }
 0x31b   :  { %v1554_v11 = vcvt.f32.s32 %v1553_v63  ;;  %v1789_v35 = vsel %vm190_vm0, %v5339_v52, -inf  ;;  %v1837_v50 = vsel %vm190_vm0, %v5342_v28, -inf  ;;  %v1210_v63 = vcvt.f32.s32 %v5163_v30 }
 0x31c   :  { %1790 = vmax.xlane.f32.xlu1 %v1789_v35  ;;  %1838 = vmax.xlane.f32.xlu2 %v1837_v50  ;;  %v1450_v30 = vcvt.f32.s32 %v5169_v33 }
 0x31d   :  { %v5349_v57 = vadd.s32 %v1556_v12, %v1554_v11  ;;  %v7648_v12 = vld [vmem:[#allocation19_spill] sm:$0xff]  ;;  %v1331_v11 = vshll.u32 %v1330_v17, 16  ;;  %v1211_v3 = vshll.u32 %v1210_v63, 16 }
 0x31f   :  { %7643 = vst [vmem:[#allocation83_spill] sm:$0xff] %v5349_v57  ;;  %vm1724_vm7 = vcmp.eq.s32.totalorder %v7625_v2, %v5349_v57 }
 0x320   :  { %v1313_v45 = vpop.xlane.xlu0 %1312  ;;  %v5355_v60 = vsel %vm1724_vm7, -inf, %v7644_v19 }
 0x321   :  { %v1314_v26 = vcvt.f32.s32 %v1313_v45  ;;  %v1840_v0 = vsel %vm190_vm0, %v5355_v60, -inf }
 0x322   :  { %v1433_v43 = vpop.xlane.xlu1 %1432  ;;  %1841 = vmax.xlane.f32.xlu0 %v1840_v0  ;;  %v1465_v0 = vcvt.f32.s32 %v5173_v18 }
 0x323   :  { %v5359_v41 = vadd.s32 %v1316_v16, %v1314_v26  ;;  %v1434_v39 = vcvt.f32.s32 %v1433_v43  ;;  %v7651_v26 = vld [vmem:[#allocation20_spill] sm:$0xff] }
 0x325   :  { %7645 = vst [vmem:[#allocation82_spill] sm:$0xff] %v5359_v41  ;;  %v5362_v4 = vadd.s32 %v1436_v58, %v1434_v39  ;;  %vm1708_vm8 = vcmp.eq.s32.totalorder %v7625_v2, %v5359_v41  ;;  %v7652_v39 = vld [vmem:[#allocation21_spill] sm:$0xff] }
 0x326   :  { %v5367_v42 = vsel %vm1708_vm8, -inf, %v7647_v7  ;;  %v1451_v7 = vshll.u32 %v1450_v30, 16 }
 0x327   :  { %7646 = vst [vmem:[#allocation40_spill] sm:$0xff] %v5362_v4  ;;  %v1792_v15 = vsel %vm190_vm0, %v5367_v42, -inf  ;;  %vm1716_vm9 = vcmp.eq.s32.totalorder %v7625_v2, %v5362_v4 }
 0x328   :  { %v1328_v8 = vpop.xlane.xlu2 %1327  ;;  %1793 = vmax.xlane.f32.xlu2 %v1792_v15  ;;  %v5375_v32 = vsel %vm1716_vm9, -inf, %v7648_v12  ;;  %v1570_v12 = vcvt.f32.s32 %v5178_v21 }
 0x329   :  { %v1329_v5 = vcvt.f32.s32 %v1328_v8  ;;  %v1816_v35 = vsel %vm190_vm0, %v5375_v32, -inf  ;;  %v1466_v8 = vshll.u32 %v1465_v0, 16 }
 0x32a   :  { %1817 = vmax.xlane.f32.xlu1 %v1816_v35  ;;  %v1208_v50 = vpop.xlane.xlu1 %1207 }
 0x32b   :  { %v5379_v24 = vadd.s32 %v1331_v11, %v1329_v5  ;;  %v1209_v45 = vcvt.f32.s32 %v1208_v50  ;;  %v7655_v50 = vld [vmem:[#allocation22_spill] sm:$0xff] }
 0x32d   :  { %7649 = vst [vmem:[#allocation8_spill] sm:$0xff] %v5379_v24  ;;  %vm1709_vm10 = vcmp.eq.s32.totalorder %v7625_v2, %v5379_v24  ;;  %v5384_v16 = vadd.s32 %v1211_v3, %v1209_v45  ;;  %v1571_v45 = vshll.u32 %v1570_v12, 16 }
 0x32e   :  { %v5387_v19 = vsel %vm1709_vm10, -inf, %v7651_v26  ;;  %v1225_v26 = vcvt.f32.s32 %v5184_v9 }
 0x32f   :  { %7650 = vst [vmem:[#allocation9_spill] sm:$0xff] %v5384_v16  ;;  %v1795_v43 = vsel %vm190_vm0, %v5387_v19, -inf  ;;  %vm1701_vm11 = vcmp.eq.s32.totalorder %v7625_v2, %v5384_v16 }
 0x330   :  { %1796 = vmax.xlane.f32.xlu0 %v1795_v43  ;;  %v1448_v58 = vpop.xlane.xlu0 %1447  ;;  %v5395_v17 = vsel %vm1701_vm11, -inf, %v7652_v39  ;;  %v7656_v43 = vld [vmem:[#allocation23_spill] sm:$0xff] }
 0x331   :  { %v1449_v33 = vcvt.f32.s32 %v1448_v58  ;;  %v1771_v15 = vsel %vm190_vm0, %v5395_v17, -inf }
 0x332   :  { %1772 = vmax.xlane.f32.xlu1 %v1771_v15  ;;  %v1226_v15 = vshll.u32 %v1225_v26, 16  ;;  %v7661_v26 = vld [vmem:[#allocation25_spill] sm:$0xff] }
 0x333   :  { %v1463_v63 = vpop.xlane.xlu2 %1462  ;;  %v5400_v11 = vadd.s32 %v1451_v7, %v1449_v33  ;;  %v1240_v7 = vcvt.f32.s32 %v5188_v54 }
 0x334   :  { %v1464_v18 = vcvt.f32.s32 %v1463_v63 }
 0x335   :  { %7653 = vst [vmem:[#allocation10_spill] sm:$0xff] %v5400_v11  ;;  %vm1717_vm12 = vcmp.eq.s32.totalorder %v7625_v2, %v5400_v11 }
 0x336   :  { %v5402_v5 = vadd.s32 %v1466_v8, %v1464_v18  ;;  %v1568_v35 = vpop.xlane.xlu1 %1567  ;;  %v5407_v3 = vsel %vm1717_vm12, -inf, %v7655_v50  ;;  %v7658_v8 = vld [vmem:[#allocation24_spill] sm:$0xff]  ;;  %v1345_v50 = vcvt.f32.s32 %v5193_v10 }
 0x337   :  { %v1569_v30 = vcvt.f32.s32 %v1568_v35  ;;  %v1819_v21 = vsel %vm190_vm0, %v5407_v3, -inf  ;;  %v1241_v35 = vshll.u32 %v1240_v7, 16  ;;  %v1585_v7 = vcvt.f32.s32 %v5199_v62 }
 0x338   :  { %7654 = vst [vmem:[#allocation11_spill] sm:$0xff] %v5402_v5  ;;  %vm1718_vm13 = vcmp.eq.s32.totalorder %v7625_v2, %v5402_v5  ;;  %1820 = vmax.xlane.f32.xlu2 %v1819_v21 }
 0x339   :  { %v5415_v0 = vsel %vm1718_vm13, -inf, %v7656_v43  ;;  %v5417_v58 = vadd.s32 %v1571_v45, %v1569_v30 }
 0x33a   :  { %v1822_v39 = vsel %vm190_vm0, %v5415_v0, -inf }
 0x33b   :  { %7657 = vst [vmem:[#allocation12_spill] sm:$0xff] %v5417_v58  ;;  %1823 = vmax.xlane.f32.xlu0 %v1822_v39  ;;  %vm1725_vm14 = vcmp.eq.s32.totalorder %v7625_v2, %v5417_v58  ;;  %v1346_v39 = vshll.u32 %v1345_v50, 16  ;;  %v1586_v50 = vshll.u32 %v1585_v7, 16  ;;  %v7694_v58 = vld [vmem:[#allocation49_spill] sm:$0xff] }
 0x33c   :  { %v1223_v33 = vpop.xlane.xlu0 %1222  ;;  %v5425_v9 = vsel %vm1725_vm14, -inf, %v7658_v8 }
 0x33d   :  { %v1224_v63 = vcvt.f32.s32 %v1223_v33  ;;  %v1843_v18 = vsel %vm190_vm0, %v5425_v9, -inf }
 0x33e   :  { %v1238_v12 = vpop.xlane.xlu2 %1237  ;;  %1844 = vmax.xlane.f32.xlu1 %v1843_v18  ;;  %v1600_v18 = vcvt.f32.s32 %v5204_v22 }
 0x33f   :  { %v5430_v45 = vadd.s32 %v1226_v15, %v1224_v63  ;;  %v1239_v54 = vcvt.f32.s32 %v1238_v12  ;;  %v7662_v15 = vld [vmem:[#allocation26_spill] sm:$0xff] }
 0x341   :  { %7659 = vst [vmem:[#allocation13_spill] sm:$0xff] %v5430_v45  ;;  %v5432_v30 = vadd.s32 %v1241_v35, %v1239_v54  ;;  %vm1702_vm15 = vcmp.eq.s32.totalorder %v7625_v2, %v5430_v45  ;;  %v1343_v21 = vpop.xlane.xlu1 %1342 }
 0x342   :  { %v5437_v43 = vsel %vm1702_vm15, -inf, %v7661_v26  ;;  %v1344_v33 = vcvt.f32.s32 %v1343_v21  ;;  %v7664_v21 = vld [vmem:[#allocation27_spill] sm:$0xff]  ;;  %vm1633_vm15 = vcmp.eq.s32.totalorder %v7625_v2, 0 }
 0x343   :  { %7660 = vst [vmem:[#allocation14_spill] sm:$0xff] %v5432_v30  ;;  %vm1703_vm1 = vcmp.eq.s32.totalorder %v7625_v2, %v5432_v30  ;;  %v1774_v10 = vsel %vm190_vm0, %v5437_v43, -inf  ;;  %v1643_v24 = vsel %vm1633_vm15, %v7694_v58, 0.0 }
 0x344   :  { %v5445_v63 = vsel %vm1703_vm1, -inf, %v7662_v15  ;;  %1775 = vmax.xlane.f32.xlu2 %v1774_v10  ;;  %v5447_v8 = vadd.s32 %v1346_v39, %v1344_v33  ;;  %v1480_v39 = vcvt.f32.s32 %v5208_v61  ;;  %v1601_v15 = vshll.u32 %v1600_v18, 16 }
 0x345   :  { %v1777_v12 = vsel %vm190_vm0, %v5445_v63, -inf  ;;  %vm2402_vm1 = vcmp.eq.s32.totalorder %v7625_v2, 1 }
 0x346   :  { %7663 = vst [vmem:[#allocation16_spill] sm:$0xff] %v5447_v8  ;;  %1778 = vmax.xlane.f32.xlu0 %v1777_v12  ;;  %vm1710_vm2 = vcmp.eq.s32.totalorder %v7625_v2, %v5447_v8  ;;  %v1481_v30 = vshll.u32 %v1480_v39, 16  ;;  %v1375_v39 = vcvt.f32.s32 %v5219_v44 }
 0x347   :  { %v1583_v35 = vpop.xlane.xlu0 %1582  ;;  %v5455_v62 = vsel %vm1710_vm2, -inf, %v7664_v21  ;;  %vm2467_vm2 = vcmask 15360  }
 0x348   :  { %v1584_v54 = vcvt.f32.s32 %v1583_v35  ;;  %v1798_v26 = vsel %vm190_vm0, %v5455_v62, -inf  ;;  %v7667_v35 = vld [vmem:[#allocation28_spill] sm:$0xff]  ;;  %v1376_v44 = vshll.u32 %v1375_v39, 16 }
 0x349   :  { %v1598_v10 = vpop.xlane.xlu2 %1597  ;;  %1799 = vmax.xlane.f32.xlu1 %v1798_v26  ;;  %v7675_v39 = vld [vmem:[#allocation32_spill] sm:$0xff] }
 0x34a   :  { %v5460_v33 = vadd.s32 %v1586_v50, %v1584_v54  ;;  %v1599_v22 = vcvt.f32.s32 %v1598_v10  ;;  %v1360_v50 = vcvt.f32.s32 %v5214_v56  ;;  %v7669_v54 = vld [vmem:[#allocation29_spill] sm:$0xff] }
 0x34c   :  { %7665 = vst [vmem:[#allocation15_spill] sm:$0xff] %v5460_v33  ;;  %vm1726_vm3 = vcmp.eq.s32.totalorder %v7625_v2, %v5460_v33  ;;  %v5464_v12 = vadd.s32 %v1601_v15, %v1599_v22  ;;  %v1361_v56 = vshll.u32 %v1360_v50, 16 }
 0x34d   :  { %v1478_v7 = vpop.xlane.xlu1 %1477  ;;  %v5467_v21 = vsel %vm1726_vm3, -inf, %v7667_v35 }
 0x34e   :  { %7666 = vst [vmem:[#allocation17_spill] sm:$0xff] %v5464_v12  ;;  %v1479_v45 = vcvt.f32.s32 %v1478_v7  ;;  %v1846_v61 = vsel %vm190_vm0, %v5467_v21, -inf  ;;  %vm1727_vm4 = vcmp.eq.s32.totalorder %v7625_v2, %v5464_v12  ;;  %v7670_v7 = vld [vmem:[#allocation30_spill] sm:$0xff] }
 0x34f   :  { %1847 = vmax.xlane.f32.xlu2 %v1846_v61  ;;  %v5477_v26 = vsel %vm1727_vm4, -inf, %v7669_v54 }
 0x350   :  { %v5474_v18 = vadd.s32 %v1481_v30, %v1479_v45  ;;  %v1849_v10 = vsel %vm190_vm0, %v5477_v26, -inf  ;;  %v1255_v45 = vcvt.f32.s32 %v5223_v6  ;;  %v1495_v6 = vcvt.f32.s32 %v5229_v1 }
 0x351   :  { %1850 = vmax.xlane.f32.xlu0 %v1849_v10 }
 0x352   :  { %7668 = vst [vmem:[#allocation18_spill] sm:$0xff] %v5474_v18  ;;  %v1358_v15 = vpop.xlane.xlu0 %1357  ;;  %vm1719_vm5 = vcmp.eq.s32.totalorder %v7625_v2, %v5474_v18  ;;  %v1256_v50 = vshll.u32 %v1255_v45, 16  ;;  %v7673_v18 = vld [vmem:[#allocation31_spill] sm:$0xff]  ;;  %v1496_v1 = vshll.u32 %v1495_v6, 16  ;;  %v1270_v6 = vcvt.f32.s32 %v5243_v36 }
 0x353   :  { %v1359_v22 = vcvt.f32.s32 %v1358_v15  ;;  %v5485_v35 = vsel %vm1719_vm5, -inf, %v7670_v7 }
 0x354   :  { %v1825_v30 = vsel %vm190_vm0, %v5485_v35, -inf  ;;  %v1373_v54 = vpop.xlane.xlu2 %1372 }
 0x355   :  { %v5490_v61 = vadd.s32 %v1361_v56, %v1359_v22  ;;  %1826 = vmax.xlane.f32.xlu1 %v1825_v30  ;;  %v1374_v12 = vcvt.f32.s32 %v1373_v54 }
 0x357   :  { %7671 = vst [vmem:[#allocation19_spill] sm:$0xff] %v5490_v61  ;;  %v1253_v10 = vpop.xlane.xlu1 %1252  ;;  %vm1711_vm6 = vcmp.eq.s32.totalorder %v7625_v2, %v5490_v61  ;;  %v5494_v15 = vadd.s32 %v1376_v44, %v1374_v12  ;;  %v1510_v12 = vcvt.f32.s32 %v5234_v55  ;;  %v7676_v44 = vld [vmem:[#allocation33_spill] sm:$0xff] }
 0x358   :  { %v1254_v7 = vcvt.f32.s32 %v1253_v10  ;;  %v5497_v33 = vsel %vm1711_vm6, -inf, %v7673_v18 }
 0x359   :  { %7672 = vst [vmem:[#allocation20_spill] sm:$0xff] %v5494_v15  ;;  %v1801_v56 = vsel %vm190_vm0, %v5497_v33, -inf  ;;  %vm1712_vm7 = vcmp.eq.s32.totalorder %v7625_v2, %v5494_v15 }
 0x35a   :  { %v5502_v22 = vadd.s32 %v1256_v50, %v1254_v7  ;;  %1802 = vmax.xlane.f32.xlu2 %v1801_v56  ;;  %v5507_v30 = vsel %vm1712_vm7, -inf, %v7675_v39  ;;  %v1615_v7 = vcvt.f32.s32 %v5239_v34  ;;  %v1511_v39 = vshll.u32 %v1510_v12, 16 }
 0x35b   :  { %v1804_v18 = vsel %vm190_vm0, %v5507_v30, -inf }
 0x35c   :  { %7674 = vst [vmem:[#allocation21_spill] sm:$0xff] %v5502_v22  ;;  %v1493_v45 = vpop.xlane.xlu0 %1492  ;;  %vm1704_vm8 = vcmp.eq.s32.totalorder %v7625_v2, %v5502_v22  ;;  %1805 = vmax.xlane.f32.xlu0 %v1804_v18  ;;  %v1616_v61 = vshll.u32 %v1615_v7, 16  ;;  %v1390_v7 = vcvt.f32.s32 %v5249_v38 }
 0x35d   :  { %v1494_v54 = vcvt.f32.s32 %v1493_v45  ;;  %v5515_v10 = vsel %vm1704_vm8, -inf, %v7676_v44  ;;  %v7679_v44 = vld [vmem:[#allocation34_spill] sm:$0xff] }
 0x35e   :  { %v1780_v50 = vsel %vm190_vm0, %v5515_v10, -inf  ;;  %v1508_v55 = vpop.xlane.xlu2 %1507  ;;  %v1391_v38 = vshll.u32 %v1390_v7, 16 }
 0x35f   :  { %v5520_v56 = vadd.s32 %v1496_v1, %v1494_v54  ;;  %1781 = vmax.xlane.f32.xlu1 %v1780_v50  ;;  %v1509_v15 = vcvt.f32.s32 %v1508_v55  ;;  %v7681_v54 = vld [vmem:[#allocation35_spill] sm:$0xff] }
 0x361   :  { %7677 = vst [vmem:[#allocation22_spill] sm:$0xff] %v5520_v56  ;;  %vm1720_vm9 = vcmp.eq.s32.totalorder %v7625_v2, %v5520_v56  ;;  %v5525_v45 = vadd.s32 %v1511_v39, %v1509_v15  ;;  %v1613_v18 = vpop.xlane.xlu1 %1612  ;;  %v1271_v15 = vshll.u32 %v1270_v6, 16  ;;  %v1630_v6 = vcvt.f32.s32 %v5253_v23  ;;  %v7692_v56 = vld [vmem:[#allocation44_spill] sm:$0xff] }
 0x362   :  { %v5528_v22 = vsel %vm1720_vm9, -inf, %v7679_v44  ;;  %v1614_v5 = vcvt.f32.s32 %v1613_v18  ;;  %v7683_v18 = vld [vmem:[#allocation36_spill] sm:$0xff] }
 0x363   :  { %7678 = vst [vmem:[#allocation23_spill] sm:$0xff] %v5525_v45  ;;  %v1828_v34 = vsel %vm190_vm0, %v5528_v22, -inf  ;;  %vm1721_vm10 = vcmp.eq.s32.totalorder %v7625_v2, %v5525_v45 }
 0x364   :  { %1829 = vmax.xlane.f32.xlu2 %v1828_v34  ;;  %v5534_v12 = vadd.s32 %v1616_v61, %v1614_v5  ;;  %v5537_v36 = vsel %vm1721_vm10, -inf, %v7681_v54 }
 0x365   :  { %v1268_v1 = vpop.xlane.xlu0 %1267  ;;  %v1831_v55 = vsel %vm190_vm0, %v5537_v36, -inf }
 0x366   :  { %7680 = vst [vmem:[#allocation24_spill] sm:$0xff] %v5534_v12  ;;  %v1269_v50 = vcvt.f32.s32 %v1268_v1  ;;  %1832 = vmax.xlane.f32.xlu0 %v1831_v55  ;;  %vm1728_vm11 = vcmp.eq.s32.totalorder %v7625_v2, %v5534_v12  ;;  %v7684_v1 = vld [vmem:[#allocation37_spill] sm:$0xff]  ;;  %v7693_v12 = vld [vmem:[#allocation46_spill] sm:$0xff] }
 0x367   :  { %v5547_v5 = vsel %vm1728_vm11, -inf, %v7683_v18  ;;  %v1631_v18 = vshll.u32 %v1630_v6, 16 }
 0x368   :  { %v5544_v39 = vadd.s32 %v1271_v15, %v1269_v50  ;;  %v1852_v61 = vsel %vm190_vm0, %v5547_v5, -inf }
 0x369   :  { %1853 = vmax.xlane.f32.xlu1 %v1852_v61  ;;  %v1388_v44 = vpop.xlane.xlu1 %1387  ;;  %v7687_v61 = vld [vmem:[#allocation38_spill] sm:$0xff] }
 0x36a   :  { %7682 = vst [vmem:[#allocation25_spill] sm:$0xff] %v5544_v39  ;;  %vm1705_vm12 = vcmp.eq.s32.totalorder %v7625_v2, %v5544_v39  ;;  %v1389_v34 = vcvt.f32.s32 %v1388_v44 }
 0x36b   :  { %v5555_v54 = vsel %vm1705_vm12, -inf, %v7684_v1 }
 0x36c   :  { %v1783_v15 = vsel %vm190_vm0, %v5555_v54, -inf  ;;  %v5559_v50 = vadd.s32 %v1391_v38, %v1389_v34  ;;  %v7688_v38 = vld [vmem:[#allocation39_spill] sm:$0xff] }
 0x36d   :  { %v1628_v55 = vpop.xlane.xlu0 %1627  ;;  %1784 = vmax.xlane.f32.xlu2 %v1783_v15 }
 0x36e   :  { %7685 = vst [vmem:[#allocation26_spill] sm:$0xff] %v5559_v50  ;;  %v1629_v45 = vcvt.f32.s32 %v1628_v55  ;;  %vm1713_vm13 = vcmp.eq.s32.totalorder %v7625_v2, %v5559_v50 }
 0x36f   :  { %v5566_v7 = vsel %vm1713_vm13, -inf, %v7687_v61 }
 0x370   :  { %v5563_v23 = vadd.s32 %v1631_v18, %v1629_v45  ;;  %v1807_v44 = vsel %vm190_vm0, %v5566_v7, -inf  ;;  %v7689_v45 = vld [vmem:[#allocation42_spill] sm:$0xff] }
 0x371   :  { %1808 = vmax.xlane.f32.xlu1 %v1807_v44  ;;  %v1634_v1 = vsel %vm1633_vm15, %v7689_v45, 0.0  ;;  %v7690_v44 = vld [vmem:[#allocation41_spill] sm:$0xff]  ;;  %v7691_v45 = vld [vmem:[#allocation43_spill] sm:$0xff] }
 0x372   :  { %7686 = vst [vmem:[#allocation27_spill] sm:$0xff] %v5563_v23  ;;  %vm1729_vm14 = vcmp.eq.s32.totalorder %v7625_v2, %v5563_v23 }
 0x373   :  { %v5574_v6 = vsel %vm1729_vm14, -inf, %v7688_v38  ;;  %v1642_v38 = vsel %vm1633_vm15, %v7690_v44, 0.0 }
 0x374   :  { %v1855_v34 = vsel %vm190_vm0, %v5574_v6, -inf }
 0x375   :  { %1856 = vmax.xlane.f32.xlu2 %v1855_v34 }
 0x376   :  { %v1764_v15 = vpop.xlane.xlu1 %1763 }
 0x377   :  { %vm1858_vm3 = vcmp.ge.f32.partialorder %v5266_v14, %v1764_v15  ;;  %v5585_v55 = vsel %vm2402_vm1, %v1764_v15, %v1634_v1  ;;  %v1650_v1 = vsel %vm1633_vm15, %v7691_v45, 0.0 }
 0x378   :  { %v2468_v18 = vsel %vm2467_vm2, %v5585_v55, 0.0  ;;  %v1890_v61 = vsel %vm1858_vm3, %v7625_v2, 8 }
 0x379   :  { %2469 = vadd.xlane.f32.xlu1 %v2468_v18  ;;  %v5603_v23 = vsel %vm190_vm0, %v1890_v61, 2147483647 }
 0x37a   :  { %v1788_v34 = vpop.xlane.xlu0 %1787  ;;  %v1924_v61 = vshra.s32 %v5603_v23, 16 }
 0x37b   :  { %vm1866_vm4 = vcmp.ge.f32.partialorder %v5277_v25, %v1788_v34  ;;  %v5596_v14 = vsel %vm2402_vm1, %v1788_v34, %v1642_v38 }
 0x37c   :  { %v1898_v15 = vsel %vm1866_vm4, %v7625_v2, 8  ;;  %v2492_v44 = vsel %vm2467_vm2, %v5596_v14, 0.0  ;;  %v1812_v39 = vpop.xlane.xlu2 %1811 }
 0x37d   :  { %v5608_v18 = vsel %vm190_vm0, %v1898_v15, 2147483647  ;;  %2493 = vadd.xlane.f32.xlu0 %v2492_v44  ;;  %v5612_v25 = vsel %vm2402_vm1, %v1812_v39, %v1650_v1  ;;  %vm1874_vm6 = vcmp.ge.f32.partialorder %v5287_v27, %v1812_v39  ;;  %v5624_v1 = vcvt.s32.f32 %v1924_v61 }
 0x37e   :  { %v1836_v38 = vpop.xlane.xlu1 %1835  ;;  %v2516_v34 = vsel %vm2467_vm2, %v5612_v25, 0.0  ;;  %v2044_v45 = vshra.s32 %v5608_v18, 16  ;;  %v1635_v27 = vsel %vm1633_vm15, %v7693_v12, 0.0 }
 0x37f   :  { %vm1882_vm5 = vcmp.ge.f32.partialorder %v5295_v13, %v1836_v38  ;;  %2517 = vadd.xlane.f32.xlu2 %v2516_v34  ;;  %v1658_v13 = vsel %vm1633_vm15, %v7692_v56, 0.0  ;;  %v1906_v34 = vsel %vm1874_vm6, %v7625_v2, 8 }
 0x380   :  { %v5619_v50 = vcvt.s32.f32 %v2044_v45  ;;  %v1914_v15 = vsel %vm1882_vm5, %v7625_v2, 8  ;;  %v5636_v45 = vsel %vm2402_vm1, %v1836_v38, %v1658_v13  ;;  %v5647_v56 = vsel %vm190_vm0, %v1906_v34, 2147483647 }
 0x381   :  { %v5627_v44 = vsel %vm190_vm0, %v1914_v15, 2147483647  ;;  %v2540_v38 = vsel %vm2467_vm2, %v5636_v45, 0.0  ;;  %v2164_v13 = vshra.s32 %v5647_v56, 16 }
 0x382   :  { %2047 = vmin.xlane.f32.xlu1 %v5619_v50  ;;  %v2284_v15 = vshra.s32 %v5627_v44, 16 }
 0x384   :  { %v5654_v12 = vcvt.s32.f32 %v2284_v15 }
 0x385   :  { %1927 = vmin.xlane.f32.xlu0 %v5624_v1  ;;  %v1815_v39 = vpop.xlane.xlu0 %1814 }
 0x386   :  { %vm1875_vm8 = vcmp.ge.f32.partialorder %v5307_v40, %v1815_v39 }
 0x387   :  { %v1767_v61 = vpop.xlane.xlu2 %1766 }
 0x388   :  { %v5644_v8 = vsel %vm2402_vm1, %v1767_v61, %v1635_v27  ;;  %vm1859_vm7 = vcmp.ge.f32.partialorder %v5315_v49, %v1767_v61  ;;  %v1907_v27 = vsel %vm1875_vm8, %v7625_v2, 8 }
 0x389   :  { %v2471_v11 = vsel %vm2467_vm2, %v5644_v8, 0.0  ;;  %v1891_v34 = vsel %vm1859_vm7, %v7625_v2, 8  ;;  %v5675_v15 = vsel %vm190_vm0, %v1907_v27, 2147483647 }
 0x38a   :  { %2472 = vadd.xlane.f32.xlu2 %v2471_v11  ;;  %2541 = vadd.xlane.f32.xlu1 %v2540_v38  ;;  %v5664_v38 = vcvt.s32.f32 %v2164_v13  ;;  %v5667_v49 = vsel %vm190_vm0, %v1891_v34, 2147483647  ;;  %v2179_v34 = vshra.s32 %v5675_v15, 16 }
 0x38d   :  { %2287 = vmin.xlane.f32.xlu0 %v5654_v12  ;;  %v1770_v61 = vpop.xlane.xlu0 %1769 }
 0x38e   :  { %vm1860_vm10 = vcmp.ge.f32.partialorder %v5330_v31, %v1770_v61  ;;  %v7696_v31 = vld [vmem:[#allocation45_spill] sm:$0xff] }
 0x38f   :  { %v1791_v11 = vpop.xlane.xlu1 %1790  ;;  %v1839_v41 = vpop.xlane.xlu2 %1838  ;;  %v1651_v4 = vsel %vm1633_vm15, %v7696_v31, 0.0 }
 0x390   :  { %vm1867_vm9 = vcmp.ge.f32.partialorder %v5339_v52, %v1791_v11  ;;  %v5672_v40 = vsel %vm2402_vm1, %v1791_v11, %v1643_v24  ;;  %v1939_v24 = vshra.s32 %v5667_v49, 16  ;;  %v1892_v11 = vsel %vm1860_vm10, %v7625_v2, 8 }
 0x391   :  { %v1899_v16 = vsel %vm1867_vm9, %v7625_v2, 8  ;;  %v2495_v58 = vsel %vm2467_vm2, %v5672_v40, 0.0  ;;  %vm1883_vm11 = vcmp.ge.f32.partialorder %v5342_v28, %v1839_v41 }
 0x392   :  { %2167 = vmin.xlane.f32.xlu2 %v5664_v38  ;;  %v5682_v13 = vsel %vm190_vm0, %v1899_v16, 2147483647  ;;  %2496 = vadd.xlane.f32.xlu1 %v2495_v58  ;;  %v5692_v57 = vcvt.s32.f32 %v1939_v24  ;;  %v5694_v16 = vcvt.s32.f32 %v2179_v34  ;;  %v5697_v58 = vsel %vm190_vm0, %v1892_v11, 2147483647  ;;  %v7698_v24 = vld [vmem:[#allocation48_spill] sm:$0xff] }
 0x393   :  { %v2059_v52 = vshra.s32 %v5682_v13, 16  ;;  %v1659_v34 = vsel %vm1633_vm15, %v7698_v24, 0.0  ;;  %v1954_v47 = vshra.s32 %v5697_v58, 16  ;;  %v1915_v37 = vsel %vm1883_vm11, %v7625_v2, 8 }
 0x394   :  { %7695 = vst [vmem:[#allocation28_spill] sm:$0xff] %v5694_v16  ;;  %v5714_v11 = vsel %vm2402_vm1, %v1839_v41, %v1659_v34 }
 0x395   :  { %v5688_v27 = vcvt.s32.f32 %v2059_v52  ;;  %v5706_v52 = vsel %vm2402_vm1, %v1815_v39, %v1651_v4  ;;  %7699 = vst [vmem:[#allocation30_spill] sm:$0xff] %v5714_v11  ;;  %v2543_v20 = vsel %vm2467_vm2, %v5714_v11, 0.0  ;;  %v5720_v4 = vcvt.s32.f32 %v1954_v47  ;;  %v7701_v39 = vld [vmem:[#allocation47_spill] sm:$0xff]  ;;  %v7704_v47 = vld [vmem:[#allocation52_spill] sm:$0xff]  ;;  %v1842_v41 = vpop.xlane.xlu0 %1841 }
 0x396   :  { %7697 = vst [vmem:[#allocation29_spill] sm:$0xff] %v5706_v52  ;;  %v2519_v51 = vsel %vm2467_vm2, %v5706_v52, 0.0  ;;  %v1636_v24 = vsel %vm1633_vm15, %v7701_v39, 0.0  ;;  %vm1884_vm13 = vcmp.ge.f32.partialorder %v5355_v60, %v1842_v41 }
 0x397   :  { %2062 = vmin.xlane.f32.xlu0 %v5688_v27  ;;  %7700 = vst [vmem:[#allocation31_spill] sm:$0xff] %v5720_v4  ;;  %v5729_v34 = vsel %vm2402_vm1, %v1770_v61, %v1636_v24  ;;  %v5749_v24 = vsel %vm190_vm0, %v1915_v37, 2147483647 }
 0x398   :  { %7702 = vst [vmem:[#allocation32_spill] sm:$0xff] %v5729_v34  ;;  %v2474_v61 = vsel %vm2467_vm2, %v5729_v34, 0.0 }
 0x39a   :  { %1942 = vmin.xlane.f32.xlu2 %v5692_v57  ;;  %2182 = vmin.xlane.f32.xlu1 %v5694_v16 }
 0x39b   :  { %v1794_v29 = vpop.xlane.xlu2 %1793 }
 0x39c   :  { %vm1868_vm12 = vcmp.ge.f32.partialorder %v5367_v42, %v1794_v29 }
 0x39d   :  { %v1818_v31 = vpop.xlane.xlu1 %1817  ;;  %v1900_v53 = vsel %vm1868_vm12, %v7625_v2, 8 }
 0x39e   :  { %vm1876_vm14 = vcmp.ge.f32.partialorder %v5375_v32, %v1818_v31 }
 0x39f   :  { %2520 = vadd.xlane.f32.xlu0 %v2519_v51  ;;  %v7703_v51 = vld [vmem:[#allocation51_spill] sm:$0xff] }
 0x3a0   :  { %v1644_v59 = vsel %vm1633_vm15, %v7703_v51, 0.0 }
 0x3a1   :  { %v5740_v28 = vsel %vm2402_vm1, %v1794_v29, %v1644_v59 }
 0x3a2   :  { %2544 = vadd.xlane.f32.xlu2 %v2543_v20  ;;  %1957 = vmin.xlane.f32.xlu1 %v5720_v4  ;;  %v1652_v20 = vsel %vm1633_vm15, %v7704_v47, 0.0  ;;  %7705 = vst [vmem:[#allocation33_spill] sm:$0xff] %v5740_v28  ;;  %v2498_v51 = vsel %vm2467_vm2, %v5740_v28, 0.0  ;;  %v7707_v47 = vld [vmem:[#allocation50_spill] sm:$0xff]  ;;  %v7713_v4 = vld [vmem:[#allocation53_spill] sm:$0xff] }
 0x3a3   :  { %v5744_v39 = vsel %vm2402_vm1, %v1818_v31, %v1652_v20  ;;  %v1660_v46 = vsel %vm1633_vm15, %v7707_v47, 0.0  ;;  %v1916_v47 = vsel %vm1884_vm13, %v7625_v2, 8 }
 0x3a4   :  { %7706 = vst [vmem:[#allocation34_spill] sm:$0xff] %v5744_v39  ;;  %v2522_v59 = vsel %vm2467_vm2, %v5744_v39, 0.0  ;;  %v5762_v37 = vsel %vm2402_vm1, %v1842_v41, %v1660_v46  ;;  %v5779_v41 = vsel %vm190_vm0, %v1900_v53, 2147483647 }
 0x3a5   :  { %v1773_v20 = vpop.xlane.xlu1 %1772  ;;  %7708 = vst [vmem:[#allocation35_spill] sm:$0xff] %v5762_v37  ;;  %v2546_v60 = vsel %vm2467_vm2, %v5762_v37, 0.0  ;;  %v2074_v32 = vshra.s32 %v5779_v41, 16 }
 0x3a6   :  { %vm1861_vm4 = vcmp.ge.f32.partialorder %v5395_v17, %v1773_v20 }
 0x3a7   :  { %2475 = vadd.xlane.f32.xlu0 %v2474_v61  ;;  %v2299_v61 = vshra.s32 %v5749_v24, 16 }
 0x3a9   :  { %v5776_v46 = vcvt.s32.f32 %v2299_v61  ;;  %v1908_v61 = vsel %vm1876_vm14, %v7625_v2, 8 }
 0x3aa   :  { %2499 = vadd.xlane.f32.xlu2 %v2498_v51  ;;  %2523 = vadd.xlane.f32.xlu1 %v2522_v59  ;;  %v7709_v51 = vld [vmem:[#allocation54_spill] sm:$0xff]  ;;  %v1797_v59 = vpop.xlane.xlu0 %1796 }
 0x3ab   :  { %v1637_v48 = vsel %vm1633_vm15, %v7709_v51, 0.0  ;;  %v1821_v42 = vpop.xlane.xlu2 %1820  ;;  %7711 = vst [vmem:[#allocation37_spill] sm:$0xff] %v5776_v46  ;;  %v5783_v51 = vsel %vm190_vm0, %v1916_v47, 2147483647  ;;  %vm1869_vm3 = vcmp.ge.f32.partialorder %v5387_v19, %v1797_v59 }
 0x3ac   :  { %v5772_v29 = vsel %vm2402_vm1, %v1773_v20, %v1637_v48  ;;  %7712 = vst [vmem:[#allocation38_spill] sm:$0xff] %v5783_v51  ;;  %v2314_v47 = vshra.s32 %v5783_v51, 16  ;;  %v1901_v37 = vsel %vm1869_vm3, %v7625_v2, 8  ;;  %v1893_v51 = vsel %vm1861_vm4, %v7625_v2, 8 }
 0x3ad   :  { %7710 = vst [vmem:[#allocation36_spill] sm:$0xff] %v5772_v29  ;;  %v2477_v48 = vsel %vm2467_vm2, %v5772_v29, 0.0  ;;  %v5800_v29 = vsel %vm190_vm0, %v1908_v61, 2147483647  ;;  %vm1877_vm6 = vcmp.ge.f32.partialorder %v5407_v3, %v1821_v42 }
 0x3ae   :  { %v2194_v61 = vshra.s32 %v5800_v29, 16 }
 0x3af   :  { %2547 = vadd.xlane.f32.xlu0 %v2546_v60  ;;  %v1645_v60 = vsel %vm1633_vm15, %v7713_v4, 0.0 }
 0x3b0   :  { %v5795_v53 = vsel %vm2402_vm1, %v1797_v59, %v1645_v60  ;;  %v5808_v59 = vcvt.s32.f32 %v2314_v47  ;;  %v5811_v60 = vsel %vm190_vm0, %v1901_v37, 2147483647  ;;  %v5825_v37 = vcvt.s32.f32 %v2194_v61 }
 0x3b1   :  { %7714 = vst [vmem:[#allocation39_spill] sm:$0xff] %v5795_v53  ;;  %v1845_v31 = vpop.xlane.xlu1 %1844  ;;  %v2501_v4 = vsel %vm2467_vm2, %v5795_v53, 0.0  ;;  %v7718_v53 = vld [vmem:[#allocation55_spill] sm:$0xff]  ;;  %v2089_v17 = vshra.s32 %v5811_v60, 16  ;;  %v5828_v47 = vsel %vm190_vm0, %v1893_v51, 2147483647 }
 0x3b2   :  { %2302 = vmin.xlane.f32.xlu2 %v5776_v46  ;;  %2478 = vadd.xlane.f32.xlu1 %v2477_v48  ;;  %v5805_v48 = vcvt.s32.f32 %v2074_v32  ;;  %7716 = vst [vmem:[#allocation41_spill] sm:$0xff] %v5808_v59  ;;  %v1653_v32 = vsel %vm1633_vm15, %v7718_v53, 0.0  ;;  %vm1885_vm5 = vcmp.ge.f32.partialorder %v5425_v9, %v1845_v31 }
 0x3b3   :  { %7717 = vst [vmem:[#allocation43_spill] sm:$0xff] %v5811_v60  ;;  %v5823_v20 = vsel %vm2402_vm1, %v1821_v42, %v1653_v32  ;;  %v5836_v60 = vcvt.s32.f32 %v2089_v17  ;;  %v1969_v32 = vshra.s32 %v5828_v47, 16  ;;  %v1917_v51 = vsel %vm1885_vm5, %v7625_v2, 8 }
 0x3b4   :  { %7715 = vst [vmem:[#allocation42_spill] sm:$0xff] %v5805_v48  ;;  %v2525_v53 = vsel %vm2467_vm2, %v5823_v20, 0.0  ;;  %v5858_v42 = vsel %vm190_vm0, %v1917_v51, 2147483647 }
 0x3b5   :  { %7719 = vst [vmem:[#allocation44_spill] sm:$0xff] %v5823_v20  ;;  %v5855_v3 = vcvt.s32.f32 %v1969_v32 }
 0x3b6   :  { %7720 = vst [vmem:[#allocation46_spill] sm:$0xff] %v5825_v37 }
 0x3b7   :  { %2502 = vadd.xlane.f32.xlu0 %v2501_v4  ;;  %v1776_v19 = vpop.xlane.xlu2 %1775  ;;  %7721 = vst [vmem:[#allocation49_spill] sm:$0xff] %v5828_v47 }
 0x3b8   :  { %7722 = vst [vmem:[#allocation45_spill] sm:$0xff] %v5836_v60  ;;  %vm1862_vm8 = vcmp.ge.f32.partialorder %v5437_v43, %v1776_v19 }
 0x3b9   :  { %7726 = vst [vmem:[#allocation47_spill] sm:$0xff] %v5855_v3 }
 0x3ba   :  { %2077 = vmin.xlane.f32.xlu2 %v5805_v48  ;;  %2317 = vmin.xlane.f32.xlu1 %v5808_v59  ;;  %v5830_v48 = vpop.xlane.xlu0 %1823  ;;  %v7723_v59 = vld [vmem:[#allocation58_spill] sm:$0xff]  ;;  %7727 = vst [vmem:[#allocation51_spill] sm:$0xff] %v5858_v42 }
 0x3bb   :  { %v1638_v9 = vsel %vm1633_vm15, %v7723_v59, 0.0  ;;  %vm1878_vm9 = vcmp.ge.f32.partialorder %v5415_v0, %v5830_v48 }
 0x3bc   :  { %v1800_v4 = vpop.xlane.xlu1 %1799  ;;  %v5853_v20 = vsel %vm2402_vm1, %v1776_v19, %v1638_v9  ;;  %v1910_v43 = vsel %vm1878_vm9, %v7625_v2, 8 }
 0x3bd   :  { %7725 = vst [vmem:[#allocation48_spill] sm:$0xff] %v5853_v20  ;;  %vm1870_vm7 = vcmp.ge.f32.partialorder %v5455_v62, %v1800_v4  ;;  %v2480_v32 = vsel %vm2467_vm2, %v5853_v20, 0.0  ;;  %v7730_v20 = vld [vmem:[#allocation60_spill] sm:$0xff] }
 0x3be   :  { %v1902_v62 = vsel %vm1870_vm7, %v7625_v2, 8 }
 0x3bf   :  { %2197 = vmin.xlane.f32.xlu0 %v5825_v37  ;;  %v7724_v37 = vld [vmem:[#allocation57_spill] sm:$0xff]  ;;  %v5891_v19 = vsel %vm190_vm0, %v1902_v62, 2147483647 }
 0x3c0   :  { %v1661_v17 = vsel %vm1633_vm15, %v7724_v37, 0.0  ;;  %7732 = vst [vmem:[#allocation53_spill] sm:$0xff] %v5891_v19  ;;  %v2104_v62 = vshra.s32 %v5891_v19, 16 }
 0x3c2   :  { %2526 = vadd.xlane.f32.xlu2 %v2525_v53  ;;  %v5840_v61 = vpop.xlane.xlu2 %1847  ;;  %2092 = vmin.xlane.f32.xlu1 %v5836_v60  ;;  %v1909_v53 = vsel %vm1877_vm6, %v7625_v2, 8  ;;  %v5862_v60 = vsel %vm2402_vm1, %v1845_v31, %v1661_v17  ;;  %v1779_v9 = vpop.xlane.xlu0 %1778  ;;  %v2329_v31 = vshra.s32 %v5858_v42, 16 }
 0x3c3   :  { %7728 = vst [vmem:[#allocation52_spill] sm:$0xff] %v5862_v60  ;;  %v5866_v59 = vsel %vm190_vm0, %v1909_v53, 2147483647  ;;  %v2549_v51 = vsel %vm2467_vm2, %v5862_v60, 0.0  ;;  %v1894_v60 = vsel %vm1862_vm8, %v7625_v2, 8  ;;  %vm1863_vm10 = vcmp.ge.f32.partialorder %v5445_v63, %v1779_v9 }
 0x3c4   :  { %7729 = vst [vmem:[#allocation50_spill] sm:$0xff] %v5866_v59  ;;  %v2209_v17 = vshra.s32 %v5866_v59, 16  ;;  %v5901_v42 = vsel %vm190_vm0, %v1894_v60, 2147483647  ;;  %vm1886_vm11 = vcmp.ge.f32.partialorder %v5467_v21, %v5840_v61 }
 0x3c5   :  { %7735 = vst [vmem:[#allocation57_spill] sm:$0xff] %v5901_v42  ;;  %v1984_v60 = vshra.s32 %v5901_v42, 16 }
 0x3c7   :  { %1972 = vmin.xlane.f32.xlu0 %v5855_v3  ;;  %v5887_v3 = vcvt.s32.f32 %v2329_v31 }
 0x3c8   :  { %v5869_v37 = vpop.xlane.xlu1 %1826 }
 0x3c9   :  { %7731 = vst [vmem:[#allocation54_spill] sm:$0xff] %v5887_v3  ;;  %vm1879_vm12 = vcmp.ge.f32.partialorder %v5485_v35, %v5869_v37 }
 0x3ca   :  { %2481 = vadd.xlane.f32.xlu2 %v2480_v32  ;;  %2550 = vadd.xlane.f32.xlu1 %v2549_v51  ;;  %v1646_v32 = vsel %vm1633_vm15, %v7730_v20, 0.0  ;;  %v5898_v51 = vcvt.s32.f32 %v2209_v17  ;;  %v5904_v20 = vsel %vm190_vm0, %v1910_v43, 2147483647  ;;  %v1895_v43 = vsel %vm1863_vm10, %v7625_v2, 8 }
 0x3cb   :  { %v5895_v0 = vsel %vm2402_vm1, %v1800_v4, %v1646_v32  ;;  %7736 = vst [vmem:[#allocation60_spill] sm:$0xff] %v5904_v20  ;;  %v5913_v4 = vpop.xlane.xlu0 %1850  ;;  %v2224_v17 = vshra.s32 %v5904_v20, 16  ;;  %v5917_v32 = vcvt.s32.f32 %v2104_v62  ;;  %v5928_v63 = vsel %vm190_vm0, %v1895_v43, 2147483647 }
 0x3cc   :  { %7733 = vst [vmem:[#allocation55_spill] sm:$0xff] %v5895_v0  ;;  %v2504_v31 = vsel %vm2467_vm2, %v5895_v0, 0.0  ;;  %v5923_v0 = vcvt.s32.f32 %v1984_v60  ;;  %v7744_v60 = vld [vmem:[#allocation61_spill] sm:$0xff]  ;;  %v1999_v43 = vshra.s32 %v5928_v63, 16  ;;  %vm1887_vm13 = vcmp.ge.f32.partialorder %v5477_v26, %v5913_v4 }
 0x3cd   :  { %v5881_v53 = vpop.xlane.xlu2 %1802  ;;  %7734 = vst [vmem:[#allocation58_spill] sm:$0xff] %v5898_v51  ;;  %v5925_v19 = vcvt.s32.f32 %v2224_v17  ;;  %v1662_v17 = vsel %vm1633_vm15, %v7744_v60, 0.0  ;;  %v7748_v60 = vld [vmem:[#allocation59_spill] sm:$0xff]  ;;  %v1911_v26 = vsel %vm1879_vm12, %v7625_v2, 8 }
 0x3ce   :  { %7737 = vst [vmem:[#allocation84_spill] sm:$0xff] %v5913_v4  ;;  %vm1871_vm14 = vcmp.ge.f32.partialorder %v5497_v33, %v5881_v53 }
 0x3cf   :  { %2332 = vmin.xlane.f32.xlu0 %v5887_v3  ;;  %7738 = vst [vmem:[#allocation85_spill] sm:$0xff] %v5917_v32 }
 0x3d0   :  { %7739 = vst [vmem:[#allocation86_spill] sm:$0xff] %v5923_v0 }
 0x3d1   :  { %7740 = vst [vmem:[#allocation87_spill] sm:$0xff] %v5925_v19 }
 0x3d2   :  { %2212 = vmin.xlane.f32.xlu2 %v5898_v51  ;;  %v5910_v59 = vpop.xlane.xlu1 %1781  ;;  %2505 = vadd.xlane.f32.xlu1 %v2504_v31  ;;  %7741 = vst [vmem:[#allocation88_spill] sm:$0xff] %v5928_v63  ;;  %v7742_v31 = vld [vmem:[#allocation56_spill] sm:$0xff]  ;;  %v1639_v63 = vsel %vm1633_vm15, %v7748_v60, 0.0  ;;  %v1918_v60 = vsel %vm1886_vm11, %v7625_v2, 8 }
 0x3d3   :  { %v1654_v62 = vsel %vm1633_vm15, %v7742_v31, 0.0  ;;  %v1806_v31 = vpop.xlane.xlu0 %1805  ;;  %vm1864_vm4 = vcmp.ge.f32.partialorder %v5515_v10, %v5910_v59  ;;  %v1903_v10 = vsel %vm1871_vm14, %v7625_v2, 8 }
 0x3d4   :  { %v5938_v20 = vsel %vm2402_vm1, %v5830_v48, %v1654_v62  ;;  %v5957_v62 = vcvt.s32.f32 %v1999_v43  ;;  %vm1872_vm3 = vcmp.ge.f32.partialorder %v5507_v30, %v1806_v31 }
 0x3d5   :  { %7743 = vst [vmem:[#allocation56_spill] sm:$0xff] %v5938_v20  ;;  %v1904_v4 = vsel %vm1872_vm3, %v7625_v2, 8 }
 0x3d6   :  { %7747 = vst [vmem:[#allocation90_spill] sm:$0xff] %v5957_v62 }
 0x3d7   :  { %v5920_v51 = vpop.xlane.xlu2 %1829  ;;  %2107 = vmin.xlane.f32.xlu0 %v5917_v32 }
 0x3d8   :  { %vm1880_vm5 = vcmp.ge.f32.partialorder %v5528_v22, %v5920_v51 }
 0x3d9   :  { %v1912_v46 = vsel %vm1880_vm5, %v7625_v2, 8 }
 0x3da   :  { %1987 = vmin.xlane.f32.xlu2 %v5923_v0  ;;  %2227 = vmin.xlane.f32.xlu1 %v5925_v19  ;;  %v5949_v0 = vsel %vm2402_vm1, %v5840_v61, %v1662_v17  ;;  %v2528_v19 = vsel %vm2467_vm2, %v5938_v20, 0.0  ;;  %v5967_v17 = vsel %vm2402_vm1, %v1779_v9, %v1639_v63 }
 0x3db   :  { %7746 = vst [vmem:[#allocation89_spill] sm:$0xff] %v5949_v0  ;;  %v2552_v48 = vsel %vm2467_vm2, %v5949_v0, 0.0  ;;  %v2483_v9 = vsel %vm2467_vm2, %v5967_v17, 0.0  ;;  %v5990_v63 = vpop.xlane.xlu0 %1832 }
 0x3dc   :  { %v5943_v32 = vpop.xlane.xlu1 %1853  ;;  %7749 = vst [vmem:[#allocation59_spill] sm:$0xff] %v5967_v17  ;;  %vm1881_vm8 = vcmp.ge.f32.partialorder %v5537_v36, %v5990_v63 }
 0x3dd   :  { %7745 = vst [vmem:[#allocation61_spill] sm:$0xff] %v5943_v32  ;;  %vm1888_vm6 = vcmp.ge.f32.partialorder %v5547_v5, %v5943_v32 }
 0x3de   :  { %v1920_v32 = vsel %vm1888_vm6, %v7625_v2, 8 }
 0x3df   :  { %2529 = vadd.xlane.f32.xlu0 %v2528_v19  ;;  %v7750_v19 = vld [vmem:[#allocation64_spill] sm:$0xff] }
 0x3e0   :  { %v5953_v42 = vpop.xlane.xlu2 %1784  ;;  %v1647_v0 = vsel %vm1633_vm15, %v7750_v19, 0.0  ;;  %v5993_v19 = vsel %vm190_vm0, %v1918_v60, 2147483647  ;;  %v7755_v60 = vld [vmem:[#allocation66_spill] sm:$0xff] }
 0x3e1   :  { %v5981_v21 = vsel %vm2402_vm1, %v5881_v53, %v1647_v0  ;;  %7754 = vst [vmem:[#allocation91_spill] sm:$0xff] %v5993_v19  ;;  %v2344_v35 = vshra.s32 %v5993_v19, 16  ;;  %v2163_v19 = vand.u32 65535, %v5647_v56 }
 0x3e2   :  { %2553 = vadd.xlane.f32.xlu2 %v2552_v48  ;;  %2002 = vmin.xlane.f32.xlu1 %v5957_v62  ;;  %v7751_v48 = vld [vmem:[#allocation63_spill] sm:$0xff]  ;;  %7752 = vst [vmem:[#allocation64_spill] sm:$0xff] %v5981_v21  ;;  %v2507_v0 = vsel %vm2467_vm2, %v5981_v21, 0.0  ;;  %v2043_v21 = vand.u32 65535, %v5608_v18  ;;  %v6048_v62 = vsel %vm190_vm0, %v1903_v10, 2147483647 }
 0x3e3   :  { %v1655_v20 = vsel %vm1633_vm15, %v7751_v48, 0.0  ;;  %7762 = vst [vmem:[#allocation93_spill] sm:$0xff] %v6048_v62  ;;  %v2283_v18 = vand.u32 65535, %v5627_v44  ;;  %v7768_v44 = vld [vmem:[#allocation78_spill] sm:$0xff]  ;;  %v6098_v39 = vcvt.s32.f32 %v2163_v19 }
 0x3e4   :  { %v5972_v43 = vpop.xlane.xlu1 %1808  ;;  %v5986_v61 = vsel %vm2402_vm1, %v5869_v37, %v1655_v20  ;;  %v7757_v37 = vld [vmem:[#allocation68_spill] sm:$0xff] }
 0x3e5   :  { %7753 = vst [vmem:[#allocation63_spill] sm:$0xff] %v5986_v61  ;;  %v2531_v48 = vsel %vm2467_vm2, %v5986_v61, 0.0  ;;  %v1640_v53 = vsel %vm1633_vm15, %v7757_v37, 0.0  ;;  %v6034_v37 = vsel %vm190_vm0, %v1911_v26, 2147483647  ;;  %v6052_v26 = vcvt.s32.f32 %v2344_v35 }
 0x3e6   :  { %7759 = vst [vmem:[#allocation68_spill] sm:$0xff] %v6034_v37  ;;  %vm1873_vm6 = vcmp.ge.f32.partialorder %v5566_v7, %v5972_v43 }
 0x3e7   :  { %2484 = vadd.xlane.f32.xlu0 %v2483_v9  ;;  %v1648_v9 = vsel %vm1633_vm15, %v7755_v60, 0.0  ;;  %v1919_v60 = vsel %vm1887_vm13, %v7625_v2, 8  ;;  %7763 = vst [vmem:[#allocation94_spill] sm:$0xff] %v6052_v26 }
 0x3e8   :  { %v6003_v20 = vpop.xlane.xlu2 %1856  ;;  %v6016_v33 = vsel %vm2402_vm1, %v1806_v31, %v1648_v9  ;;  %v1896_v31 = vsel %vm1864_vm4, %v7625_v2, 8  ;;  %v1923_v9 = vand.u32 65535, %v5603_v23  ;;  %v6045_v17 = vsel %vm190_vm0, %v1919_v60, 2147483647  ;;  %v7766_v60 = vld [vmem:[#allocation71_spill] sm:$0xff] }
 0x3e9   :  { %7756 = vst [vmem:[#allocation66_spill] sm:$0xff] %v6016_v33  ;;  %v2510_v61 = vsel %vm2467_vm2, %v6016_v33, 0.0  ;;  %v6066_v10 = vsel %vm1633_vm15, %v7766_v60, 0.0  ;;  %v6082_v33 = vsel %vm1633_vm15, %v7768_v44, 0.0  ;;  %v2119_v60 = vshra.s32 %v6048_v62, 16 }
 0x3ea   :  { %2508 = vadd.xlane.f32.xlu2 %v2507_v0  ;;  %2532 = vadd.xlane.f32.xlu1 %v2531_v48  ;;  %v7758_v0 = vld [vmem:[#allocation69_spill] sm:$0xff]  ;;  %7761 = vst [vmem:[#allocation92_spill] sm:$0xff] %v6045_v17  ;;  %v6089_v47 = vcvt.s32.f32 %v1923_v9  ;;  %v6100_v62 = vcvt.s32.f32 %v2283_v18 }
 0x3eb   :  { %v1656_v30 = vsel %vm1633_vm15, %v7758_v0, 0.0  ;;  %v6039_v0 = vsel %vm2402_vm1, %v5910_v59, %v1640_v53  ;;  %v6056_v59 = vsel %vm190_vm0, %v1904_v4, 2147483647  ;;  %v6059_v53 = vsel %vm190_vm0, %v1896_v31, 2147483647  ;;  %7769 = vst [vmem:[#allocation71_spill] sm:$0xff] %v6098_v39 }
 0x3ec   :  { %v6027_v48 = vpop.xlane.xlu1 %2469  ;;  %7760 = vst [vmem:[#allocation69_spill] sm:$0xff] %v6039_v0  ;;  %v2486_v56 = vsel %vm2467_vm2, %v6039_v0, 0.0  ;;  %v2239_v31 = vshra.s32 %v6034_v37, 16  ;;  %v2014_v3 = vshra.s32 %v6059_v53, 16  ;;  %v2134_v0 = vshra.s32 %v6056_v59, 16 }
 0x3ed   :  { %3289 = vrcp.f32 %v6027_v48  ;;  %7764 = vst [vmem:[#allocation95_spill] sm:$0xff] %v6056_v59  ;;  %v6091_v37 = vcvt.s32.f32 %v2043_v21  ;;  %v2573_v21 = vand.u32 2147483647, %v6027_v48  ;;  %v6113_v19 = vcvt.s32.f32 %v2119_v60 }
 0x3ee   :  { %7765 = vst [vmem:[#allocation96_spill] sm:$0xff] %v6059_v53  ;;  %v6105_v53 = vsel %vm2402_vm1, %v5920_v51, %v1656_v30  ;;  %v6110_v9 = vcvt.s32.f32 %v2239_v31  ;;  %v6120_v30 = vcvt.s32.f32 %v2014_v3  ;;  %v6122_v5 = vcvt.s32.f32 %v2134_v0 }
 0x3ef   :  { %2511 = vadd.xlane.f32.xlu0 %v2510_v61  ;;  %v7767_v61 = vld [vmem:[#allocation74_spill] sm:$0xff]  ;;  %7772 = vst [vmem:[#allocation97_spill] sm:$0xff] %v6113_v19  ;;  %v2534_v60 = vsel %vm2467_vm2, %v6105_v53, 0.0  ;;  %vm2569_vm9 = vweird.f32 %v6027_v48  ;;  %vm6132_vm10 = vcmp.eq.f32.partialorder %v2573_v21, 8.507059e+37 }
 0x3f0   :  { %v6050_v23 = vpop.xlane.xlu0 %2493  ;;  %v6071_v35 = vsel %vm1633_vm15, %v7767_v61, 0.0  ;;  %v2359_v61 = vshra.s32 %v6045_v17, 16  ;;  %7770 = vst [vmem:[#allocation74_spill] sm:$0xff] %v6105_v53  ;;  %v2575_v17 = vand.u32 2147483648, %v6027_v48 }
 0x3f1   :  { %3291 = vrcp.f32 %v6050_v23  ;;  %7771 = vst [vmem:[#allocation78_spill] sm:$0xff] %v6110_v9  ;;  %vm2689_vm11 = vweird.f32 %v6050_v23 }
 0x3f2   :  { %2347 = vmin.xlane.f32.xlu2 %v6052_v26  ;;  %v6076_v4 = vpop.xlane.xlu2 %2517  ;;  %2487 = vadd.xlane.f32.xlu1 %v2486_v56  ;;  %v6115_v18 = vcvt.s32.f32 %v2359_v61  ;;  %v2576_v53 = vor.u32 1.1754944e-38, %v2575_v17 }
 0x3f3   :  { %3293 = vrcp.f32 %v6076_v4  ;;  %v3290_v26 = vpop.eup %3289  ;;  %vm2809_vm5 = vweird.f32 %v6076_v4 }
 0x3f4   :  { %v2565_v56 = vmul.f32 %v3290_v26, %v6027_v48  ;;  %7773 = vst [vmem:[#allocation98_spill] sm:$0xff] %v6115_v18  ;;  %vm2570_vm7 = vweird.f32 %v3290_v26 }
 0x3f5   :  { %v6096_v44 = vpop.xlane.xlu1 %2047  ;;  %vm2571_vm13 = vmor %vm2569_vm9, %vm2570_vm7 }
 0x3f6   :  { %v2566_v59 = vsub.f32 1.0, %v2565_v56 }
 0x3f7   :  { %v3292_v22 = vpop.eup %3291  ;;  %2242 = vmin.xlane.f32.xlu0 %v6110_v9  ;;  %v2695_v9 = vand.u32 2147483648, %v6050_v23 }
 0x3f8   :  { %v2685_v51 = vmul.f32 %v3292_v22, %v6050_v23  ;;  %v2567_v56 = vmul.f32 %v3290_v26, %v2566_v59  ;;  %v6125_v28 = vpop.xlane.xlu0 %1927  ;;  %v2693_v59 = vand.u32 2147483647, %v6050_v23  ;;  %vm2690_vm12 = vweird.f32 %v3292_v22 }
 0x3f9   :  { %v3294_v31 = vpop.eup %3293  ;;  %vm2691_vm3 = vmor %vm2689_vm11, %vm2690_vm12 }
 0x3fa   :  { %v2686_v61 = vsub.f32 1.0, %v2685_v51  ;;  %v2805_v0 = vmul.f32 %v3294_v31, %v6076_v4  ;;  %2122 = vmin.xlane.f32.xlu2 %v6113_v19  ;;  %v2568_v34 = vadd.f32 %v3290_v26, %v2567_v56  ;;  %2362 = vmin.xlane.f32.xlu1 %v6115_v18  ;;  %vm2810_vm14 = vweird.f32 %v3294_v31 }
 0x3fb   :  { %v2813_v51 = vand.u32 2147483647, %v6076_v4  ;;  %v2815_v19 = vand.u32 2147483648, %v6076_v4  ;;  %v6153_v18 = vsel %vm190_vm0, %v1920_v32, 2147483647  ;;  %vm2694_vm4 = vcmp.eq.f32.partialorder %v2693_v59, 8.507059e+37  ;;  %vm2811_vm7 = vmor %vm2809_vm5, %vm2810_vm14 }
 0x3fc   :  { %v2687_v11 = vmul.f32 %v3292_v22, %v2686_v61  ;;  %v2806_v48 = vsub.f32 1.0, %v2805_v0  ;;  %v2572_v21 = vsel %vm2571_vm13, %v3290_v26, %v2568_v34  ;;  %v2696_v34 = vor.u32 1.1754944e-38, %v2695_v9 }
 0x3fd   :  { %v6145_v52 = vpop.xlane.xlu2 %2472  ;;  %v6147_v39 = vpop.xlane.xlu1 %2541  ;;  %v2577_v56 = vsel %vm6132_vm10, %v2576_v53, %v2572_v21  ;;  %v2816_v23 = vor.u32 1.1754944e-38, %v2815_v19  ;;  %vm2814_vm9 = vcmp.eq.f32.partialorder %v2813_v51, 8.507059e+37  ;;  %v6167_v4 = vsel %vm190_vm0, %v1912_v46, 2147483647 }
 0x3fe   :  { %v2688_v17 = vadd.f32 %v3292_v22, %v2687_v11  ;;  %v2807_v61 = vmul.f32 %v3294_v31, %v2806_v48  ;;  %3295 = vrcp.f32 %v6145_v52  ;;  %v2578_v26 = vmul.f32 %v2577_v56, %v5585_v55 }
 0x3ff   :  { %3297 = vrcp.f32 %v6147_v39  ;;  %2017 = vmin.xlane.f32.xlu0 %v6120_v30  ;;  %v2374_v55 = vshra.s32 %v6153_v18, 16  ;;  %v1905_v46 = vsel %vm1873_vm6, %v7625_v2, 8  ;;  %v1913_v48 = vsel %vm1881_vm8, %v7625_v2, 8 }
 0x400   :  { %v2692_v0 = vsel %vm2691_vm3, %v3292_v22, %v2688_v17  ;;  %v2808_v16 = vadd.f32 %v3294_v31, %v2807_v61  ;;  %v3044_v32 = vmul.f32 2.0, %v2578_v26  ;;  %v6173_v3 = vpop.xlane.xlu0 %2287  ;;  %v6192_v21 = vsel %vm2402_vm1, %v5953_v42, %v6071_v35 }
 0x401   :  { %v2697_v11 = vsel %vm2694_vm4, %v2696_v34, %v2692_v0  ;;  %v6202_v56 = vsel %vm2402_vm1, %v5972_v43, %v6082_v33  ;;  %v6210_v61 = vcvt.s32.f32 %v2374_v55  ;;  %v2254_v34 = vshra.s32 %v6167_v4, 16 }
 0x402   :  { %v2698_v53 = vmul.f32 %v2697_v11, %v5596_v14  ;;  %v2812_v9 = vsel %vm2811_vm7, %v3294_v31, %v2808_v16  ;;  %2535 = vadd.xlane.f32.xlu2 %v2534_v60  ;;  %3076 = vst.msk [vmem:[%s7268_s3] sm:$0xff] %vm2467_vm2, %v3044_v32  ;;  %2137 = vmin.xlane.f32.xlu1 %v6122_v5  ;;  %v2178_v16 = vand.u32 65535, %v5675_v15  ;;  %v6214_v26 = vsel %vm190_vm0, %v1905_v46, 2147483647 }
 0x403   :  { %v2817_v22 = vsel %vm2814_vm9, %v2816_v23, %v2812_v9  ;;  %v6219_v43 = vsel %vm190_vm0, %v1913_v48, 2147483647  ;;  %vm1865_vm8 = vcmp.ge.f32.partialorder %v5555_v54, %v5953_v42  ;;  %v2590_v33 = vand.u32 2147483648, %v6145_v52 }
 0x404   :  { %v3296_v19 = vpop.eup %3295  ;;  %v3052_v31 = vmul.f32 2.0, %v2698_v53  ;;  %v2818_v60 = vmul.f32 %v2817_v22, %v5612_v25  ;;  %v2489_v32 = vsel %vm2467_vm2, %v6192_v21, 0.0  ;;  %v2588_v53 = vand.u32 2147483647, %v6145_v52 }
 0x405   :  { %v2580_v51 = vmul.f32 %v3296_v19, %v6145_v52  ;;  %v6195_v7 = vpop.xlane.xlu2 %2167  ;;  %v3298_v25 = vpop.eup %3297  ;;  %vm2585_vm10 = vweird.f32 %v3296_v19  ;;  %vm2584_vm11 = vweird.f32 %v6145_v52  ;;  %v2935_v55 = vand.u32 2147483648, %v6147_v39 }
 0x406   :  { %3084 = vst.msk [vmem:[%s7268_s3 + $0x40] sm:$0xff] %vm2467_vm2, %v3052_v31  ;;  %v3060_v36 = vmul.f32 2.0, %v2818_v60  ;;  %v6208_v35 = vpop.xlane.xlu1 %2496  ;;  %v2925_v11 = vmul.f32 %v3298_v25, %v6147_v39  ;;  %v2513_v22 = vsel %vm2467_vm2, %v6202_v56, 0.0  ;;  %v2149_v46 = vshra.s32 %v6214_v26, 16  ;;  %vm2586_vm14 = vmor %vm2584_vm11, %vm2585_vm10 }
 0x407   :  { %v2581_v0 = vsub.f32 1.0, %v2580_v51  ;;  %3299 = vrcp.f32 %v6208_v35  ;;  %2377 = vmin.xlane.f32.xlu0 %v6210_v61  ;;  %vm2930_vm12 = vweird.f32 %v3298_v25  ;;  %v2933_v48 = vand.u32 2147483647, %v6147_v39 }
 0x408   :  { %3092 = vst.msk [vmem:[%s7268_s3 + $0x80] sm:$0xff] %vm2467_vm2, %v3060_v36  ;;  %v2926_v9 = vsub.f32 1.0, %v2925_v11  ;;  %v1897_v52 = vsel %vm1865_vm8, %v7625_v2, 8  ;;  %vm1889_vm13 = vcmp.ge.f32.partialorder %v5574_v6, %v6003_v20  ;;  %v2591_v36 = vor.u32 1.1754944e-38, %v2590_v33 }
 0x409   :  { %v2582_v23 = vmul.f32 %v3296_v19, %v2581_v0  ;;  %v2269_v0 = vshra.s32 %v6219_v43, 16  ;;  %vm2589_vm3 = vcmp.eq.f32.partialorder %v2588_v53, 8.507059e+37  ;;  %vm2929_vm4 = vweird.f32 %v6147_v39 }
 0x40a   :  { %2490 = vadd.xlane.f32.xlu2 %v2489_v32  ;;  %v2927_v60 = vmul.f32 %v3298_v25, %v2926_v9  ;;  %v6238_v51 = vpop.xlane.xlu0 %2062  ;;  %2514 = vadd.xlane.f32.xlu1 %v2513_v22  ;;  %vm2931_vm5 = vmor %vm2929_vm4, %vm2930_vm12  ;;  %v2936_v54 = vor.u32 1.1754944e-38, %v2935_v55  ;;  %v6255_v17 = vcvt.s32.f32 %v2149_v46  ;;  %vm2934_vm6 = vcmp.eq.f32.partialorder %v2933_v48, 8.507059e+37 }
 0x40b   :  { %v2583_v31 = vadd.f32 %v3296_v19, %v2582_v23  ;;  %v6261_v39 = vsel %vm190_vm0, %v1897_v52, 2147483647  ;;  %v6264_v55 = vcvt.s32.f32 %v2269_v0  ;;  %v1921_v46 = vsel %vm1889_vm13, %v7625_v2, 8 }
 0x40c   :  { %v2928_v23 = vadd.f32 %v3298_v25, %v2927_v60  ;;  %v2708_v48 = vand.u32 2147483647, %v6208_v35  ;;  %v6282_v6 = vsel %vm2402_vm1, %v5990_v63, %v6066_v10  ;;  %v2029_v15 = vshra.s32 %v6261_v39, 16 }
 0x40d   :  { %v3300_v11 = vpop.eup %3299  ;;  %v2587_v32 = vsel %vm2586_vm14, %v3296_v19, %v2583_v31  ;;  %v6249_v9 = vpop.xlane.xlu2 %1942  ;;  %v6258_v19 = vcvt.s32.f32 %v2254_v34  ;;  %v6295_v0 = vsel %vm190_vm0, %v1921_v46, 2147483647  ;;  %vm2704_vm9 = vweird.f32 %v6208_v35 }
 0x40e   :  { %v2592_v22 = vsel %vm2589_vm3, %v2591_v36, %v2587_v32  ;;  %v2700_v42 = vmul.f32 %v3300_v11, %v6208_v35  ;;  %v6253_v59 = vpop.xlane.xlu1 %2182  ;;  %v2932_v14 = vsel %vm2931_vm5, %v3298_v25, %v2928_v23  ;;  %v2710_v25 = vand.u32 2147483648, %v6208_v35 }
 0x40f   :  { %v2593_v33 = vmul.f32 %v2592_v22, %v5644_v8  ;;  %v2937_v53 = vsel %vm2934_vm6, %v2936_v54, %v2932_v14  ;;  %2152 = vmin.xlane.f32.xlu0 %v6255_v17  ;;  %vm2705_vm7 = vweird.f32 %v3300_v11  ;;  %v6276_v14 = vcvt.s32.f32 %v2178_v16 }
 0x410   :  { %v2701_v31 = vsub.f32 1.0, %v2700_v42  ;;  %v2938_v8 = vmul.f32 %v2937_v53, %v5636_v45  ;;  %v7776_v16 = vand.u32 65535, %v5667_v49  ;;  %vm2706_vm8 = vmor %vm2704_vm9, %vm2705_vm7  ;;  %v2711_v10 = vor.u32 1.1754944e-38, %v2710_v25 }
 0x411   :  { %v3045_v60 = vmul.f32 2.0, %v2593_v33  ;;  %v7777_v49 = vand.u32 65535, %v5682_v13  ;;  %v2298_v22 = vand.u32 65535, %v5749_v24  ;;  %v7778_v54 = vand.u32 65535, %v5697_v58 }
 0x412   :  { %v2702_v34 = vmul.f32 %v3300_v11, %v2701_v31  ;;  %2257 = vmin.xlane.f32.xlu2 %v6258_v19  ;;  %v3068_v45 = vmul.f32 2.0, %v2938_v8  ;;  %v6288_v52 = vpop.xlane.xlu0 %2520  ;;  %2272 = vmin.xlane.f32.xlu1 %v6264_v55  ;;  %v1940_v36 = vcvt.s32.f32 %v7776_v16  ;;  %vm2709_vm0 = vcmp.eq.f32.partialorder %v2708_v48, 8.507059e+37  ;;  %v7779_v16 = vld [vmem:[#allocation28_spill] sm:$0xff] }
 0x413   :  { %3077 = vst.msk [vmem:[%s7268_s3 + $0x8] sm:$0xff] %vm2467_vm2, %v3045_v60  ;;  %3301 = vrcp.f32 %v6288_v52  ;;  %v2060_v23 = vcvt.s32.f32 %v7777_v49  ;;  %v6311_v35 = vcvt.s32.f32 %v7778_v54  ;;  %v2193_v53 = vand.u32 65535, %v5800_v29 }
 0x414   :  { %v2703_v63 = vadd.f32 %v3300_v11, %v2702_v34  ;;  %3100 = vst.msk [vmem:[%s7268_s3 + $0xc0] sm:$0xff] %vm2467_vm2, %v3068_v45  ;;  %vm1929_vm10 = vcmp.eq.f32.partialorder %v5624_v1, %v6125_v28  ;;  %v2537_v13 = vsel %vm2467_vm2, %v6282_v6, 0.0  ;;  %v2389_v24 = vshra.s32 %v6295_v0, 16 }
 0x415   :  { %v6304_v32 = vpop.xlane.xlu2 %2544  ;;  %vm2049_vm11 = vcmp.eq.f32.partialorder %v5619_v50, %v6096_v44  ;;  %vm2289_vm12 = vcmp.eq.f32.partialorder %v5654_v12, %v6173_v3  ;;  %vm2169_vm13 = vcmp.eq.f32.partialorder %v5664_v38, %v6195_v7  ;;  %vm1944_vm14 = vcmp.eq.f32.partialorder %v5692_v57, %v6249_v9 }
 0x416   :  { %v2707_v42 = vsel %vm2706_vm8, %v3300_v11, %v2703_v63  ;;  %3303 = vrcp.f32 %v6304_v32  ;;  %v6314_v33 = vpop.xlane.xlu1 %1957  ;;  %v6327_v11 = vcvt.s32.f32 %v2029_v15  ;;  %v6333_v29 = vcvt.s32.f32 %v2298_v22  ;;  %v7780_v63 = vld [vmem:[#allocation71_spill] sm:$0xff] }
 0x417   :  { %v2712_v31 = vsel %vm2709_vm0, %v2711_v10, %v2707_v42  ;;  %2538 = vadd.xlane.f32.xlu0 %v2537_v13  ;;  %v2073_v46 = vand.u32 65535, %v5779_v41  ;;  %vm2064_vm3 = vcmp.eq.f32.partialorder %v5688_v27, %v6238_v51  ;;  %v6343_v25 = vcvt.s32.f32 %v2193_v53 }
 0x418   :  { %v2713_v58 = vmul.f32 %v2712_v31, %v5672_v40  ;;  %v1930_v40 = vsel %vm1929_vm10, %v6089_v47, inf  ;;  %v6348_v45 = vcvt.s32.f32 %v2389_v24  ;;  %v2290_v15 = vsel %vm2289_vm12, %v6100_v62, inf }
 0x419   :  { %v3302_v60 = vpop.eup %3301  ;;  %v6358_v1 = vsel %vm2049_vm11, %v6091_v37, inf  ;;  %vm2184_vm4 = vcmp.eq.f32.partialorder %v7779_v16, %v6253_v59  ;;  %v2170_v12 = vsel %vm2169_vm13, %v7780_v63, inf  ;;  %v1945_v50 = vsel %vm1944_vm14, %v1940_v36, inf }
 0x41a   :  { %v3053_v8 = vmul.f32 2.0, %v2713_v58  ;;  %2032 = vmin.xlane.f32.xlu2 %v6327_v11  ;;  %v2820_v34 = vmul.f32 %v3302_v60, %v6288_v52  ;;  %v6346_v48 = vpop.xlane.xlu0 %2475  ;;  %1931 = vmin.xlane.f32.xlu1 %v1930_v40  ;;  %v2828_v37 = vand.u32 2147483647, %v6288_v52  ;;  %v6381_v22 = vsel %vm2064_vm3, %v2060_v23, inf }
 0x41b   :  { %3305 = vrcp.f32 %v6346_v48  ;;  %v2830_v54 = vand.u32 2147483648, %v6288_v52  ;;  %v2948_v38 = vand.u32 2147483647, %v6304_v32  ;;  %v2950_v42 = vand.u32 2147483648, %v6304_v32 }
 0x41c   :  { %v3304_v47 = vpop.eup %3303  ;;  %3085 = vst.msk [vmem:[%s7268_s3 + $0x48] sm:$0xff] %vm2467_vm2, %v3053_v8  ;;  %v2821_v62 = vsub.f32 1.0, %v2820_v34  ;;  %vm2825_vm5 = vweird.f32 %v3302_v60  ;;  %v6393_v27 = vsel %vm2184_vm4, %v6276_v14, inf  ;;  %vm2824_vm6 = vweird.f32 %v6288_v52 }
 0x41d   :  { %v2940_v10 = vmul.f32 %v3304_v47, %v6304_v32  ;;  %v6376_v49 = vpop.xlane.xlu2 %2499  ;;  %v2603_v23 = vand.u32 2147483647, %v6346_v48  ;;  %v2605_v31 = vand.u32 2147483648, %v6346_v48  ;;  %vm6399_vm7 = vcmp.eq.f32.partialorder %v2828_v37, 8.507059e+37  ;;  %vm2826_vm8 = vmor %vm2824_vm6, %vm2825_vm5 }
 0x41e   :  { %3307 = vrcp.f32 %v6376_v49  ;;  %v6387_v57 = vpop.xlane.xlu1 %2523  ;;  %v2822_v36 = vmul.f32 %v3302_v60, %v2821_v62  ;;  %vm2945_vm9 = vweird.f32 %v3304_v47  ;;  %v2831_v14 = vor.u32 1.1754944e-38, %v2830_v54 }
 0x41f   :  { %v2941_v53 = vsub.f32 1.0, %v2940_v10  ;;  %3309 = vrcp.f32 %v6387_v57  ;;  %2171 = vmin.xlane.f32.xlu0 %v2170_v12  ;;  %vm2944_vm0 = vweird.f32 %v6304_v32  ;;  %vm6404_vm10 = vcmp.eq.f32.partialorder %v2948_v38, 8.507059e+37 }
 0x420   :  { %v2823_v13 = vadd.f32 %v3302_v60, %v2822_v36  ;;  %v2951_v40 = vor.u32 1.1754944e-38, %v2950_v42  ;;  %vm2599_vm11 = vweird.f32 %v6346_v48  ;;  %vm2946_vm12 = vmor %vm2944_vm0, %vm2945_vm9  ;;  %vm6416_vm13 = vcmp.eq.f32.partialorder %v2603_v23, 8.507059e+37 }
 0x421   :  { %v2942_v58 = vmul.f32 %v3304_v47, %v2941_v53  ;;  %v3306_v8 = vpop.eup %3305  ;;  %v2606_v10 = vor.u32 1.1754944e-38, %v2605_v31  ;;  %v2723_v23 = vand.u32 2147483647, %v6376_v49  ;;  %v2725_v31 = vand.u32 2147483648, %v6376_v49 }
 0x422   :  { %2392 = vmin.xlane.f32.xlu2 %v6348_v45  ;;  %v2827_v34 = vsel %vm2826_vm8, %v3302_v60, %v2823_v13  ;;  %v2595_v63 = vmul.f32 %v3306_v8, %v6346_v48  ;;  %v6411_v12 = vpop.xlane.xlu0 %2547  ;;  %2291 = vmin.xlane.f32.xlu1 %v2290_v15  ;;  %v7787_v60 = vld [vmem:[#allocation29_spill] sm:$0xff]  ;;  %vm2600_vm14 = vweird.f32 %v3306_v8  ;;  %vm2719_vm3 = vweird.f32 %v6376_v49 }
 0x423   :  { %v2943_v16 = vadd.f32 %v3304_v47, %v2942_v58  ;;  %v2832_v32 = vsel %vm6399_vm7, %v2831_v14, %v2827_v34  ;;  %3311 = vrcp.f32 %v6411_v12  ;;  %v7788_v14 = vld [vmem:[#allocation30_spill] sm:$0xff]  ;;  %vm2839_vm4 = vweird.f32 %v6387_v57  ;;  %vm2601_vm6 = vmor %vm2599_vm11, %vm2600_vm14 }
 0x424   :  { %v3308_v62 = vpop.eup %3307  ;;  %v2833_v54 = vmul.f32 %v2832_v32, %v7787_v60  ;;  %v2596_v42 = vsub.f32 1.0, %v2595_v63  ;;  %v2845_v52 = vand.u32 2147483648, %v6387_v57  ;;  %vm6446_vm7 = vcmp.eq.f32.partialorder %v2723_v23, 8.507059e+37 }
 0x425   :  { %v2947_v38 = vsel %vm2946_vm12, %v3304_v47, %v2943_v16  ;;  %v2715_v36 = vmul.f32 %v3308_v62, %v6376_v49  ;;  %v6423_v15 = vpop.xlane.xlu2 %2302  ;;  %v6425_v53 = vpop.eup %3309  ;;  %vm2720_vm5 = vweird.f32 %v3308_v62  ;;  %v2726_v48 = vor.u32 1.1754944e-38, %v2725_v31 }
 0x426   :  { %v2952_v13 = vsel %vm6404_vm10, %v2951_v40, %v2947_v38  ;;  %v6431_v24 = vpop.xlane.xlu1 %2478  ;;  %v3061_v58 = vmul.f32 2.0, %v2833_v54  ;;  %v2597_v34 = vmul.f32 %v3306_v8, %v2596_v42  ;;  %v2835_v63 = vmul.f32 %v6425_v53, %v6387_v57  ;;  %vm2721_vm9 = vmor %vm2719_vm3, %vm2720_vm5 }
 0x427   :  { %v2953_v47 = vmul.f32 %v2952_v13, %v7788_v14  ;;  %v2716_v16 = vsub.f32 1.0, %v2715_v36  ;;  %1946 = vmin.xlane.f32.xlu0 %v1945_v50  ;;  %v2843_v50 = vand.u32 2147483647, %v6387_v57  ;;  %3313 = vrcp.f32 %v6431_v24 }
 0x428   :  { %3093 = vst.msk [vmem:[%s7268_s3 + $0x88] sm:$0xff] %vm2467_vm2, %v3061_v58  ;;  %v2598_v32 = vadd.f32 %v3306_v8, %v2597_v34  ;;  %v2836_v42 = vsub.f32 1.0, %v2835_v63  ;;  %vm2840_vm8 = vweird.f32 %v6425_v53  ;;  %v2963_v63 = vand.u32 2147483647, %v6411_v12 }
 0x429   :  { %v3069_v40 = vmul.f32 2.0, %v2953_v47  ;;  %v2717_v60 = vmul.f32 %v3308_v62, %v2716_v16  ;;  %v3312_v54 = vpop.eup %3311  ;;  %v7791_v47 = vld [vmem:[#allocation32_spill] sm:$0xff]  ;;  %v2965_v49 = vand.u32 2147483648, %v6411_v12  ;;  %vm2841_vm0 = vmor %vm2839_vm4, %vm2840_vm8  ;;  %vm2844_vm11 = vcmp.eq.f32.partialorder %v2843_v50, 8.507059e+37 }
 0x42a   :  { %2051 = vmin.xlane.f32.xlu2 %v6358_v1  ;;  %v2602_v36 = vsel %vm2601_vm6, %v3306_v8, %v2598_v32  ;;  %v2955_v23 = vmul.f32 %v3312_v54, %v6411_v12  ;;  %v6458_v58 = vpop.xlane.xlu0 %2502  ;;  %2066 = vmin.xlane.f32.xlu1 %v6381_v22  ;;  %v2837_v1 = vmul.f32 %v6425_v53, %v2836_v42  ;;  %v2846_v8 = vor.u32 1.1754944e-38, %v2845_v52  ;;  %v7794_v32 = vld [vmem:[#allocation33_spill] sm:$0xff] }
 0x42b   :  { %3101 = vst.msk [vmem:[%s7268_s3 + $0xc8] sm:$0xff] %vm2467_vm2, %v3069_v40  ;;  %v2718_v13 = vadd.f32 %v3308_v62, %v2717_v60  ;;  %v2607_v14 = vsel %vm6416_vm13, %v2606_v10, %v2602_v36  ;;  %3315 = vrcp.f32 %v6458_v58  ;;  %vm2960_vm10 = vweird.f32 %v3312_v54  ;;  %v7795_v36 = vld [vmem:[#allocation37_spill] sm:$0xff] }
 0x42c   :  { %v2608_v31 = vmul.f32 %v2607_v14, %v7791_v47  ;;  %v2956_v16 = vsub.f32 1.0, %v2955_v23  ;;  %v2838_v37 = vadd.f32 %v6425_v53, %v2837_v1  ;;  %vm2959_vm12 = vweird.f32 %v6411_v12  ;;  %v7796_v14 = vld [vmem:[#allocation34_spill] sm:$0xff]  ;;  %v7797_v12 = vld [vmem:[#allocation49_spill] sm:$0xff] }
 0x42d   :  { %v2722_v34 = vsel %vm2721_vm9, %v3308_v62, %v2718_v13  ;;  %v6470_v40 = vpop.xlane.xlu2 %2077  ;;  %v3314_v42 = vpop.eup %3313  ;;  %vm2304_vm13 = vcmp.eq.f32.partialorder %v7795_v36, %v6423_v15  ;;  %vm2961_vm14 = vmor %vm2959_vm12, %vm2960_vm10  ;;  %v2618_v50 = vand.u32 2147483647, %v6431_v24  ;;  %v1968_v47 = vand.u32 65535, %v7797_v12 }
 0x42e   :  { %7792 = vst [vmem:[#allocation28_spill] sm:$0xff] %v6470_v40  ;;  %v2727_v22 = vsel %vm6446_vm7, %v2726_v48, %v2722_v34  ;;  %v6477_v10 = vpop.xlane.xlu1 %2317  ;;  %v3046_v52 = vmul.f32 2.0, %v2608_v31  ;;  %v2957_v62 = vmul.f32 %v3312_v54, %v2956_v16  ;;  %v2842_v38 = vsel %vm2841_vm0, %v6425_v53, %v2838_v37  ;;  %v7798_v31 = vld [vmem:[#allocation31_spill] sm:$0xff] }
 0x42f   :  { %7793 = vst [vmem:[#allocation71_spill] sm:$0xff] %v6477_v10  ;;  %v2728_v60 = vmul.f32 %v2727_v22, %v7794_v32  ;;  %v2847_v48 = vsel %vm2844_vm11, %v2846_v8, %v2842_v38  ;;  %v2610_v23 = vmul.f32 %v3314_v42, %v6431_v24  ;;  %v2966_v53 = vor.u32 1.1754944e-38, %v2965_v49  ;;  %v7799_v32 = vld [vmem:[#allocation35_spill] sm:$0xff] }
 0x430   :  { %3078 = vst.msk [vmem:[%s7268_s3 + $0x10] sm:$0xff] %vm2467_vm2, %v3046_v52  ;;  %v2958_v57 = vadd.f32 %v3312_v54, %v2957_v62  ;;  %v2848_v1 = vmul.f32 %v2847_v48, %v7796_v14  ;;  %vm1959_vm3 = vcmp.eq.f32.partialorder %v7798_v31, %v6314_v33  ;;  %vm2964_vm4 = vcmp.eq.f32.partialorder %v2963_v63, 8.507059e+37 }
 0x431   :  { %v3054_v13 = vmul.f32 2.0, %v2728_v60  ;;  %v2611_v34 = vsub.f32 1.0, %v2610_v23  ;;  %v3316_v22 = vpop.eup %3315  ;;  %v2305_v52 = vsel %vm2304_vm13, %v6333_v29, inf  ;;  %vm2615_vm5 = vweird.f32 %v3314_v42  ;;  %v7802_v29 = vld [vmem:[#allocation46_spill] sm:$0xff] }
 0x432   :  { %2186 = vmin.xlane.f32.xlu2 %v6393_v27  ;;  %v2962_v8 = vsel %vm2961_vm14, %v3312_v54, %v2958_v57  ;;  %v6501_v16 = vpop.xlane.xlu0 %2197  ;;  %v3062_v37 = vmul.f32 2.0, %v2848_v1  ;;  %v2620_v27 = vand.u32 2147483648, %v6431_v24  ;;  %v2730_v54 = vmul.f32 %v3316_v22, %v6458_v58  ;;  %2306 = vmin.xlane.f32.xlu0 %v2305_v52 }
 0x433   :  { %3086 = vst.msk [vmem:[%s7268_s3 + $0x50] sm:$0xff] %vm2467_vm2, %v3054_v13  ;;  %v2967_v49 = vsel %vm2964_vm4, %v2966_v53, %v2962_v8  ;;  %v2612_v62 = vmul.f32 %v3314_v42, %v2611_v34  ;;  %vm2614_vm6 = vweird.f32 %v6431_v24  ;;  %vm6517_vm7 = vcmp.eq.f32.partialorder %v2618_v50, 8.507059e+37  ;;  %v7804_v53 = vld [vmem:[#allocation42_spill] sm:$0xff] }
 0x434   :  { %v2968_v60 = vmul.f32 %v2967_v49, %v7799_v32  ;;  %3094 = vst.msk [vmem:[%s7268_s3 + $0x90] sm:$0xff] %vm2467_vm2, %v3062_v37  ;;  %vm2199_vm9 = vcmp.eq.f32.partialorder %v7802_v29, %v6501_v16  ;;  %v1960_v13 = vsel %vm1959_vm3, %v6311_v35, inf  ;;  %v2731_v23 = vsub.f32 1.0, %v2730_v54  ;;  %vm2616_vm8 = vmor %vm2614_vm6, %vm2615_vm5  ;;  %v7805_v34 = vld [vmem:[#allocation38_spill] sm:$0xff]  ;;  %v7806_v49 = vld [vmem:[#allocation36_spill] sm:$0xff] }
 0x435   :  { %v6510_v63 = vpop.xlane.xlu2 %2526  ;;  %v2613_v57 = vadd.f32 %v3314_v42, %v2612_v62  ;;  %v2621_v24 = vor.u32 1.1754944e-38, %v2620_v27  ;;  %v2738_v14 = vand.u32 2147483647, %v6458_v58  ;;  %v2740_v1 = vand.u32 2147483648, %v6458_v58  ;;  %v7809_v29 = vld [vmem:[#allocation41_spill] sm:$0xff] }
 0x436   :  { %v6523_v36 = vpop.xlane.xlu1 %2092  ;;  %v3070_v48 = vmul.f32 2.0, %v2968_v60  ;;  %3317 = vrcp.f32 %v6510_v63  ;;  %vm2079_vm0 = vcmp.eq.f32.partialorder %v7804_v53, %v6470_v40  ;;  %v2732_v50 = vmul.f32 %v3316_v22, %v2731_v23  ;;  %v7808_v60 = vld [vmem:[#allocation47_spill] sm:$0xff]  ;;  %v7812_v53 = vld [vmem:[#allocation50_spill] sm:$0xff] }
 0x437   :  { %7803 = vst [vmem:[#allocation29_spill] sm:$0xff] %v6523_v36  ;;  %v2617_v35 = vsel %vm2616_vm8, %v3314_v42, %v2613_v57  ;;  %vm2735_vm10 = vweird.f32 %v3316_v22  ;;  %v2200_v12 = vsel %vm2199_vm9, %v6343_v25, inf  ;;  %v2075_v8 = vcvt.s32.f32 %v2073_v46 }
 0x438   :  { %3102 = vst.msk [vmem:[%s7268_s3 + $0xd0] sm:$0xff] %vm2467_vm2, %v3070_v48  ;;  %v2622_v31 = vsel %vm6517_vm7, %v2621_v24, %v2617_v35  ;;  %2201 = vmin.xlane.f32.xlu1 %v2200_v12  ;;  %v2313_v37 = vand.u32 65535, %v7805_v34  ;;  %v2733_v42 = vadd.f32 %v3316_v22, %v2732_v50  ;;  %vm2734_vm11 = vweird.f32 %v6458_v58  ;;  %v7811_v24 = vld [vmem:[#allocation43_spill] sm:$0xff] }
 0x439   :  { %v2623_v27 = vmul.f32 %v2622_v31, %v7806_v49  ;;  %vm2736_vm12 = vmor %vm2734_vm11, %vm2735_vm10  ;;  %v2741_v32 = vor.u32 1.1754944e-38, %v2740_v1  ;;  %v2080_v25 = vsel %vm2079_vm0, %v2075_v8, inf  ;;  %vm2739_vm14 = vcmp.eq.f32.partialorder %v2738_v14, 8.507059e+37  ;;  %v7813_v8 = vld [vmem:[#allocation51_spill] sm:$0xff] }
 0x43a   :  { %1961 = vmin.xlane.f32.xlu2 %v1960_v13  ;;  %v6549_v52 = vpop.xlane.xlu0 %1972  ;;  %v2737_v62 = vsel %vm2736_vm12, %v3316_v22, %v2733_v42  ;;  %2081 = vmin.xlane.f32.xlu0 %v2080_v25  ;;  %v1970_v38 = vcvt.s32.f32 %v1968_v47  ;;  %vm2319_vm3 = vcmp.eq.f32.partialorder %v7809_v29, %v6477_v10  ;;  %v2315_v57 = vcvt.s32.f32 %v2313_v37  ;;  %v7810_v22 = vld [vmem:[#allocation39_spill] sm:$0xff]  ;;  %v7849_v10 = vld [vmem:[#allocation89_spill] sm:$0xff] }
 0x43b   :  { %7807 = vst [vmem:[#allocation30_spill] sm:$0xff] %v6549_v52  ;;  %vm1974_vm13 = vcmp.eq.f32.partialorder %v7808_v60, %v6549_v52  ;;  %v3047_v46 = vmul.f32 2.0, %v2623_v27  ;;  %v2742_v58 = vsel %vm2739_vm14, %v2741_v32, %v2737_v62  ;;  %v2088_v14 = vand.u32 65535, %v7811_v24  ;;  %v7814_v27 = vld [vmem:[#allocation45_spill] sm:$0xff]  ;;  %v7816_v60 = vld [vmem:[#allocation54_spill] sm:$0xff] }
 0x43c   :  { %v3318_v41 = vpop.eup %3317  ;;  %v2743_v23 = vmul.f32 %v2742_v58, %v7810_v22  ;;  %v1975_v47 = vsel %vm1974_vm13, %v1970_v38, inf  ;;  %v2208_v35 = vand.u32 65535, %v7812_v53  ;;  %v2860_v12 = vand.u32 2147483648, %v6510_v63  ;;  %v7819_v22 = vld [vmem:[#allocation57_spill] sm:$0xff] }
 0x43d   :  { %v6556_v54 = vpop.xlane.xlu2 %2481  ;;  %v2850_v13 = vmul.f32 %v3318_v41, %v6510_v63  ;;  %3079 = vst.msk [vmem:[%s7268_s3 + $0x18] sm:$0xff] %vm2467_vm2, %v3047_v46  ;;  %v2320_v31 = vsel %vm2319_vm3, %v2315_v57, inf  ;;  %v2328_v34 = vand.u32 65535, %v7813_v8  ;;  %vm2855_vm4 = vweird.f32 %v3318_v41 }
 0x43e   :  { %v6561_v48 = vpop.xlane.xlu1 %2550  ;;  %3319 = vrcp.f32 %v6556_v54  ;;  %v3055_v50 = vmul.f32 2.0, %v2743_v23  ;;  %v2858_v49 = vand.u32 2147483647, %v6510_v63  ;;  %vm2094_vm5 = vcmp.eq.f32.partialorder %v7814_v27, %v6523_v36 }
 0x43f   :  { %v2851_v1 = vsub.f32 1.0, %v2850_v13  ;;  %3321 = vrcp.f32 %v6561_v48  ;;  %v2090_v32 = vcvt.s32.f32 %v2088_v14  ;;  %vm2854_vm6 = vweird.f32 %v6510_v63  ;;  %v7818_v13 = vld [vmem:[#allocation53_spill] sm:$0xff] }
 0x440   :  { %1976 = vmin.xlane.f32.xlu1 %v1975_v47  ;;  %3087 = vst.msk [vmem:[%s7268_s3 + $0x58] sm:$0xff] %vm2467_vm2, %v3055_v50  ;;  %v2210_v46 = vcvt.s32.f32 %v2208_v35  ;;  %vm2856_vm9 = vmor %vm2854_vm6, %vm2855_vm4  ;;  %v2861_v38 = vor.u32 1.1754944e-38, %v2860_v12  ;;  %v2330_v29 = vcvt.s32.f32 %v2328_v34  ;;  %v2103_v57 = vand.u32 65535, %v7818_v13  ;;  %v7820_v50 = vld [vmem:[#allocation58_spill] sm:$0xff] }
 0x441   :  { %v2852_v37 = vmul.f32 %v3318_v41, %v2851_v1  ;;  %v1983_v23 = vand.u32 65535, %v7819_v22  ;;  %vm2859_vm8 = vcmp.eq.f32.partialorder %v2858_v49, 8.507059e+37  ;;  %v2095_v1 = vsel %vm2094_vm5, %v2090_v32, inf }
 0x442   :  { %2321 = vmin.xlane.f32.xlu2 %v2320_v31  ;;  %v6584_v42 = vpop.xlane.xlu0 %2332  ;;  %v2633_v34 = vand.u32 2147483647, %v6556_v54  ;;  %v2978_v27 = vand.u32 2147483647, %v6561_v48  ;;  %v2980_v32 = vand.u32 2147483648, %v6561_v48  ;;  %vm2629_vm12 = vweird.f32 %v6556_v54 }
 0x443   :  { %7815 = vst [vmem:[#allocation32_spill] sm:$0xff] %v6584_v42  ;;  %v2853_v25 = vadd.f32 %v3318_v41, %v2852_v37  ;;  %vm2334_vm7 = vcmp.eq.f32.partialorder %v7816_v60, %v6584_v42  ;;  %v2635_v37 = vand.u32 2147483648, %v6556_v54  ;;  %v1985_v22 = vcvt.s32.f32 %v1983_v23 }
 0x444   :  { %v3320_v62 = vpop.eup %3319  ;;  %v2335_v12 = vsel %vm2334_vm7, %v2330_v29, inf  ;;  %vm2634_vm3 = vcmp.eq.f32.partialorder %v2633_v34, 8.507059e+37  ;;  %vm2974_vm4 = vweird.f32 %v6561_v48  ;;  %vm2979_vm6 = vcmp.eq.f32.partialorder %v2978_v27, 8.507059e+37 }
 0x445   :  { %v6589_v58 = vpop.xlane.xlu2 %2212  ;;  %v3322_v47 = vpop.eup %3321  ;;  %v2857_v24 = vsel %vm2856_vm9, %v3318_v41, %v2853_v25  ;;  %v2625_v14 = vmul.f32 %v3320_v62, %v6556_v54  ;;  %v7821_v41 = vld [vmem:[#allocation44_spill] sm:$0xff]  ;;  %vm2630_vm10 = vweird.f32 %v3320_v62  ;;  %v7826_v54 = vld [vmem:[#allocation86_spill] sm:$0xff] }
 0x446   :  { %7817 = vst [vmem:[#allocation33_spill] sm:$0xff] %v6589_v58  ;;  %v6594_v63 = vpop.xlane.xlu1 %2505  ;;  %v2862_v53 = vsel %vm2859_vm8, %v2861_v38, %v2857_v24  ;;  %v2970_v35 = vmul.f32 %v3322_v47, %v6561_v48  ;;  %vm2214_vm0 = vcmp.eq.f32.partialorder %v7820_v50, %v6589_v58  ;;  %vm2975_vm11 = vweird.f32 %v3322_v47  ;;  %v7823_v24 = vld [vmem:[#allocation60_spill] sm:$0xff]  ;;  %vm2631_vm14 = vmor %vm2629_vm12, %vm2630_vm10 }
 0x447   :  { %v2863_v31 = vmul.f32 %v2862_v53, %v7821_v41  ;;  %v2626_v8 = vsub.f32 1.0, %v2625_v14  ;;  %3323 = vrcp.f32 %v6594_v63  ;;  %v2215_v60 = vsel %vm2214_vm0, %v2210_v46, inf  ;;  %vm2976_vm5 = vmor %vm2974_vm4, %vm2975_vm11 }
 0x448   :  { %v2971_v49 = vsub.f32 1.0, %v2970_v35  ;;  %2336 = vmin.xlane.f32.xlu1 %v2335_v12  ;;  %2216 = vmin.xlane.f32.xlu0 %v2215_v60  ;;  %v2223_v14 = vand.u32 65535, %v7823_v24  ;;  %v7824_v35 = vld [vmem:[#allocation85_spill] sm:$0xff]  ;;  %v2105_v46 = vcvt.s32.f32 %v2103_v57  ;;  %vm2749_vm0 = vweird.f32 %v6594_v63 }
 0x449   :  { %v3063_v25 = vmul.f32 2.0, %v2863_v31  ;;  %v2627_v38 = vmul.f32 %v3320_v62, %v2626_v8  ;;  %v2981_v31 = vor.u32 1.1754944e-38, %v2980_v32  ;;  %v7830_v32 = vld [vmem:[#allocation52_spill] sm:$0xff] }
 0x44a   :  { %2096 = vmin.xlane.f32.xlu2 %v2095_v1  ;;  %v2972_v29 = vmul.f32 %v3322_v47, %v2971_v49  ;;  %v6611_v13 = vpop.xlane.xlu0 %2107  ;;  %v2636_v1 = vor.u32 1.1754944e-38, %v2635_v37  ;;  %v7828_v37 = vld [vmem:[#allocation48_spill] sm:$0xff]  ;;  %v2225_v27 = vcvt.s32.f32 %v2223_v14 }
 0x44b   :  { %7822 = vst [vmem:[#allocation37_spill] sm:$0xff] %v6611_v13  ;;  %v2628_v53 = vadd.f32 %v3320_v62, %v2627_v38  ;;  %vm2109_vm13 = vcmp.eq.f32.partialorder %v7824_v35, %v6611_v13  ;;  %v7829_v38 = vld [vmem:[#allocation87_spill] sm:$0xff]  ;;  %v2753_v35 = vand.u32 2147483647, %v6594_v63 }
 0x44c   :  { %3095 = vst.msk [vmem:[%s7268_s3 + $0x98] sm:$0xff] %vm2467_vm2, %v3063_v25  ;;  %v2973_v50 = vadd.f32 %v3322_v47, %v2972_v29  ;;  %v2110_v48 = vsel %vm2109_vm13, %v2105_v46, inf }
 0x44d   :  { %v6623_v23 = vpop.xlane.xlu2 %1987  ;;  %v3324_v12 = vpop.eup %3323  ;;  %v2632_v41 = vsel %vm2631_vm14, %v3320_v62, %v2628_v53  ;;  %vm2754_vm11 = vcmp.eq.f32.partialorder %v2753_v35, 8.507059e+37 }
 0x44e   :  { %7825 = vst [vmem:[#allocation34_spill] sm:$0xff] %v6623_v23  ;;  %vm1989_vm7 = vcmp.eq.f32.partialorder %v7826_v54, %v6623_v23  ;;  %v6628_v8 = vpop.xlane.xlu1 %2227  ;;  %v2637_v57 = vsel %vm2634_vm3, %v2636_v1, %v2632_v41  ;;  %v2977_v49 = vsel %vm2976_vm5, %v3322_v47, %v2973_v50  ;;  %v2745_v34 = vmul.f32 %v3324_v12, %v6594_v63 }
 0x44f   :  { %7827 = vst [vmem:[#allocation49_spill] sm:$0xff] %v6628_v8  ;;  %v2638_v25 = vmul.f32 %v2637_v57, %v7828_v37  ;;  %v2982_v62 = vsel %vm2979_vm6, %v2981_v31, %v2977_v49  ;;  %vm2229_vm9 = vcmp.eq.f32.partialorder %v7829_v38, %v6628_v8  ;;  %v1990_v24 = vsel %vm1989_vm7, %v1985_v22, inf  ;;  %v7831_v22 = vld [vmem:[#allocation88_spill] sm:$0xff] }
 0x450   :  { %v2983_v60 = vmul.f32 %v2982_v62, %v7830_v32  ;;  %v2746_v29 = vsub.f32 1.0, %v2745_v34  ;;  %v2755_v47 = vand.u32 2147483648, %v6594_v63  ;;  %2111 = vmin.xlane.f32.xlu1 %v2110_v48  ;;  %v2230_v1 = vsel %vm2229_vm9, %v2225_v27, inf  ;;  %1991 = vmin.xlane.f32.xlu0 %v1990_v24  ;;  %v7833_v34 = vld [vmem:[#allocation91_spill] sm:$0xff]  ;;  %v7835_v62 = vld [vmem:[#allocation92_spill] sm:$0xff] }
 0x451   :  { %v3048_v53 = vmul.f32 2.0, %v2638_v25  ;;  %vm2750_vm8 = vweird.f32 %v3324_v12  ;;  %v1998_v14 = vand.u32 65535, %v7831_v22  ;;  %v2343_v48 = vand.u32 65535, %v7833_v34  ;;  %v7834_v25 = vld [vmem:[#allocation90_spill] sm:$0xff]  ;;  %v7836_v63 = vld [vmem:[#allocation68_spill] sm:$0xff] }
 0x452   :  { %v3071_v50 = vmul.f32 2.0, %v2983_v60  ;;  %v2747_v41 = vmul.f32 %v3324_v12, %v2746_v29  ;;  %v2530_v46 = vpop.xlane.xlu0 %2529  ;;  %2231 = vmin.xlane.f32.xlu2 %v2230_v1  ;;  %vm2751_vm10 = vmor %vm2749_vm0, %vm2750_vm8  ;;  %v2756_v57 = vor.u32 1.1754944e-38, %v2755_v47  ;;  %v2358_v38 = vand.u32 65535, %v7835_v62  ;;  %v7837_v29 = vld [vmem:[#allocation93_spill] sm:$0xff] }
 0x453   :  { %3080 = vst.msk [vmem:[%s7268_s3 + $0x20] sm:$0xff] %vm2467_vm2, %v3048_v53  ;;  %3325 = vrcp.f32 %v2530_v46  ;;  %v2000_v32 = vcvt.s32.f32 %v1998_v14  ;;  %v2238_v60 = vand.u32 65535, %v7836_v63  ;;  %v2118_v24 = vand.u32 65535, %v7837_v29  ;;  %v7838_v53 = vld [vmem:[#allocation55_spill] sm:$0xff] }
 0x454   :  { %3103 = vst.msk [vmem:[%s7268_s3 + $0xd8] sm:$0xff] %vm2467_vm2, %v3071_v50  ;;  %v2748_v31 = vadd.f32 %v3324_v12, %v2747_v41  ;;  %v6666_v35 = vcvt.s32.f32 %v2358_v38  ;;  %v2875_v62 = vand.u32 2147483648, %v2530_v46  ;;  %v7839_v38 = vld [vmem:[#allocation95_spill] sm:$0xff]  ;;  %vm2869_vm14 = vweird.f32 %v2530_v46 }
 0x455   :  { %v6650_v54 = vpop.xlane.xlu2 %2553  ;;  %v6669_v14 = vcvt.s32.f32 %v2238_v60 }
 0x456   :  { %3327 = vrcp.f32 %v6650_v54  ;;  %v6653_v49 = vpop.xlane.xlu1 %2002  ;;  %v2752_v37 = vsel %vm2751_vm10, %v3324_v12, %v2748_v31  ;;  %v6664_v12 = vcvt.s32.f32 %v2343_v48  ;;  %v2993_v63 = vand.u32 2147483647, %v6650_v54 }
 0x457   :  { %7832 = vst [vmem:[#allocation31_spill] sm:$0xff] %v6653_v49  ;;  %vm2004_vm12 = vcmp.eq.f32.partialorder %v7834_v25, %v6653_v49  ;;  %v2757_v27 = vsel %vm2754_vm11, %v2756_v57, %v2752_v37  ;;  %v2873_v57 = vand.u32 2147483647, %v2530_v46  ;;  %v6671_v37 = vcvt.s32.f32 %v2118_v24 }
 0x458   :  { %v2758_v47 = vmul.f32 %v2757_v27, %v7838_v53  ;;  %v2005_v50 = vsel %vm2004_vm12, %v2000_v32, inf  ;;  %v2995_v60 = vand.u32 2147483648, %v6650_v54  ;;  %v2876_v8 = vor.u32 1.1754944e-38, %v2875_v62 }
 0x459   :  { %v3326_v1 = vpop.eup %3325  ;;  %vm6688_vm3 = vcmp.eq.f32.partialorder %v2873_v57, 8.507059e+37  ;;  %vm2989_vm6 = vweird.f32 %v6650_v54  ;;  %vm6696_vm7 = vcmp.eq.f32.partialorder %v2993_v63, 8.507059e+37 }
 0x45a   :  { %v3056_v41 = vmul.f32 2.0, %v2758_v47  ;;  %v2865_v22 = vmul.f32 %v3326_v1, %v2530_v46  ;;  %v6662_v34 = vpop.xlane.xlu0 %2484  ;;  %2006 = vmin.xlane.f32.xlu2 %v2005_v50  ;;  %vm2870_vm13 = vweird.f32 %v3326_v1  ;;  %v2996_v46 = vor.u32 1.1754944e-38, %v2995_v60 }
 0x45b   :  { %3329 = vrcp.f32 %v6662_v34  ;;  %v2648_v47 = vand.u32 2147483647, %v6662_v34  ;;  %v2650_v50 = vand.u32 2147483648, %v6662_v34  ;;  %vm2871_vm5 = vmor %vm2869_vm14, %vm2870_vm13  ;;  %vm2644_vm9 = vweird.f32 %v6662_v34 }
 0x45c   :  { %v3328_v31 = vpop.eup %3327  ;;  %3088 = vst.msk [vmem:[%s7268_s3 + $0x60] sm:$0xff] %vm2467_vm2, %v3056_v41  ;;  %v2866_v25 = vsub.f32 1.0, %v2865_v22  ;;  %v7842_v22 = vld [vmem:[#allocation96_spill] sm:$0xff] }
 0x45d   :  { %v2985_v48 = vmul.f32 %v3328_v31, %v6650_v54  ;;  %v6678_v27 = vpop.xlane.xlu2 %2508  ;;  %vm2990_vm4 = vweird.f32 %v3328_v31  ;;  %vm6702_vm8 = vcmp.eq.f32.partialorder %v2648_v47, 8.507059e+37 }
 0x45e   :  { %3331 = vrcp.f32 %v6678_v27  ;;  %v6684_v29 = vpop.xlane.xlu1 %2532  ;;  %v2867_v24 = vmul.f32 %v3326_v1, %v2866_v25  ;;  %vm2991_vm0 = vmor %vm2989_vm6, %vm2990_vm4  ;;  %vm2764_vm10 = vweird.f32 %v6678_v27  ;;  %v2770_v41 = vand.u32 2147483648, %v6678_v27 }
 0x45f   :  { %v2986_v53 = vsub.f32 1.0, %v2985_v48  ;;  %3333 = vrcp.f32 %v6684_v29  ;;  %vm2884_vm13 = vweird.f32 %v6684_v29  ;;  %v2890_v25 = vand.u32 2147483648, %v6684_v29 }
 0x460   :  { %v2868_v49 = vadd.f32 %v3326_v1, %v2867_v24  ;;  %v2651_v24 = vor.u32 1.1754944e-38, %v2650_v50 }
 0x461   :  { %v2987_v23 = vmul.f32 %v3328_v31, %v2986_v53  ;;  %v3330_v13 = vpop.eup %3329 }
 0x462   :  { %v2872_v57 = vsel %vm2871_vm5, %v3326_v1, %v2868_v49  ;;  %v2640_v32 = vmul.f32 %v3330_v13, %v6662_v34  ;;  %v6706_v53 = vpop.xlane.xlu0 %2511  ;;  %v2768_v49 = vand.u32 2147483647, %v6678_v27  ;;  %vm2645_vm11 = vweird.f32 %v3330_v13  ;;  %v7854_v34 = vld [vmem:[#allocation94_spill] sm:$0xff] }
 0x463   :  { %v2988_v48 = vadd.f32 %v3328_v31, %v2987_v23  ;;  %v2877_v54 = vsel %vm6688_vm3, %v2876_v8, %v2872_v57  ;;  %3335 = vrcp.f32 %v6706_v53  ;;  %v7847_v23 = vld [vmem:[#allocation56_spill] sm:$0xff]  ;;  %v2888_v57 = vand.u32 2147483647, %v6684_v29  ;;  %vm2646_vm3 = vmor %vm2644_vm9, %vm2645_vm11 }
 0x464   :  { %v3332_v58 = vpop.eup %3331  ;;  %v2878_v1 = vmul.f32 %v2877_v54, %v7847_v23  ;;  %v2641_v60 = vsub.f32 1.0, %v2640_v32  ;;  %vm6725_vm12 = vcmp.eq.f32.partialorder %v2768_v49, 8.507059e+37  ;;  %v2771_v49 = vor.u32 1.1754944e-38, %v2770_v41 }
 0x465   :  { %v2992_v63 = vsel %vm2991_vm0, %v3328_v31, %v2988_v48  ;;  %v2760_v47 = vmul.f32 %v3332_v58, %v6678_v27  ;;  %v6716_v50 = vpop.xlane.xlu2 %2347  ;;  %v3334_v42 = vpop.eup %3333  ;;  %vm2765_vm14 = vweird.f32 %v3332_v58  ;;  %vm6739_vm4 = vcmp.eq.f32.partialorder %v2888_v57, 8.507059e+37  ;;  %v7857_v48 = vld [vmem:[#allocation78_spill] sm:$0xff] }
 0x466   :  { %7848 = vst [vmem:[#allocation35_spill] sm:$0xff] %v6716_v50  ;;  %v2997_v8 = vsel %vm6696_vm7, %v2996_v46, %v2992_v63  ;;  %v6722_v36 = vpop.xlane.xlu1 %2487  ;;  %v3064_v52 = vmul.f32 2.0, %v2878_v1  ;;  %v2642_v31 = vmul.f32 %v3330_v13, %v2641_v60  ;;  %v2880_v23 = vmul.f32 %v3334_v42, %v6684_v29  ;;  %vm2766_vm6 = vmor %vm2764_vm10, %vm2765_vm14 }
 0x467   :  { %v2998_v54 = vmul.f32 %v2997_v8, %v7849_v10  ;;  %v2761_v32 = vsub.f32 1.0, %v2760_v47  ;;  %3337 = vrcp.f32 %v6722_v36  ;;  %vm2349_vm5 = vcmp.eq.f32.partialorder %v7854_v34, %v6716_v50 }
 0x468   :  { %3096 = vst.msk [vmem:[%s7268_s3 + $0xa0] sm:$0xff] %vm2467_vm2, %v3064_v52  ;;  %v2643_v1 = vadd.f32 %v3330_v13, %v2642_v31  ;;  %v2881_v60 = vsub.f32 1.0, %v2880_v23  ;;  %vm2885_vm7 = vweird.f32 %v3334_v42  ;;  %v7855_v23 = vld [vmem:[#allocation59_spill] sm:$0xff]  ;;  %v2785_v62 = vand.u32 2147483648, %v6706_v53 }
 0x469   :  { %v3072_v46 = vmul.f32 2.0, %v2998_v54  ;;  %v2762_v10 = vmul.f32 %v3332_v58, %v2761_v32  ;;  %v3336_v63 = vpop.eup %3335  ;;  %v2891_v32 = vor.u32 1.1754944e-38, %v2890_v25  ;;  %v2350_v27 = vsel %vm2349_vm5, %v6664_v12, inf  ;;  %v7856_v25 = vld [vmem:[#allocation64_spill] sm:$0xff]  ;;  %vm2886_vm9 = vmor %vm2884_vm13, %vm2885_vm7  ;;  %v7858_v12 = vld [vmem:[#allocation97_spill] sm:$0xff] }
 0x46a   :  { %v2647_v52 = vsel %vm2646_vm3, %v3330_v13, %v2643_v1  ;;  %v2775_v54 = vmul.f32 %v3336_v63, %v6706_v53  ;;  %v6751_v41 = vpop.xlane.xlu0 %2242  ;;  %v2882_v31 = vmul.f32 %v3334_v42, %v2881_v60  ;;  %2351 = vmin.xlane.f32.xlu0 %v2350_v27  ;;  %vm2779_vm0 = vweird.f32 %v6706_v53 }
 0x46b   :  { %3104 = vst.msk [vmem:[%s7268_s3 + $0xe0] sm:$0xff] %vm2467_vm2, %v3072_v46  ;;  %v2763_v8 = vadd.f32 %v3332_v58, %v2762_v10  ;;  %v2652_v57 = vsel %vm6702_vm8, %v2651_v24, %v2647_v52  ;;  %v2783_v10 = vand.u32 2147483647, %v6706_v53  ;;  %vm2780_vm8 = vweird.f32 %v3336_v63 }
 0x46c   :  { %v2653_v46 = vmul.f32 %v2652_v57, %v7855_v23  ;;  %v2776_v1 = vsub.f32 1.0, %v2775_v54  ;;  %v2883_v50 = vadd.f32 %v3334_v42, %v2882_v31  ;;  %vm2244_vm10 = vcmp.eq.f32.partialorder %v7857_v48, %v6751_v41 }
 0x46d   :  { %v2767_v13 = vsel %vm2766_vm6, %v3332_v58, %v2763_v8  ;;  %v6759_v40 = vpop.xlane.xlu2 %2122  ;;  %v3338_v8 = vpop.eup %3337  ;;  %vm2784_vm13 = vcmp.eq.f32.partialorder %v2783_v10, 8.507059e+37  ;;  %v2786_v31 = vor.u32 1.1754944e-38, %v2785_v62  ;;  %v2663_v23 = vand.u32 2147483647, %v6722_v36 }
 0x46e   :  { %v2772_v34 = vsel %vm6725_vm12, %v2771_v49, %v2767_v13  ;;  %v6765_v24 = vpop.xlane.xlu1 %2362  ;;  %v3049_v60 = vmul.f32 2.0, %v2653_v46  ;;  %v2777_v58 = vmul.f32 %v3336_v63, %v2776_v1  ;;  %v2887_v54 = vsel %vm2886_vm9, %v3334_v42, %v2883_v50  ;;  %v7859_v50 = vld [vmem:[#allocation63_spill] sm:$0xff]  ;;  %vm2781_vm12 = vmor %vm2779_vm0, %vm2780_vm8 }
 0x46f   :  { %v2773_v52 = vmul.f32 %v2772_v34, %v7856_v25  ;;  %vm2124_vm11 = vcmp.eq.f32.partialorder %v7858_v12, %v6759_v40  ;;  %v2892_v49 = vsel %vm6739_vm4, %v2891_v32, %v2887_v54  ;;  %v2655_v42 = vmul.f32 %v3338_v8, %v6722_v36  ;;  %v7860_v32 = vld [vmem:[#allocation98_spill] sm:$0xff] }
 0x470   :  { %3081 = vst.msk [vmem:[%s7268_s3 + $0x28] sm:$0xff] %vm2467_vm2, %v3049_v60  ;;  %v2778_v57 = vadd.f32 %v3336_v63, %v2777_v58  ;;  %v2893_v53 = vmul.f32 %v2892_v49, %v7859_v50  ;;  %v2245_v47 = vsel %vm2244_vm10, %v6669_v14, inf  ;;  %vm2364_vm14 = vcmp.eq.f32.partialorder %v7860_v32, %v6765_v24  ;;  %v7861_v60 = vld [vmem:[#allocation66_spill] sm:$0xff] }
 0x471   :  { %v3057_v29 = vmul.f32 2.0, %v2773_v52  ;;  %v2656_v13 = vsub.f32 1.0, %v2655_v42  ;;  %v2665_v10 = vand.u32 2147483648, %v6722_v36  ;;  %2246 = vmin.xlane.f32.xlu1 %v2245_v47  ;;  %v2125_v62 = vsel %vm2124_vm11, %v6671_v37, inf  ;;  %v7864_v42 = vld [vmem:[#allocation69_spill] sm:$0xff] }
 0x472   :  { %v2782_v46 = vsel %vm2781_vm12, %v3336_v63, %v2778_v57  ;;  %v6791_v1 = vpop.xlane.xlu0 %2017  ;;  %v3065_v34 = vmul.f32 2.0, %v2893_v53  ;;  %vm2660_vm3 = vweird.f32 %v3338_v8  ;;  %v2365_v14 = vsel %vm2364_vm14, %v6666_v35, inf  ;;  %2126 = vmin.xlane.f32.xlu0 %v2125_v62 }
 0x473   :  { %3089 = vst.msk [vmem:[%s7268_s3 + $0x68] sm:$0xff] %vm2467_vm2, %v3057_v29  ;;  %v2787_v27 = vsel %vm2784_vm13, %v2786_v31, %v2782_v46  ;;  %v2657_v25 = vmul.f32 %v3338_v8, %v2656_v13  ;;  %2366 = vmin.xlane.f32.xlu2 %v2365_v14  ;;  %vm2019_vm4 = vcmp.eq.f32.partialorder %v6120_v30, %v6791_v1  ;;  %vm2659_vm5 = vweird.f32 %v6722_v36 }
 0x474   :  { %v2788_v63 = vmul.f32 %v2787_v27, %v7861_v60  ;;  %3097 = vst.msk [vmem:[%s7268_s3 + $0xa8] sm:$0xff] %vm2467_vm2, %v3065_v34  ;;  %v7862_v35 = vand.u32 65535, %v7842_v22  ;;  %vm2661_vm6 = vmor %vm2659_vm5, %vm2660_vm3  ;;  %v2666_v12 = vor.u32 1.1754944e-38, %v2665_v10  ;;  %vm2664_vm9 = vcmp.eq.f32.partialorder %v2663_v23, 8.507059e+37  ;;  %v7865_v60 = vld [vmem:[#allocation73_spill] sm:$0xff] }
 0x475   :  { %v2536_v52 = vpop.xlane.xlu2 %2535  ;;  %v2658_v54 = vadd.f32 %v3338_v8, %v2657_v25  ;;  %v7863_v49 = vand.u32 65535, %v7839_v38  ;;  %v2373_v31 = vand.u32 65535, %v6153_v18  ;;  %v2253_v23 = vand.u32 65535, %v6167_v4 }
 0x476   :  { %3339 = vrcp.f32 %v2536_v52  ;;  %v6806_v58 = vpop.xlane.xlu1 %2137  ;;  %v3058_v37 = vmul.f32 2.0, %v2788_v63  ;;  %v2015_v48 = vcvt.s32.f32 %v7862_v35  ;;  %v2905_v32 = vand.u32 2147483648, %v2536_v52 }
 0x477   :  { %vm2139_vm7 = vcmp.eq.f32.partialorder %v6122_v5, %v6806_v58  ;;  %v2662_v30 = vsel %vm2661_vm6, %v3338_v8, %v2658_v54  ;;  %v2135_v36 = vcvt.s32.f32 %v7863_v49  ;;  %v2375_v8 = vcvt.s32.f32 %v2373_v31 }
 0x478   :  { %3090 = vst.msk [vmem:[%s7268_s3 + $0x70] sm:$0xff] %vm2467_vm2, %v3058_v37  ;;  %v2020_v29 = vsel %vm2019_vm4, %v2015_v48, inf  ;;  %v2667_v57 = vsel %vm2664_vm9, %v2666_v12, %v2662_v30  ;;  %v2148_v34 = vand.u32 65535, %v6214_v26  ;;  %v2903_v10 = vand.u32 2147483647, %v2536_v52 }
 0x479   :  { %v2668_v22 = vmul.f32 %v2667_v57, %v7864_v42  ;;  %v2140_v50 = vsel %vm2139_vm7, %v2135_v36, inf  ;;  %2021 = vmin.xlane.f32.xlu1 %v2020_v29  ;;  %v6841_v63 = vsel %vm1633_vm15, %v7865_v60, 0.0  ;;  %vm2899_vm10 = vweird.f32 %v2536_v52 }
 0x47a   :  { %v6820_v53 = vpop.xlane.xlu0 %2377  ;;  %v2255_v37 = vcvt.s32.f32 %v2253_v23  ;;  %v2906_v54 = vor.u32 1.1754944e-38, %v2905_v32  ;;  %v2150_v26 = vcvt.s32.f32 %v2148_v34  ;;  %v2028_v35 = vand.u32 65535, %v6261_v39  ;;  %v7866_v39 = vld [vmem:[#allocation74_spill] sm:$0xff]  ;;  %v7867_v23 = vld [vmem:[#allocation80_spill] sm:$0xff] }
 0x47b   :  { %v3050_v46 = vmul.f32 2.0, %v2668_v22  ;;  %2141 = vmin.xlane.f32.xlu2 %v2140_v50  ;;  %vm2379_vm8 = vcmp.eq.f32.partialorder %v6210_v61, %v6820_v53  ;;  %v2268_v61 = vand.u32 65535, %v6219_v43  ;;  %vm2904_vm12 = vcmp.eq.f32.partialorder %v2903_v10, 8.507059e+37 }
 0x47c   :  { %v3340_v5 = vpop.eup %3339  ;;  %v2380_v62 = vsel %vm2379_vm8, %v2375_v8, inf  ;;  %v1665_v32 = vsel %vm1633_vm15, %v7867_v23, 0.0  ;;  %v2030_v10 = vcvt.s32.f32 %v2028_v35 }
 0x47d   :  { %v2895_v13 = vmul.f32 %v3340_v5, %v2536_v52  ;;  %v6823_v47 = vpop.xlane.xlu2 %2490  ;;  %3082 = vst.msk [vmem:[%s7268_s3 + $0x30] sm:$0xff] %vm2467_vm2, %v3050_v46  ;;  %vm2900_vm0 = vweird.f32 %v3340_v5  ;;  %v2270_v43 = vcvt.s32.f32 %v2268_v61 }
 0x47e   :  { %3341 = vrcp.f32 %v6823_v47  ;;  %v6828_v38 = vpop.xlane.xlu1 %2514  ;;  %vm2901_vm11 = vmor %vm2899_vm10, %vm2900_vm0  ;;  %v2678_v29 = vand.u32 2147483647, %v6823_v47  ;;  %v2680_v36 = vand.u32 2147483648, %v6823_v47  ;;  %vm2674_vm6 = vweird.f32 %v6823_v47 }
 0x47f   :  { %v2896_v18 = vsub.f32 1.0, %v2895_v13  ;;  %3343 = vrcp.f32 %v6828_v38  ;;  %v2800_v31 = vand.u32 2147483648, %v6828_v38  ;;  %v2798_v61 = vand.u32 2147483647, %v6828_v38 }
 0x480   :  { %vm2794_vm9 = vweird.f32 %v6828_v38  ;;  %vm2679_vm8 = vcmp.eq.f32.partialorder %v2678_v29, 8.507059e+37 }
 0x481   :  { %v2897_v27 = vmul.f32 %v3340_v5, %v2896_v18  ;;  %2381 = vmin.xlane.f32.xlu1 %v2380_v62  ;;  %v2681_v62 = vor.u32 1.1754944e-38, %v2680_v36  ;;  %vm2799_vm10 = vcmp.eq.f32.partialorder %v2798_v61, 8.507059e+37  ;;  %v2294_v36 = vcvt.f32.s32 %v6173_v3 }
 0x482   :  { %v6843_v14 = vpop.xlane.xlu0 %2152 }
 0x483   :  { %v2898_v25 = vadd.f32 %v3340_v5, %v2897_v27  ;;  %vm2154_vm13 = vcmp.eq.f32.partialorder %v6255_v17, %v6843_v14 }
 0x484   :  { %v3342_v4 = vpop.eup %3341  ;;  %v2155_v8 = vsel %vm2154_vm13, %v2150_v26, inf }
 0x485   :  { %v3344_v48 = vpop.eup %3343  ;;  %v2902_v12 = vsel %vm2901_vm11, %v3340_v5, %v2898_v25  ;;  %v2670_v30 = vmul.f32 %v3342_v4, %v6823_v47  ;;  %v6848_v49 = vpop.xlane.xlu2 %2257  ;;  %vm2675_vm3 = vweird.f32 %v3342_v4  ;;  %v2801_v47 = vor.u32 1.1754944e-38, %v2800_v31 }
 0x486   :  { %v2907_v52 = vsel %vm2904_vm12, %v2906_v54, %v2902_v12  ;;  %v2790_v57 = vmul.f32 %v3344_v48, %v6828_v38  ;;  %v6854_v42 = vpop.xlane.xlu1 %2272  ;;  %vm2259_vm14 = vcmp.eq.f32.partialorder %v6258_v19, %v6848_v49  ;;  %vm2795_vm5 = vweird.f32 %v3344_v48  ;;  %vm2676_vm7 = vmor %vm2674_vm6, %vm2675_vm3 }
 0x487   :  { %v2908_v22 = vmul.f32 %v2907_v52, %v7866_v39  ;;  %v2671_v50 = vsub.f32 1.0, %v2670_v30  ;;  %vm2274_vm4 = vcmp.eq.f32.partialorder %v6264_v55, %v6854_v42  ;;  %v2260_v46 = vsel %vm2259_vm14, %v2255_v37, inf  ;;  %vm2796_vm0 = vmor %vm2794_vm9, %vm2795_vm5 }
 0x488   :  { %v2791_v5 = vsub.f32 1.0, %v2790_v57  ;;  %2261 = vmin.xlane.f32.xlu0 %v2260_v46  ;;  %v2275_v17 = vsel %vm2274_vm4, %v2270_v43, inf  ;;  %v1934_v19 = vcvt.f32.s32 %v6125_v28  ;;  %v6880_v28 = vsel %vm2402_vm1, %v6003_v20, %v1665_v32  ;;  %v7868_v43 = vld [vmem:[#allocation61_spill] sm:$0xff] }
 0x489   :  { %v3066_v13 = vmul.f32 2.0, %v2908_v22  ;;  %v2672_v18 = vmul.f32 %v3342_v4, %v2671_v50  ;;  %2276 = vmin.xlane.f32.xlu2 %v2275_v17  ;;  %2156 = vmin.xlane.f32.xlu1 %v2155_v8  ;;  %v6891_v20 = vsel %vm2402_vm1, %v7868_v43, %v6841_v63  ;;  %v2174_v30 = vcvt.f32.s32 %v6195_v7 }
 0x48a   :  { %v2792_v34 = vmul.f32 %v3344_v48, %v2791_v5  ;;  %v6872_v27 = vpop.xlane.xlu0 %2538  ;;  %v2561_v57 = vsel %vm2467_vm2, %v6880_v28, 0.0  ;;  %v2388_v63 = vand.u32 65535, %v6295_v0  ;;  %v2295_v8 = vshll.u32 %v2294_v36, 16  ;;  %v7873_v36 = vld [vmem:[#allocation84_spill] sm:$0xff] }
 0x48b   :  { %3098 = vst.msk [vmem:[%s7268_s3 + $0xb0] sm:$0xff] %vm2467_vm2, %v3066_v13  ;;  %v2673_v55 = vadd.f32 %v3342_v4, %v2672_v18  ;;  %3345 = vrcp.f32 %v6872_v27  ;;  %v2175_v0 = vshll.u32 %v2174_v30, 16  ;;  %v7870_v13 = vld [vmem:[#allocation72_spill] sm:$0xff]  ;;  %v2920_v61 = vand.u32 2147483648, %v6872_v27  ;;  %v7872_v30 = vld [vmem:[#allocation62_spill] sm:$0xff] }
 0x48c   :  { %v2793_v60 = vadd.f32 %v3344_v48, %v2792_v34  ;;  %v1682_v18 = vsel %vm1633_vm15, %v7870_v13, 0  ;;  %v2390_v32 = vcvt.s32.f32 %v2388_v63  ;;  %v2918_v34 = vand.u32 2147483647, %v6872_v27 }
 0x48d   :  { %v2677_v25 = vsel %vm2676_vm7, %v3342_v4, %v2673_v55  ;;  %v6883_v37 = vpop.xlane.xlu2 %2032  ;;  %v1935_v4 = vshll.u32 %v1934_v19, 16  ;;  %vm2914_vm14 = vweird.f32 %v6872_v27  ;;  %v2054_v43 = vcvt.f32.s32 %v6096_v44 }
 0x48e   :  { %v2682_v54 = vsel %vm2679_vm8, %v2681_v62, %v2677_v25  ;;  %v2797_v26 = vsel %vm2796_vm0, %v3344_v48, %v2793_v60  ;;  %vm2034_vm11 = vcmp.eq.f32.partialorder %v6327_v11, %v6883_v37  ;;  %v1932_v38 = vpop.xlane.xlu1 %1931  ;;  %v1949_v25 = vcvt.f32.s32 %v6249_v9 }
 0x48f   :  { %v2683_v35 = vmul.f32 %v2682_v54, %v6192_v21  ;;  %v2802_v12 = vsel %vm2799_vm10, %v2801_v47, %v2797_v26  ;;  %v1933_v48 = vcvt.f32.s32 %v1932_v38  ;;  %v2035_v52 = vsel %vm2034_vm11, %v2030_v10, inf  ;;  %v7869_v21 = vld [vmem:[#allocation67_spill] sm:$0xff] }
 0x490   :  { %v2803_v29 = vmul.f32 %v2802_v12, %v6202_v56  ;;  %2036 = vmin.xlane.f32.xlu0 %v2035_v52  ;;  %v1666_v7 = vsel %vm1633_vm15, %v7869_v21, 0  ;;  %v2558_v56 = vsel %vm2467_vm2, %v6891_v20, 0.0  ;;  %v2921_v9 = vor.u32 1.1754944e-38, %v2920_v61  ;;  %v7874_v21 = vld [vmem:[#allocation77_spill] sm:$0xff] }
 0x491   :  { %v3051_v11 = vmul.f32 2.0, %v2683_v35  ;;  %v3346_v39 = vpop.eup %3345  ;;  %v1936_v50 = vadd.s32 %v1935_v4, %v1933_v48  ;;  %2562 = vadd.xlane.f32.xlu2 %v2561_v57  ;;  %2559 = vadd.xlane.f32.xlu1 %v2558_v56  ;;  %v2069_v4 = vcvt.f32.s32 %v6238_v51  ;;  %vm2919_vm4 = vcmp.eq.f32.partialorder %v2918_v34, 8.507059e+37 }
 0x492   :  { %v3059_v22 = vmul.f32 2.0, %v2803_v29  ;;  %v2910_v3 = vmul.f32 %v3346_v39, %v6872_v27  ;;  %v2172_v31 = vpop.xlane.xlu0 %2171  ;;  %vm2915_vm13 = vweird.f32 %v3346_v39  ;;  %v1663_v29 = vsel %vm1633_vm15, %v7872_v30, 0.0 }
 0x493   :  { %3083 = vst.msk [vmem:[%s7268_s3 + $0x38] sm:$0xff] %vm2467_vm2, %v3051_v11  ;;  %v2435_v5 = vsel %vm2402_vm1, %v1936_v50, %v1666_v7  ;;  %v2173_v46 = vcvt.f32.s32 %v2172_v31  ;;  %vm2916_vm3 = vmor %vm2914_vm14, %vm2915_vm13  ;;  %v1950_v48 = vshll.u32 %v1949_v25, 16  ;;  %v6954_v51 = vsel %vm2402_vm1, %v7873_v36, %v1663_v29  ;;  %v7877_v25 = vld [vmem:[#allocation75_spill] sm:$0xff] }
 0x494   :  { %3091 = vst.msk [vmem:[%s7268_s3 + $0x78] sm:$0xff] %vm2467_vm2, %v3059_v22  ;;  %v2911_v17 = vsub.f32 1.0, %v2910_v3  ;;  %v2055_v63 = vshll.u32 %v2054_v43, 16  ;;  %v1667_v7 = vsel %vm1633_vm15, %v7874_v21, 0  ;;  %v2070_v3 = vshll.u32 %v2069_v4, 16 }
 0x495   :  { %3108 = vst.msk [vmem:[%s7269_s4] sm:$0xff] %vm2467_vm2, %v2435_v5  ;;  %v6923_v23 = vpop.xlane.xlu2 %2392  ;;  %v2176_v19 = vadd.s32 %v2175_v0, %v2173_v46  ;;  %v2555_v46 = vsel %vm2467_vm2, %v6954_v51, 0.0 }
 0x496   :  { %vm2394_vm12 = vcmp.eq.f32.partialorder %v6348_v45, %v6923_v23  ;;  %v2292_v55 = vpop.xlane.xlu1 %2291  ;;  %v2912_v10 = vmul.f32 %v3346_v39, %v2911_v17  ;;  %v7871_v45 = vld [vmem:[#allocation70_spill] sm:$0xff] }
 0x497   :  { %v2293_v62 = vcvt.f32.s32 %v2292_v55  ;;  %v2395_v60 = vsel %vm2394_vm12, %v2390_v32, inf  ;;  %v2451_v47 = vsel %vm2402_vm1, %v2176_v19, %v1682_v18  ;;  %v1690_v38 = vsel %vm1633_vm15, %v7871_v45, 0 }
 0x498   :  { %v2913_v54 = vadd.f32 %v3346_v39, %v2912_v10  ;;  %3124 = vst.msk [vmem:[%s7269_s4 + $0x80] sm:$0xff] %vm2467_vm2, %v2451_v47  ;;  %2396 = vmin.xlane.f32.xlu0 %v2395_v60  ;;  %v2189_v32 = vcvt.f32.s32 %v6253_v59  ;;  %v2309_v59 = vcvt.f32.s32 %v6423_v15  ;;  %v1683_v47 = vsel %vm1633_vm15, %v7877_v25, 0  ;;  %v7878_v15 = vld [vmem:[#allocation81_spill] sm:$0xff] }
 0x499   :  { %v2296_v26 = vadd.s32 %v2295_v8, %v2293_v62  ;;  %v7876_v8 = vld [vmem:[#allocation79_spill] sm:$0xff]  ;;  %v1964_v45 = vcvt.f32.s32 %v6314_v33  ;;  %v1691_v4 = vsel %vm1633_vm15, %v7878_v15, 0 }
 0x49a   :  { %v2917_v35 = vsel %vm2916_vm3, %v3346_v39, %v2913_v54  ;;  %v1947_v12 = vpop.xlane.xlu0 %1946  ;;  %v1675_v17 = vsel %vm1633_vm15, %v7876_v8, 0  ;;  %v2190_v55 = vshll.u32 %v2189_v32, 16  ;;  %v2310_v54 = vshll.u32 %v2309_v59, 16 }
 0x49b   :  { %v2459_v27 = vsel %vm2402_vm1, %v2296_v26, %v1690_v38  ;;  %v2922_v52 = vsel %vm2919_vm4, %v2921_v9, %v2917_v35  ;;  %v1948_v44 = vcvt.f32.s32 %v1947_v12  ;;  %v2204_v38 = vcvt.f32.s32 %v6501_v16  ;;  %v7879_v35 = vld [vmem:[#allocation28_spill] sm:$0xff] }
 0x49c   :  { %3132 = vst.msk [vmem:[%s7269_s4 + $0xc0] sm:$0xff] %vm2467_vm2, %v2459_v27  ;;  %v2923_v11 = vmul.f32 %v2922_v52, %v6282_v6  ;;  %v7875_v6 = vld [vmem:[#allocation65_spill] sm:$0xff]  ;;  %v2084_v27 = vcvt.f32.s32 %v7879_v35  ;;  %v1965_v30 = vshll.u32 %v1964_v45, 16 }
 0x49d   :  { %v2052_v57 = vpop.xlane.xlu2 %2051  ;;  %v1951_v39 = vadd.s32 %v1950_v48, %v1948_v44  ;;  %v1674_v13 = vsel %vm1633_vm15, %v7875_v6, 0  ;;  %v2205_v29 = vshll.u32 %v2204_v38, 16  ;;  %v7884_v6 = vld [vmem:[#allocation82_spill] sm:$0xff] }
 0x49e   :  { %v2053_v22 = vcvt.f32.s32 %v2052_v57  ;;  %v2067_v50 = vpop.xlane.xlu1 %2066  ;;  %v3067_v56 = vmul.f32 2.0, %v2923_v11  ;;  %v7880_v57 = vld [vmem:[#allocation76_spill] sm:$0xff] }
 0x49f   :  { %v2068_v31 = vcvt.f32.s32 %v2067_v50  ;;  %v2436_v0 = vsel %vm2402_vm1, %v1951_v39, %v1667_v7  ;;  %v7881_v39 = vld [vmem:[#allocation40_spill] sm:$0xff]  ;;  %v2085_v50 = vshll.u32 %v2084_v27, 16  ;;  %v7882_v7 = vld [vmem:[#allocation71_spill] sm:$0xff] }
 0x4a0   :  { %v2056_v5 = vadd.s32 %v2055_v63, %v2053_v22  ;;  %3099 = vst.msk [vmem:[%s7268_s3 + $0xb8] sm:$0xff] %vm2467_vm2, %v3067_v56  ;;  %2556 = vadd.xlane.f32.xlu0 %v2555_v46  ;;  %v1668_v63 = vsel %vm1633_vm15, %v7880_v57, 0  ;;  %v1684_v22 = vsel %vm1633_vm15, %v7881_v39, 0  ;;  %v7883_v56 = vld [vmem:[#allocation30_spill] sm:$0xff]  ;;  %v7891_v57 = vld [vmem:[#allocation12_spill] sm:$0xff] }
 0x4a1   :  { %v2071_v18 = vadd.s32 %v2070_v3, %v2068_v31  ;;  %3109 = vst.msk [vmem:[%s7269_s4 + $0x8] sm:$0xff] %vm2467_vm2, %v2436_v0  ;;  %v2324_v3 = vcvt.f32.s32 %v7882_v7  ;;  %v1979_v31 = vcvt.f32.s32 %v7883_v56 }
 0x4a2   :  { %v2443_v34 = vsel %vm2402_vm1, %v2056_v5, %v1674_v13  ;;  %v1676_v13 = vsel %vm1633_vm15, %v7884_v6, 0 }
 0x4a3   :  { %3116 = vst.msk [vmem:[%s7269_s4 + $0x40] sm:$0xff] %vm2467_vm2, %v2443_v34  ;;  %v2444_v61 = vsel %vm2402_vm1, %v2071_v18, %v1675_v17  ;;  %v2325_v32 = vshll.u32 %v2324_v3, 16  ;;  %v1980_v34 = vshll.u32 %v1979_v31, 16  ;;  %v7894_v31 = vld [vmem:[#allocation34_spill] sm:$0xff] }
 0x4a4   :  { %3117 = vst.msk [vmem:[%s7269_s4 + $0x48] sm:$0xff] %vm2467_vm2, %v2444_v61 }
 0x4a5   :  { %v2187_v19 = vpop.xlane.xlu2 %2186  ;;  %v2307_v62 = vpop.xlane.xlu0 %2306 }
 0x4a6   :  { %v2188_v10 = vcvt.f32.s32 %v2187_v19  ;;  %v2308_v26 = vcvt.f32.s32 %v2307_v62 }
 0x4a8   :  { %v2191_v60 = vadd.s32 %v2190_v55, %v2188_v10  ;;  %v2311_v9 = vadd.s32 %v2310_v54, %v2308_v26  ;;  %v7885_v10 = vld [vmem:[#allocation83_spill] sm:$0xff]  ;;  %v7888_v26 = vld [vmem:[#allocation32_spill] sm:$0xff] }
 0x4a9   :  { %v1692_v62 = vsel %vm1633_vm15, %v7885_v10, 0  ;;  %v2339_v45 = vcvt.f32.s32 %v7888_v26  ;;  %v7896_v10 = vld [vmem:[#allocation16_spill] sm:$0xff]  ;;  %v7898_v26 = vld [vmem:[#allocation13_spill] sm:$0xff] }
 0x4aa   :  { %v2452_v43 = vsel %vm2402_vm1, %v2191_v60, %v1683_v47  ;;  %v2460_v33 = vsel %vm2402_vm1, %v2311_v9, %v1691_v4  ;;  %v7886_v60 = vld [vmem:[#allocation9_spill] sm:$0xff] }
 0x4ab   :  { %3125 = vst.msk [vmem:[%s7269_s4 + $0x88] sm:$0xff] %vm2467_vm2, %v2452_v43  ;;  %v2202_v12 = vpop.xlane.xlu1 %2201  ;;  %v1669_v25 = vsel %vm1633_vm15, %v7886_v60, 0  ;;  %v7887_v47 = vld [vmem:[#allocation29_spill] sm:$0xff] }
 0x4ac   :  { %3133 = vst.msk [vmem:[%s7269_s4 + $0xc8] sm:$0xff] %vm2467_vm2, %v2460_v33  ;;  %v2203_v48 = vcvt.f32.s32 %v2202_v12  ;;  %v2099_v54 = vcvt.f32.s32 %v7887_v47  ;;  %v7889_v9 = vld [vmem:[#allocation33_spill] sm:$0xff]  ;;  %v2340_v33 = vshll.u32 %v2339_v45, 16  ;;  %v7897_v47 = vld [vmem:[#allocation11_spill] sm:$0xff]  ;;  %v1670_v45 = vsel %vm1633_vm15, %v7898_v26, 0 }
 0x4ad   :  { %v1962_v16 = vpop.xlane.xlu2 %1961  ;;  %v2082_v36 = vpop.xlane.xlu0 %2081  ;;  %v2219_v15 = vcvt.f32.s32 %v7889_v9 }
 0x4ae   :  { %v1963_v52 = vcvt.f32.s32 %v1962_v16  ;;  %v2206_v44 = vadd.s32 %v2205_v29, %v2203_v48  ;;  %v2083_v21 = vcvt.f32.s32 %v2082_v36  ;;  %v2100_v27 = vshll.u32 %v2099_v54, 16  ;;  %v7890_v36 = vld [vmem:[#allocation8_spill] sm:$0xff] }
 0x4af   :  { %v2220_v29 = vshll.u32 %v2219_v15, 16  ;;  %v1686_v54 = vsel %vm1633_vm15, %v7897_v47, 0 }
 0x4b0   :  { %v1966_v11 = vadd.s32 %v1965_v30, %v1963_v52  ;;  %v2453_v0 = vsel %vm2402_vm1, %v2206_v44, %v1684_v22  ;;  %v2086_v46 = vadd.s32 %v2085_v50, %v2083_v21  ;;  %v7892_v22 = vld [vmem:[#allocation10_spill] sm:$0xff]  ;;  %v7893_v21 = vld [vmem:[#allocation37_spill] sm:$0xff] }
 0x4b1   :  { %3126 = vst.msk [vmem:[%s7269_s4 + $0x90] sm:$0xff] %vm2467_vm2, %v2453_v0  ;;  %v1685_v50 = vsel %vm1633_vm15, %v7892_v22, 0  ;;  %v2114_v7 = vcvt.f32.s32 %v7893_v21  ;;  %v1994_v0 = vcvt.f32.s32 %v7894_v31  ;;  %v2129_v21 = vcvt.f32.s32 %v6759_v40 }
 0x4b2   :  { %v2437_v5 = vsel %vm2402_vm1, %v1966_v11, %v1668_v63  ;;  %v2445_v18 = vsel %vm2402_vm1, %v2086_v46, %v1676_v13  ;;  %v1677_v11 = vsel %vm1633_vm15, %v7890_v36, 0  ;;  %v1693_v63 = vsel %vm1633_vm15, %v7891_v57, 0 }
 0x4b3   :  { %3110 = vst.msk [vmem:[%s7269_s4 + $0x10] sm:$0xff] %vm2467_vm2, %v2437_v5  ;;  %v1977_v8 = vpop.xlane.xlu1 %1976  ;;  %v7895_v5 = vld [vmem:[#allocation49_spill] sm:$0xff]  ;;  %v2249_v57 = vcvt.f32.s32 %v6751_v41 }
 0x4b4   :  { %3118 = vst.msk [vmem:[%s7269_s4 + $0x50] sm:$0xff] %vm2467_vm2, %v2445_v18  ;;  %v1978_v61 = vcvt.f32.s32 %v1977_v8  ;;  %v2234_v46 = vcvt.f32.s32 %v7895_v5  ;;  %v2115_v18 = vshll.u32 %v2114_v7, 16 }
 0x4b5   :  { %v2322_v17 = vpop.xlane.xlu2 %2321 }
 0x4b6   :  { %v2323_v59 = vcvt.f32.s32 %v2322_v17  ;;  %v1981_v19 = vadd.s32 %v1980_v34, %v1978_v61  ;;  %v1995_v34 = vshll.u32 %v1994_v0, 16  ;;  %v2235_v61 = vshll.u32 %v2234_v46, 16 }
 0x4b8   :  { %v2326_v55 = vadd.s32 %v2325_v32, %v2323_v59  ;;  %v2438_v38 = vsel %vm2402_vm1, %v1981_v19, %v1669_v25 }
 0x4b9   :  { %3111 = vst.msk [vmem:[%s7269_s4 + $0x18] sm:$0xff] %vm2467_vm2, %v2438_v38 }
 0x4ba   :  { %v2461_v43 = vsel %vm2402_vm1, %v2326_v55, %v1692_v62  ;;  %v1678_v62 = vsel %vm1633_vm15, %v7896_v10, 0 }
 0x4bb   :  { %3134 = vst.msk [vmem:[%s7269_s4 + $0xd0] sm:$0xff] %vm2467_vm2, %v2461_v43  ;;  %v2337_v4 = vpop.xlane.xlu1 %2336  ;;  %v2217_v16 = vpop.xlane.xlu0 %2216  ;;  %v7899_v43 = vld [vmem:[#allocation31_spill] sm:$0xff] }
 0x4bc   :  { %v2338_v12 = vcvt.f32.s32 %v2337_v4  ;;  %v2218_v48 = vcvt.f32.s32 %v2217_v16  ;;  %v2009_v9 = vcvt.f32.s32 %v7899_v43  ;;  %v7900_v16 = vld [vmem:[#allocation14_spill] sm:$0xff] }
 0x4bd   :  { %v2097_v35 = vpop.xlane.xlu2 %2096 }
 0x4be   :  { %v2098_v30 = vcvt.f32.s32 %v2097_v35  ;;  %v2341_v52 = vadd.s32 %v2340_v33, %v2338_v12  ;;  %v2221_v39 = vadd.s32 %v2220_v29, %v2218_v48  ;;  %v7901_v48 = vld [vmem:[#allocation35_spill] sm:$0xff] }
 0x4c0   :  { %v2101_v44 = vadd.s32 %v2100_v27, %v2098_v30  ;;  %v2462_v3 = vsel %vm2402_vm1, %v2341_v52, %v1693_v63  ;;  %v2454_v6 = vsel %vm2402_vm1, %v2221_v39, %v1685_v50  ;;  %v2010_v27 = vshll.u32 %v2009_v9, 16  ;;  %v7902_v39 = vld [vmem:[#allocation15_spill] sm:$0xff] }
 0x4c1   :  { %3135 = vst.msk [vmem:[%s7269_s4 + $0xd8] sm:$0xff] %vm2467_vm2, %v2462_v3  ;;  %v1671_v30 = vsel %vm1633_vm15, %v7900_v16, 0  ;;  %v2354_v52 = vcvt.f32.s32 %v7901_v48  ;;  %v1694_v22 = vsel %vm1633_vm15, %v7902_v39, 0  ;;  %v2369_v50 = vcvt.f32.s32 %v6765_v24 }
 0x4c2   :  { %v2446_v56 = vsel %vm2402_vm1, %v2101_v44, %v1677_v11  ;;  %3127 = vst.msk [vmem:[%s7269_s4 + $0x98] sm:$0xff] %vm2467_vm2, %v2454_v6  ;;  %v2130_v24 = vshll.u32 %v2129_v21, 16  ;;  %v2384_v9 = vcvt.f32.s32 %v6820_v53 }
 0x4c3   :  { %3119 = vst.msk [vmem:[%s7269_s4 + $0x58] sm:$0xff] %vm2467_vm2, %v2446_v56  ;;  %v2112_v13 = vpop.xlane.xlu1 %2111  ;;  %v1992_v17 = vpop.xlane.xlu0 %1991  ;;  %v2355_v36 = vshll.u32 %v2354_v52, 16  ;;  %v2250_v56 = vshll.u32 %v2249_v57, 16  ;;  %v2370_v0 = vshll.u32 %v2369_v50, 16  ;;  %v7908_v52 = vld [vmem:[#allocation24_spill] sm:$0xff] }
 0x4c4   :  { %v2113_v8 = vcvt.f32.s32 %v2112_v13  ;;  %v1993_v59 = vcvt.f32.s32 %v1992_v17  ;;  %v7903_v13 = vld [vmem:[#allocation18_spill] sm:$0xff] }
 0x4c5   :  { %v2232_v32 = vpop.xlane.xlu2 %2231  ;;  %v1687_v40 = vsel %vm1633_vm15, %v7903_v13, 0 }
 0x4c6   :  { %v2233_v19 = vcvt.f32.s32 %v2232_v32  ;;  %v2116_v55 = vadd.s32 %v2115_v18, %v2113_v8  ;;  %v1996_v60 = vadd.s32 %v1995_v34, %v1993_v59  ;;  %v2024_v8 = vcvt.f32.s32 %v6791_v1  ;;  %v7904_v34 = vld [vmem:[#allocation17_spill] sm:$0xff] }
 0x4c7   :  { %v2144_v1 = vcvt.f32.s32 %v6806_v58 }
 0x4c8   :  { %v2236_v25 = vadd.s32 %v2235_v61, %v2233_v19  ;;  %v2447_v38 = vsel %vm2402_vm1, %v2116_v55, %v1678_v62  ;;  %v2439_v15 = vsel %vm2402_vm1, %v1996_v60, %v1670_v45  ;;  %v1695_v61 = vsel %vm1633_vm15, %v7904_v34, 0  ;;  %v7905_v19 = vld [vmem:[#allocation19_spill] sm:$0xff] }
 0x4c9   :  { %3120 = vst.msk [vmem:[%s7269_s4 + $0x60] sm:$0xff] %vm2467_vm2, %v2447_v38  ;;  %v1679_v55 = vsel %vm1633_vm15, %v7905_v19, 0  ;;  %v7906_v38 = vld [vmem:[#allocation21_spill] sm:$0xff] }
 0x4ca   :  { %v2455_v4 = vsel %vm2402_vm1, %v2236_v25, %v1686_v54  ;;  %3112 = vst.msk [vmem:[%s7269_s4 + $0x20] sm:$0xff] %vm2467_vm2, %v2439_v15  ;;  %v2025_v25 = vshll.u32 %v2024_v8, 16  ;;  %v2145_v54 = vshll.u32 %v2144_v1, 16  ;;  %v1672_v43 = vsel %vm1633_vm15, %v7906_v38, 0  ;;  %v7913_v38 = vld [vmem:[#allocation27_spill] sm:$0xff] }
 0x4cb   :  { %3128 = vst.msk [vmem:[%s7269_s4 + $0xa0] sm:$0xff] %vm2467_vm2, %v2455_v4 }
 0x4cd   :  { %v2007_v35 = vpop.xlane.xlu2 %2006 }
 0x4ce   :  { %v2008_v33 = vcvt.f32.s32 %v2007_v35  ;;  %v7907_v35 = vld [vmem:[#allocation20_spill] sm:$0xff] }
 0x4d0   :  { %v2011_v12 = vadd.s32 %v2010_v27, %v2008_v33  ;;  %v1680_v27 = vsel %vm1633_vm15, %v7907_v35, 0 }
 0x4d2   :  { %v2440_v29 = vsel %vm2402_vm1, %v2011_v12, %v1671_v30  ;;  %v2385_v12 = vshll.u32 %v2384_v9, 16  ;;  %v2264_v30 = vcvt.f32.s32 %v6848_v49 }
 0x4d3   :  { %3113 = vst.msk [vmem:[%s7269_s4 + $0x28] sm:$0xff] %vm2467_vm2, %v2440_v29  ;;  %v2279_v29 = vcvt.f32.s32 %v6854_v42 }
 0x4d5   :  { %v2280_v42 = vshll.u32 %v2279_v29, 16 }
 0x4dd   :  { %v2352_v44 = vpop.xlane.xlu0 %2351 }
 0x4de   :  { %v2353_v11 = vcvt.f32.s32 %v2352_v44  ;;  %v1696_v44 = vsel %vm1633_vm15, %v7908_v52, 0 }
 0x4e0   :  { %v2356_v63 = vadd.s32 %v2355_v36, %v2353_v11  ;;  %v2159_v36 = vcvt.f32.s32 %v6843_v14 }
 0x4e2   :  { %v2463_v7 = vsel %vm2402_vm1, %v2356_v63, %v1694_v22  ;;  %v2265_v63 = vshll.u32 %v2264_v30, 16 }
 0x4e3   :  { %3136 = vst.msk [vmem:[%s7269_s4 + $0xe0] sm:$0xff] %vm2467_vm2, %v2463_v7  ;;  %v7909_v7 = vld [vmem:[#allocation22_spill] sm:$0xff] }
 0x4e4   :  { %v2247_v3 = vpop.xlane.xlu1 %2246  ;;  %v1688_v14 = vsel %vm1633_vm15, %v7909_v7, 0 }
 0x4e5   :  { %v2248_v41 = vcvt.f32.s32 %v2247_v3  ;;  %v2127_v46 = vpop.xlane.xlu0 %2126  ;;  %v2160_v3 = vshll.u32 %v2159_v36, 16 }
 0x4e6   :  { %v2367_v31 = vpop.xlane.xlu2 %2366  ;;  %v2128_v18 = vcvt.f32.s32 %v2127_v46 }
 0x4e7   :  { %v2251_v5 = vadd.s32 %v2250_v56, %v2248_v41  ;;  %v2368_v6 = vcvt.f32.s32 %v2367_v31  ;;  %v7910_v31 = vld [vmem:[#allocation23_spill] sm:$0xff] }
 0x4e8   :  { %v2131_v59 = vadd.s32 %v2130_v24, %v2128_v18 }
 0x4e9   :  { %v2456_v17 = vsel %vm2402_vm1, %v2251_v5, %v1687_v40  ;;  %v2371_v32 = vadd.s32 %v2370_v0, %v2368_v6  ;;  %v1689_v0 = vsel %vm1633_vm15, %v7910_v31, 0  ;;  %v2039_v5 = vcvt.f32.s32 %v6883_v37  ;;  %v7911_v40 = vld [vmem:[#allocation26_spill] sm:$0xff] }
 0x4ea   :  { %3129 = vst.msk [vmem:[%s7269_s4 + $0xa8] sm:$0xff] %vm2467_vm2, %v2456_v17  ;;  %v2448_v62 = vsel %vm2402_vm1, %v2131_v59, %v1679_v55  ;;  %v1681_v24 = vsel %vm1633_vm15, %v7911_v40, 0  ;;  %v7912_v59 = vld [vmem:[#allocation25_spill] sm:$0xff]  ;;  %v2399_v55 = vcvt.f32.s32 %v6923_v23  ;;  %v1697_v23 = vsel %vm1633_vm15, %v7913_v38, 0 }
 0x4eb   :  { %v2464_v10 = vsel %vm2402_vm1, %v2371_v32, %v1695_v61  ;;  %3121 = vst.msk [vmem:[%s7269_s4 + $0x68] sm:$0xff] %vm2467_vm2, %v2448_v62  ;;  %v2040_v8 = vshll.u32 %v2039_v5, 16  ;;  %v1673_v19 = vsel %vm1633_vm15, %v7912_v59, 0 }
 0x4ec   :  { %3137 = vst.msk [vmem:[%s7269_s4 + $0xe8] sm:$0xff] %vm2467_vm2, %v2464_v10  ;;  %v2022_v60 = vpop.xlane.xlu1 %2021 }
 0x4ed   :  { %v2023_v47 = vcvt.f32.s32 %v2022_v60  ;;  %v2400_v60 = vshll.u32 %v2399_v55, 16 }
 0x4ee   :  { %v2142_v58 = vpop.xlane.xlu2 %2141 }
 0x4ef   :  { %v2026_v26 = vadd.s32 %v2025_v25, %v2023_v47  ;;  %v2143_v45 = vcvt.f32.s32 %v2142_v58 }
 0x4f1   :  { %v2441_v15 = vsel %vm2402_vm1, %v2026_v26, %v1672_v43  ;;  %v2146_v4 = vadd.s32 %v2145_v54, %v2143_v45 }
 0x4f2   :  { %3114 = vst.msk [vmem:[%s7269_s4 + $0x30] sm:$0xff] %vm2467_vm2, %v2441_v15 }
 0x4f3   :  { %v2449_v33 = vsel %vm2402_vm1, %v2146_v4, %v1680_v27 }
 0x4f4   :  { %3122 = vst.msk [vmem:[%s7269_s4 + $0x70] sm:$0xff] %vm2467_vm2, %v2449_v33  ;;  %v2382_v53 = vpop.xlane.xlu1 %2381 }
 0x4f5   :  { %v2383_v16 = vcvt.f32.s32 %v2382_v53 }
 0x4f7   :  { %v2386_v48 = vadd.s32 %v2385_v12, %v2383_v16 }
 0x4f9   :  { %v2465_v11 = vsel %vm2402_vm1, %v2386_v48, %v1696_v44 }
 0x4fa   :  { %3138 = vst.msk [vmem:[%s7269_s4 + $0xf0] sm:$0xff] %vm2467_vm2, %v2465_v11 }
 0x4fb   :  { %v2262_v57 = vpop.xlane.xlu0 %2261 }
 0x4fc   :  { %v2263_v49 = vcvt.f32.s32 %v2262_v57  ;;  %v2277_v39 = vpop.xlane.xlu2 %2276  ;;  %v2157_v50 = vpop.xlane.xlu1 %2156 }
 0x4fd   :  { %v2278_v22 = vcvt.f32.s32 %v2277_v39  ;;  %v2158_v56 = vcvt.f32.s32 %v2157_v50 }
 0x4fe   :  { %v2266_v21 = vadd.s32 %v2265_v63, %v2263_v49 }
 0x4ff   :  { %v2281_v41 = vadd.s32 %v2280_v42, %v2278_v22  ;;  %v2161_v6 = vadd.s32 %v2160_v3, %v2158_v56 }
 0x500   :  { %v2457_v46 = vsel %vm2402_vm1, %v2266_v21, %v1688_v14 }
 0x501   :  { %3130 = vst.msk [vmem:[%s7269_s4 + $0xb0] sm:$0xff] %vm2467_vm2, %v2457_v46  ;;  %v2458_v13 = vsel %vm2402_vm1, %v2281_v41, %v1689_v0  ;;  %v2450_v37 = vsel %vm2402_vm1, %v2161_v6, %v1681_v24 }
 0x502   :  { %3131 = vst.msk [vmem:[%s7269_s4 + $0xb8] sm:$0xff] %vm2467_vm2, %v2458_v13 }
 0x503   :  { %v2037_v18 = vpop.xlane.xlu0 %2036  ;;  %3123 = vst.msk [vmem:[%s7269_s4 + $0x78] sm:$0xff] %vm2467_vm2, %v2450_v37 }
 0x504   :  { %v2038_v17 = vcvt.f32.s32 %v2037_v18  ;;  %v2563_v32 = vpop.xlane.xlu2 %2562  ;;  %v2560_v34 = vpop.xlane.xlu1 %2559 }
 0x505   :  { %3347 = vrcp.f32 %v2563_v32  ;;  %v3038_v43 = vand.u32 2147483647, %v2563_v32  ;;  %v3040_v9 = vand.u32 2147483648, %v2563_v32  ;;  %v3025_v27 = vand.u32 2147483648, %v2560_v34 }
 0x506   :  { %v2041_v61 = vadd.s32 %v2040_v8, %v2038_v17  ;;  %3349 = vrcp.f32 %v2560_v34  ;;  %vm3034_vm6 = vweird.f32 %v2563_v32  ;;  %v3023_v53 = vand.u32 2147483647, %v2560_v34 }
 0x507   :  { %vm3019_vm15 = vweird.f32 %v2560_v34  ;;  %v3041_v16 = vor.u32 1.1754944e-38, %v3040_v9  ;;  %vm3039_vm8 = vcmp.eq.f32.partialorder %v3038_v43, 8.507059e+37  ;;  %v3026_v2 = vor.u32 1.1754944e-38, %v3025_v27 }
 0x508   :  { %v2442_v1 = vsel %vm2402_vm1, %v2041_v61, %v1673_v19  ;;  %vm3024_vm0 = vcmp.eq.f32.partialorder %v3023_v53, 8.507059e+37 }
 0x509   :  { %3115 = vst.msk [vmem:[%s7269_s4 + $0x38] sm:$0xff] %vm2467_vm2, %v2442_v1 }
 0x50b   :  { %v3348_v10 = vpop.eup %3347  ;;  %v2397_v62 = vpop.xlane.xlu0 %2396 }
 0x50c   :  { %v3030_v25 = vmul.f32 %v3348_v10, %v2563_v32  ;;  %v2398_v47 = vcvt.f32.s32 %v2397_v62  ;;  %v3350_v58 = vpop.eup %3349  ;;  %vm3035_vm5 = vweird.f32 %v3348_v10 }
 0x50d   :  { %v3015_v54 = vmul.f32 %v3350_v58, %v2560_v34  ;;  %vm3020_vm7 = vweird.f32 %v3350_v58  ;;  %vm3036_vm9 = vmor %vm3034_vm6, %vm3035_vm5 }
 0x50e   :  { %v3031_v26 = vsub.f32 1.0, %v3030_v25  ;;  %v2401_v45 = vadd.s32 %v2400_v60, %v2398_v47 }
 0x50f   :  { %v3016_v15 = vsub.f32 1.0, %v3015_v54 }
 0x510   :  { %v3032_v4 = vmul.f32 %v3348_v10, %v3031_v26  ;;  %v2466_v35 = vsel %vm2402_vm1, %v2401_v45, %v1697_v23  ;;  %vm3021_vm1 = vmor %vm3019_vm15, %vm3020_vm7 }
 0x511   :  { %3139 = vst.msk [vmem:[%s7269_s4 + $0xf8] sm:$0xff] %vm2467_vm2, %v2466_v35  ;;  %v3017_v33 = vmul.f32 %v3350_v58, %v3016_v15 }
 0x512   :  { %v3033_v12 = vadd.f32 %v3348_v10, %v3032_v4 }
 0x513   :  { %v2557_v30 = vpop.xlane.xlu0 %2556  ;;  %v3018_v29 = vadd.f32 %v3350_v58, %v3017_v33 }
 0x514   :  { %v3037_v48 = vsel %vm3036_vm9, %v3348_v10, %v3033_v12  ;;  %3351 = vrcp.f32 %v2557_v30  ;;  %v3010_v50 = vand.u32 2147483648, %v2557_v30  ;;  %v3008_v21 = vand.u32 2147483647, %v2557_v30 }
 0x515   :  { %v3042_v52 = vsel %vm3039_vm8, %v3041_v16, %v3037_v48  ;;  %v3022_v44 = vsel %vm3021_vm1, %v3350_v58, %v3018_v29  ;;  %vm3004_vm11 = vweird.f32 %v2557_v30 }
 0x516   :  { %v3043_v36 = vmul.f32 %v3042_v52, %v6880_v28  ;;  %v3027_v11 = vsel %vm3024_vm0, %v3026_v2, %v3022_v44  ;;  %v3011_v7 = vor.u32 1.1754944e-38, %v3010_v50  ;;  %vm3009_vm13 = vcmp.eq.f32.partialorder %v3008_v21, 8.507059e+37 }
 0x517   :  { %v3028_v57 = vmul.f32 %v3027_v11, %v6891_v20 }
 0x518   :  { %v3075_v63 = vmul.f32 2.0, %v3043_v36 }
 0x519   :  { %v3074_v39 = vmul.f32 2.0, %v3028_v57 }
 0x51a   :  { %v3352_v49 = vpop.eup %3351  ;;  %3107 = vst.msk [vmem:[%s7268_s3 + $0xf8] sm:$0xff] %vm2467_vm2, %v3075_v63 }
 0x51b   :  { %v3000_v42 = vmul.f32 %v3352_v49, %v2557_v30  ;;  %3106 = vst.msk [vmem:[%s7268_s3 + $0xf0] sm:$0xff] %vm2467_vm2, %v3074_v39  ;;  %vm3005_vm10 = vweird.f32 %v3352_v49 }
 0x51c   :  { %vm3006_vm12 = vmor %vm3004_vm11, %vm3005_vm10 }
 0x51d   :  { %v3001_v22 = vsub.f32 1.0, %v3000_v42 }
 0x51f   :  { %v3002_v28 = vmul.f32 %v3352_v49, %v3001_v22 }
 0x521   :  { %v3003_v20 = vadd.f32 %v3352_v49, %v3002_v28 }
 0x523   :  { %v3007_v14 = vsel %vm3006_vm12, %v3352_v49, %v3003_v20 }
 0x524   :  { %v3012_v3 = vsel %vm3009_vm13, %v3011_v7, %v3007_v14 }
 0x525   :  { %v3013_v56 = vmul.f32 %v3012_v3, %v6954_v51 }
 0x527   :  { %v3073_v41 = vmul.f32 2.0, %v3013_v56 }
 0x529   :  { %3105 = vst.msk [vmem:[%s7268_s3 + $0xe8] sm:$0xff] %vm2467_vm2, %v3073_v41 }
 0x52a   :  { %3152 = vsyncpa [#allocation3], 1 }
 0x52b   :  { %3153 = vsyncpa [#allocation5], 1 }

</bundles_post_ra>
